<compile_context>
chip_gen: v7x
topology: tpu7x:2x2x1
jax: 0.10.0
libtpu: 0.0.40
codegen_flags: <defaults>
</compile_context>

<pallas_src>
import jax
import jax.numpy as jnp
from jax import lax
from jax.experimental import pallas as pl
from jax.experimental.pallas import tpu as pltpu


LANE = 128          # lane width -> per-gate column padding
SUBLANE_BF16 = 16   # bf16 sublane tile height -> batch padding


# ----------------------------------------------------------------------------
# Fused kernel: all LSTM layers (wavefront) + final FC in a single grid point.
# Gate order follows PyTorch: [i, f, g, o], each padded to Hp=128 columns.
# ----------------------------------------------------------------------------
def _make_fused_kernel(num_layers, T, Bp, Hp):
    G = 4 * Hp

    def kernel(*refs):
        x_ref, h0_ref, c0_ref = refs[0], refs[1], refs[2]
        p = 3
        layer_w = []
        for _ in range(num_layers):
            layer_w.append((refs[p], refs[p + 1], refs[p + 2]))  # wih_p, whh_p, b_p
            p += 3
        fcw_ref, fcb_ref = refs[p], refs[p + 1]
        out_ref = refs[p + 2]
        proj_scr = refs[p + 3]

        # ---- Hoisted layer-0 input projection (+ bias) for the whole sequence:
        # one batched MXU matmul, completely off the recurrence critical path.
        proj_scr[...] = (
            jnp.dot(x_ref[...], layer_w[0][0][...],
                    preferred_element_type=jnp.float32)
            + layer_w[0][2][...])

        # Hoisted bias broadcasts for layers >= 1 (JAX does not CSE broadcasts).
        bias_b = [None] + [
            jnp.broadcast_to(layer_w[l][2][...], (Bp, G))
            for l in range(1, num_layers)
        ]

        # ---- Recurrent state carried in vregs; bf16 copies for MXU operands.
        h = [h0_ref[l] for l in range(num_layers)]      # (Bp, Hp) f32
        c = [c0_ref[l] for l in range(num_layers)]      # (Bp, Hp) f32
        h_bf = [v.astype(jnp.bfloat16) for v in h]

        def cell(gates, c_prev):
            # Gate slices are lane-aligned (each gate padded to LANE columns):
            # free vreg selects, no lane shifts on the serial chain.
            i_g = jax.nn.sigmoid(gates[:, 0 * Hp:1 * Hp])
            f_g = jax.nn.sigmoid(gates[:, 1 * Hp:2 * Hp])
            g_g = jnp.tanh(gates[:, 2 * Hp:3 * Hp])
            o_g = jax.nn.sigmoid(gates[:, 3 * Hp:4 * Hp])
            c_new = f_g * c_prev + i_g * g_g            # f32 (v5e-safe)
            h_new = o_g * jnp.tanh(c_new)
            return h_new, c_new

        # ---- Wavefront recurrence: at global step s, layer l handles timestep
        # t = s - l, consuming layer l-1's hidden from the previous global step
        # (== h_{l-1, t}). Layers are independent within a step -> their MXU and
        # EUP latencies overlap.
        for s in range(T + num_layers - 1):
            new_h, new_c, new_hbf = list(h), list(c), list(h_bf)
            for l in range(num_layers):
                t = s - l
                if not (0 <= t < T):
                    continue
                if l == 0:
                    gates = (proj_scr[pl.ds(t * Bp, Bp), :]
                             + jnp.dot(h_bf[0], layer_w[0][1][...],
                                       preferred_element_type=jnp.float32))
                else:
                    gates = (jnp.dot(h_bf[l - 1], layer_w[l][0][...],
                                     preferred_element_type=jnp.float32)
                             + jnp.dot(h_bf[l], layer_w[l][1][...],
                                       preferred_element_type=jnp.float32)
                             + bias_b[l])
                h_new, c_new = cell(gates, c[l])
                new_h[l], new_c[l] = h_new, c_new
                new_hbf[l] = h_new.astype(jnp.bfloat16)
            h, c, h_bf = new_h, new_c, new_hbf

        # ---- Final FC on the top layer's last hidden; lane-dense (Bp, Cp) store.
        out_ref[...] = (jnp.dot(h_bf[num_layers - 1], fcw_ref[...],
                                preferred_element_type=jnp.float32)
                        + fcb_ref[...])

    return kernel


# ----------------------------------------------------------------------------
# Layout helpers / wrapper.
# ----------------------------------------------------------------------------
def _pad_gate_cols(w_t, H, Hp):
    """(K, 4H) -> (K, 4*Hp); gate g occupies columns [g*Hp, g*Hp + H), rest 0."""
    K = w_t.shape[0]
    out = jnp.zeros((K, 4 * Hp), w_t.dtype)
    for g in range(4):
        out = out.at[:, g * Hp:g * Hp + H].set(w_t[:, g * H:(g + 1) * H])
    return out


def rnn_forward(x, params, h0, c0):
    """x: (B, T, input_size); h0, c0: (num_layers, B, H). Returns (B, num_classes)."""
    B, T, I = x.shape
    L = len(params["lstm"])
    dims = params["dims"]
    H, Hp, C, Cp = dims["H"], dims["Hp"], dims["C"], dims["Cp"]
    Bp = ((B + SUBLANE_BF16 - 1) // SUBLANE_BF16) * SUBLANE_BF16

    # batch_first -> time-major, pad batch to the bf16 sublane tile, pre-cast to
    # bf16 (matmul operand; halves x DMA), flatten to (T*Bp, I).
    x_tbi = jnp.transpose(x, (1, 0, 2))
    x_tbi = jnp.pad(x_tbi, ((0, 0), (0, Bp - B), (0, 0)))
    x_flat = x_tbi.reshape(T * Bp, I).astype(jnp.bfloat16)

    # Pad h0/c0 to (L, Bp, Hp); padded lanes stay exactly zero through the
    # recurrence because the padded gate columns of W/b are all zero.
    h0p = jnp.zeros((L, Bp, Hp), jnp.float32).at[:, :B, :H].set(h0)
    c0p = jnp.zeros((L, Bp, Hp), jnp.float32).at[:, :B, :H].set(c0)

    args = [x_flat, h0p, c0p]
    in_specs = [
        pl.BlockSpec((T * Bp, I), lambda i: (0, 0)),
        pl.BlockSpec((L, Bp, Hp), lambda i: (0, 0, 0)),
        pl.BlockSpec((L, Bp, Hp), lambda i: (0, 0, 0)),
    ]
    for p in params["lstm"]:
        args += [p["w_ih_p"], p["w_hh_p"], p["b_p"]]
        in_specs += [
            pl.BlockSpec(p["w_ih_p"].shape, lambda i: (0, 0)),
            pl.BlockSpec(p["w_hh_p"].shape, lambda i: (0, 0)),
            pl.BlockSpec(p["b_p"].shape, lambda i: (0, 0)),
        ]
    args += [params["fc"]["w_p"], params["fc"]["b_p"]]
    in_specs += [
        pl.BlockSpec(params["fc"]["w_p"].shape, lambda i: (0, 0)),
        pl.BlockSpec(params["fc"]["b_p"].shape, lambda i: (0, 0)),
    ]

    kernel = _make_fused_kernel(L, T, Bp, Hp)

    # TODO(synk): when B or T scale, add a "parallel" batch-tile grid axis (v7x
    # second TensorCore) and a T-chunk axis; at these shapes one grid point fits
    # easily in VMEM on v5e/v6e/v7x.
    out = pl.pallas_call(
        kernel,
        out_shape=jax.ShapeDtypeStruct((Bp, Cp), jnp.float32),
        grid_spec=pltpu.PrefetchScalarGridSpec(
            num_scalar_prefetch=0,
            grid=(1,),
            in_specs=in_specs,
            out_specs=pl.BlockSpec((Bp, Cp), lambda i: (0, 0)),
            scratch_shapes=[
                pltpu.VMEM((T * Bp, 4 * Hp), jnp.float32),  # hoisted layer-0 proj
            ],
        ),
        compiler_params=pltpu.CompilerParams(
            dimension_semantics=("arbitrary",)),
    )(*args)
    return out[:B, :C]


# ----------------------------------------------------------------------------
# Parameter init: PyTorch LSTM/Linear shapes, U(-1/sqrt(H), 1/sqrt(H)).
# Stores both a compact (reference) layout and the padded kernel layout.
# ----------------------------------------------------------------------------
def init_params(key, input_size, hidden_size, num_layers, num_classes):
    H = hidden_size
    Hp = ((H + LANE - 1) // LANE) * LANE
    Cp = ((num_classes + LANE - 1) // LANE) * LANE
    bound = H ** -0.5
    lstm = []
    for layer in range(num_layers):
        in_sz = input_size if layer == 0 else H
        key, k1, k2, k3, k4 = jax.random.split(key, 5)
        w_ih = jax.random.uniform(k1, (4 * H, in_sz), jnp.float32, -bound, bound)
        w_hh = jax.random.uniform(k2, (4 * H, H), jnp.float32, -bound, bound)
        b_ih = jax.random.uniform(k3, (4 * H,), jnp.float32, -bound, bound)
        b_hh = jax.random.uniform(k4, (4 * H,), jnp.float32, -bound, bound)

        w_ih_t = w_ih.T.astype(jnp.bfloat16)     # (in_sz, 4H) ref layout
        w_hh_t = w_hh.T.astype(jnp.bfloat16)     # (H, 4H)
        bias = (b_ih + b_hh).reshape(1, 4 * H)   # (1, 4H) f32

        # Kernel layouts: gate blocks padded to LANE columns; K padded to Hp for
        # layers >= 1 (their input is the padded hidden state).
        w_ih_p = _pad_gate_cols(w_ih_t.astype(jnp.float32), H, Hp)
        if layer > 0:
            w_ih_p = jnp.pad(w_ih_p, ((0, Hp - in_sz), (0, 0)))
        w_hh_p = jnp.pad(_pad_gate_cols(w_hh_t.astype(jnp.float32), H, Hp),
                         ((0, Hp - H), (0, 0)))
        b_p = _pad_gate_cols(bias, H, Hp)

        lstm.append({
            "w_ih_t": w_ih_t, "w_hh_t": w_hh_t, "bias": bias,       # reference
            "w_ih_p": w_ih_p.astype(jnp.bfloat16),                  # kernel
            "w_hh_p": w_hh_p.astype(jnp.bfloat16),
            "b_p": b_p,
        })

    key, kf1, kf2 = jax.random.split(key, 3)
    w_fc = jax.random.uniform(kf1, (num_classes, H), jnp.float32, -bound, bound)
    b_fc = jax.random.uniform(kf2, (num_classes,), jnp.float32, -bound, bound)
    fc_w_t = w_fc.T.astype(jnp.bfloat16)                            # (H, C)
    fc_w_p = (jnp.zeros((Hp, Cp), jnp.float32)
              .at[:H, :num_classes].set(fc_w_t.astype(jnp.float32))
              .astype(jnp.bfloat16))
    fc_b = b_fc.reshape(1, num_classes)
    fc_b_p = jnp.zeros((1, Cp), jnp.float32).at[:, :num_classes].set(fc_b)

    params = {"lstm": lstm,
              "fc": {"w_t": fc_w_t, "b": fc_b, "w_p": fc_w_p, "b_p": fc_b_p},
              "dims": {"H": H, "Hp": Hp, "C": num_classes, "Cp": Cp}}
    return params, key


# ----------------------------------------------------------------------------
# Pure-JAX reference (f32 math on the same bf16-rounded weights).
# ----------------------------------------------------------------------------
def ref_forward(x, params, h0, c0):
    hp = jax.lax.Precision.HIGHEST
    layer_in = x
    for layer, p in enumerate(params["lstm"]):
        wih = p["w_ih_t"].astype(jnp.float32)
        whh = p["w_hh_t"].astype(jnp.float32)
        b = p["bias"]
        H = whh.shape[0]
        h, c = h0[layer], c0[layer]
        outs = []
        for t in range(layer_in.shape[1]):
            xt = layer_in[:, t, :]
            g = jnp.dot(xt, wih, precision=hp) + jnp.dot(h, whh, precision=hp) + b
            i_g = jax.nn.sigmoid(g[:, :H])
            f_g = jax.nn.sigmoid(g[:, H:2 * H])
            g_g = jnp.tanh(g[:, 2 * H:3 * H])
            o_g = jax.nn.sigmoid(g[:, 3 * H:])
            c = f_g * c + i_g * g_g
            h = o_g * jnp.tanh(c)
            outs.append(h)
        layer_in = jnp.stack(outs, axis=1)
    h_last = layer_in[:, -1, :]
    return (jnp.dot(h_last, params["fc"]["w_t"].astype(jnp.float32), precision=hp)
            + params["fc"]["b"])


if __name__ == "__main__":
    # Small shapes implied by the module's forward: x is (batch, seq, input_size).
    B, T, INPUT, HIDDEN, LAYERS, CLASSES = 2, 8, 16, 32, 2, 4

    key = jax.random.PRNGKey(0)
    params, key = init_params(key, INPUT, HIDDEN, LAYERS, CLASSES)

    key, kx, kh, kc = jax.random.split(key, 4)
    x = jax.random.normal(kx, (B, T, INPUT), jnp.float32)
    # PyTorch forward draws random h0/c0 (torch.rand -> U[0,1)); mirrored here
    # deterministically with fixed keys.
    h0 = jax.random.uniform(kh, (LAYERS, B, HIDDEN), jnp.float32)
    c0 = jax.random.uniform(kc, (LAYERS, B, HIDDEN), jnp.float32)

    out = rnn_forward(x, params, h0, c0)
    jax.block_until_ready(out)
    assert out.shape == (B, CLASSES), out.shape

    ref = ref_forward(x, params, h0, c0)
    assert jnp.allclose(out, ref, atol=5e-2, rtol=5e-2), (out, ref)

    print("KERNEL_OK")
</pallas_src>

<mosaic_0001>
module attributes {stable_mosaic.version = 11 : i64} {
  func.func @kernel(%arg0: i32, %arg1: memref<128x16xbf16, #tpu.memory_space<vmem>>, %arg2: memref<2x16x128xf32, #tpu.memory_space<vmem>>, %arg3: memref<2x16x128xf32, #tpu.memory_space<vmem>>, %arg4: memref<16x512xbf16, #tpu.memory_space<vmem>>, %arg5: memref<128x512xbf16, #tpu.memory_space<vmem>>, %arg6: memref<1x512xf32, #tpu.memory_space<vmem>>, %arg7: memref<128x512xbf16, #tpu.memory_space<vmem>>, %arg8: memref<128x512xbf16, #tpu.memory_space<vmem>>, %arg9: memref<1x512xf32, #tpu.memory_space<vmem>>, %arg10: memref<128x128xbf16, #tpu.memory_space<vmem>>, %arg11: memref<1x128xf32, #tpu.memory_space<vmem>>, %arg12: memref<16x128xf32, #tpu.memory_space<vmem>>, %arg13: memref<128x512xf32, #tpu.memory_space<vmem>>) attributes {dimension_semantics = [#tpu.dimension_semantics<arbitrary>], iteration_bounds = array<i64: 1>, scalar_prefetch = 0 : i64, scratch_operands = 1 : i64, tpu.core_type = #tpu.core_type<tc>, window_params = [{pipeline_mode = #tpu.pipeline_mode<synchronous>, transform_indices = @transform_0, window_bounds = array<i64: 128, 16>}, {pipeline_mode = #tpu.pipeline_mode<synchronous>, transform_indices = @transform_1, window_bounds = array<i64: 2, 16, 128>}, {pipeline_mode = #tpu.pipeline_mode<synchronous>, transform_indices = @transform_2, window_bounds = array<i64: 2, 16, 128>}, {pipeline_mode = #tpu.pipeline_mode<synchronous>, transform_indices = @transform_3, window_bounds = array<i64: 16, 512>}, {pipeline_mode = #tpu.pipeline_mode<synchronous>, transform_indices = @transform_4, window_bounds = array<i64: 128, 512>}, {pipeline_mode = #tpu.pipeline_mode<synchronous>, transform_indices = @transform_5, window_bounds = array<i64: 1, 512>}, {pipeline_mode = #tpu.pipeline_mode<synchronous>, transform_indices = @transform_6, window_bounds = array<i64: 128, 512>}, {pipeline_mode = #tpu.pipeline_mode<synchronous>, transform_indices = @transform_7, window_bounds = array<i64: 128, 512>}, {pipeline_mode = #tpu.pipeline_mode<synchronous>, transform_indices = @transform_8, window_bounds = array<i64: 1, 512>}, {pipeline_mode = #tpu.pipeline_mode<synchronous>, transform_indices = @transform_9, window_bounds = array<i64: 128, 128>}, {pipeline_mode = #tpu.pipeline_mode<synchronous>, transform_indices = @transform_10, window_bounds = array<i64: 1, 128>}, {pipeline_mode = #tpu.pipeline_mode<synchronous>, transform_indices = @transform_11, window_bounds = array<i64: 16, 128>}]} {
    %c0 = arith.constant 0 : index
    %c0_0 = arith.constant 0 : index
    %0 = vector.load %arg1[%c0, %c0_0] : memref<128x16xbf16, #tpu.memory_space<vmem>>, vector<128x16xbf16>
    %c0_1 = arith.constant 0 : index
    %c0_2 = arith.constant 0 : index
    %1 = vector.load %arg4[%c0_1, %c0_2] : memref<16x512xbf16, #tpu.memory_space<vmem>>, vector<16x512xbf16>
    %cst = arith.constant dense<0.000000e+00> : vector<128x512xf32>
    %2 = tpu.matmul %0, %1, %cst {dimension_numbers = #tpu.dot_dimension_numbers<[1], [0], [0], [1], [0, 0, 1, 1], [], []>} : vector<128x16xbf16>, vector<16x512xbf16>, vector<128x512xf32> -> vector<128x512xf32>
    %c0_3 = arith.constant 0 : index
    %c0_4 = arith.constant 0 : index
    %3 = vector.load %arg6[%c0_3, %c0_4] : memref<1x512xf32, #tpu.memory_space<vmem>>, vector<1x512xf32>
    %4 = vector.broadcast %3 : vector<1x512xf32> to vector<128x512xf32>
    %5 = arith.addf %2, %4 : vector<128x512xf32>
    %c0_5 = arith.constant 0 : index
    %c0_6 = arith.constant 0 : index
    %6 = vector.load %arg13[%c0_5, %c0_6] : memref<128x512xf32, #tpu.memory_space<vmem>>, vector<128x512xf32>
    tpu.vector_store %arg13[%c0_5, %c0_6], %5 {strides = array<i32>} : memref<128x512xf32, #tpu.memory_space<vmem>>, vector<128x512xf32>,
    %c0_7 = arith.constant 0 : index
    %c0_8 = arith.constant 0 : index
    %7 = vector.load %arg9[%c0_7, %c0_8] : memref<1x512xf32, #tpu.memory_space<vmem>>, vector<1x512xf32>
    %8 = vector.shape_cast %7 : vector<1x512xf32> to vector<1x512xf32>
    %9 = vector.broadcast %8 : vector<1x512xf32> to vector<16x512xf32>
    %c0_9 = arith.constant 0 : index
    %c0_10 = arith.constant 0 : index
    %c0_11 = arith.constant 0 : index
    %10 = vector.load %arg2[%c0_9, %c0_10, %c0_11] : memref<2x16x128xf32, #tpu.memory_space<vmem>>, vector<1x16x128xf32>
    %11 = vector.shape_cast %10 : vector<1x16x128xf32> to vector<16x128xf32>
    %c1 = arith.constant 1 : index
    %c0_12 = arith.constant 0 : index
    %c0_13 = arith.constant 0 : index
    %12 = vector.load %arg2[%c1, %c0_12, %c0_13] : memref<2x16x128xf32, #tpu.memory_space<vmem>>, vector<1x16x128xf32>
    %13 = vector.shape_cast %12 : vector<1x16x128xf32> to vector<16x128xf32>
    %c0_14 = arith.constant 0 : index
    %c0_15 = arith.constant 0 : index
    %c0_16 = arith.constant 0 : index
    %14 = vector.load %arg3[%c0_14, %c0_15, %c0_16] : memref<2x16x128xf32, #tpu.memory_space<vmem>>, vector<1x16x128xf32>
    %15 = vector.shape_cast %14 : vector<1x16x128xf32> to vector<16x128xf32>
    %c1_17 = arith.constant 1 : index
    %c0_18 = arith.constant 0 : index
    %c0_19 = arith.constant 0 : index
    %16 = vector.load %arg3[%c1_17, %c0_18, %c0_19] : memref<2x16x128xf32, #tpu.memory_space<vmem>>, vector<1x16x128xf32>
    %17 = vector.shape_cast %16 : vector<1x16x128xf32> to vector<16x128xf32>
    %18 = arith.truncf %11 : vector<16x128xf32> to vector<16x128xbf16>
    %19 = arith.truncf %13 : vector<16x128xf32> to vector<16x128xbf16>
    %c0_20 = arith.constant 0 : index
    %c0_21 = arith.constant 0 : index
    %20 = vector.load %arg13[%c0_20, %c0_21] : memref<128x512xf32, #tpu.memory_space<vmem>>, vector<16x512xf32>
    %c0_22 = arith.constant 0 : index
    %c0_23 = arith.constant 0 : index
    %21 = vector.load %arg5[%c0_22, %c0_23] : memref<128x512xbf16, #tpu.memory_space<vmem>>, vector<128x512xbf16>
    %cst_24 = arith.constant dense<0.000000e+00> : vector<16x512xf32>
    %22 = tpu.matmul %18, %21, %cst_24 {dimension_numbers = #tpu.dot_dimension_numbers<[1], [0], [0], [1], [0, 0, 1, 1], [], []>} : vector<16x128xbf16>, vector<128x512xbf16>, vector<16x512xf32> -> vector<16x512xf32>
    %23 = arith.addf %20, %22 : vector<16x512xf32>
    %24 = vector.extract_strided_slice %23 {offsets = [0, 0], sizes = [16, 128], strides = [1, 1]} : vector<16x512xf32> to vector<16x128xf32>
    %25 = arith.negf %24 : vector<16x128xf32>
    %26 = math.exp %25 : vector<16x128xf32>
    %cst_25 = arith.constant 1.000000e+00 : f32
    %27 = vector.broadcast %cst_25 : f32 to vector<16x128xf32>
    %28 = arith.addf %27, %26 : vector<16x128xf32>
    %29 = arith.divf %27, %28 : vector<16x128xf32>
    %30 = vector.extract_strided_slice %23 {offsets = [0, 128], sizes = [16, 128], strides = [1, 1]} : vector<16x512xf32> to vector<16x128xf32>
    %31 = arith.negf %30 : vector<16x128xf32>
    %32 = math.exp %31 : vector<16x128xf32>
    %cst_26 = arith.constant 1.000000e+00 : f32
    %33 = vector.broadcast %cst_26 : f32 to vector<16x128xf32>
    %34 = arith.addf %33, %32 : vector<16x128xf32>
    %35 = arith.divf %33, %34 : vector<16x128xf32>
    %36 = vector.extract_strided_slice %23 {offsets = [0, 256], sizes = [16, 128], strides = [1, 1]} : vector<16x512xf32> to vector<16x128xf32>
    %37 = math.tanh %36 : vector<16x128xf32>
    %38 = vector.extract_strided_slice %23 {offsets = [0, 384], sizes = [16, 128], strides = [1, 1]} : vector<16x512xf32> to vector<16x128xf32>
    %39 = arith.negf %38 : vector<16x128xf32>
    %40 = math.exp %39 : vector<16x128xf32>
    %cst_27 = arith.constant 1.000000e+00 : f32
    %41 = vector.broadcast %cst_27 : f32 to vector<16x128xf32>
    %42 = arith.addf %41, %40 : vector<16x128xf32>
    %43 = arith.divf %41, %42 : vector<16x128xf32>
    %44 = arith.mulf %35, %15 : vector<16x128xf32>
    %45 = arith.mulf %29, %37 : vector<16x128xf32>
    %46 = arith.addf %44, %45 : vector<16x128xf32>
    %47 = math.tanh %46 : vector<16x128xf32>
    %48 = arith.mulf %43, %47 : vector<16x128xf32>
    %49 = arith.truncf %48 : vector<16x128xf32> to vector<16x128xbf16>
    %c16 = arith.constant 16 : index
    %c0_28 = arith.constant 0 : index
    %50 = vector.load %arg13[%c16, %c0_28] : memref<128x512xf32, #tpu.memory_space<vmem>>, vector<16x512xf32>
    %c0_29 = arith.constant 0 : index
    %c0_30 = arith.constant 0 : index
    %51 = vector.load %arg5[%c0_29, %c0_30] : memref<128x512xbf16, #tpu.memory_space<vmem>>, vector<128x512xbf16>
    %cst_31 = arith.constant dense<0.000000e+00> : vector<16x512xf32>
    %52 = tpu.matmul %49, %51, %cst_31 {dimension_numbers = #tpu.dot_dimension_numbers<[1], [0], [0], [1], [0, 0, 1, 1], [], []>} : vector<16x128xbf16>, vector<128x512xbf16>, vector<16x512xf32> -> vector<16x512xf32>
    %53 = arith.addf %50, %52 : vector<16x512xf32>
    %54 = vector.extract_strided_slice %53 {offsets = [0, 0], sizes = [16, 128], strides = [1, 1]} : vector<16x512xf32> to vector<16x128xf32>
    %55 = arith.negf %54 : vector<16x128xf32>
    %56 = math.exp %55 : vector<16x128xf32>
    %cst_32 = arith.constant 1.000000e+00 : f32
    %57 = vector.broadcast %cst_32 : f32 to vector<16x128xf32>
    %58 = arith.addf %57, %56 : vector<16x128xf32>
    %59 = arith.divf %57, %58 : vector<16x128xf32>
    %60 = vector.extract_strided_slice %53 {offsets = [0, 128], sizes = [16, 128], strides = [1, 1]} : vector<16x512xf32> to vector<16x128xf32>
    %61 = arith.negf %60 : vector<16x128xf32>
    %62 = math.exp %61 : vector<16x128xf32>
    %cst_33 = arith.constant 1.000000e+00 : f32
    %63 = vector.broadcast %cst_33 : f32 to vector<16x128xf32>
    %64 = arith.addf %63, %62 : vector<16x128xf32>
    %65 = arith.divf %63, %64 : vector<16x128xf32>
    %66 = vector.extract_strided_slice %53 {offsets = [0, 256], sizes = [16, 128], strides = [1, 1]} : vector<16x512xf32> to vector<16x128xf32>
    %67 = math.tanh %66 : vector<16x128xf32>
    %68 = vector.extract_strided_slice %53 {offsets = [0, 384], sizes = [16, 128], strides = [1, 1]} : vector<16x512xf32> to vector<16x128xf32>
    %69 = arith.negf %68 : vector<16x128xf32>
    %70 = math.exp %69 : vector<16x128xf32>
    %cst_34 = arith.constant 1.000000e+00 : f32
    %71 = vector.broadcast %cst_34 : f32 to vector<16x128xf32>
    %72 = arith.addf %71, %70 : vector<16x128xf32>
    %73 = arith.divf %71, %72 : vector<16x128xf32>
    %74 = arith.mulf %65, %46 : vector<16x128xf32>
    %75 = arith.mulf %59, %67 : vector<16x128xf32>
    %76 = arith.addf %74, %75 : vector<16x128xf32>
    %77 = math.tanh %76 : vector<16x128xf32>
    %78 = arith.mulf %73, %77 : vector<16x128xf32>
    %79 = arith.truncf %78 : vector<16x128xf32> to vector<16x128xbf16>
    %c0_35 = arith.constant 0 : index
    %c0_36 = arith.constant 0 : index
    %80 = vector.load %arg7[%c0_35, %c0_36] : memref<128x512xbf16, #tpu.memory_space<vmem>>, vector<128x512xbf16>
    %cst_37 = arith.constant dense<0.000000e+00> : vector<16x512xf32>
    %81 = tpu.matmul %49, %80, %cst_37 {dimension_numbers = #tpu.dot_dimension_numbers<[1], [0], [0], [1], [0, 0, 1, 1], [], []>} : vector<16x128xbf16>, vector<128x512xbf16>, vector<16x512xf32> -> vector<16x512xf32>
    %c0_38 = arith.constant 0 : index
    %c0_39 = arith.constant 0 : index
    %82 = vector.load %arg8[%c0_38, %c0_39] : memref<128x512xbf16, #tpu.memory_space<vmem>>, vector<128x512xbf16>
    %cst_40 = arith.constant dense<0.000000e+00> : vector<16x512xf32>
    %83 = tpu.matmul %19, %82, %cst_40 {dimension_numbers = #tpu.dot_dimension_numbers<[1], [0], [0], [1], [0, 0, 1, 1], [], []>} : vector<16x128xbf16>, vector<128x512xbf16>, vector<16x512xf32> -> vector<16x512xf32>
    %84 = arith.addf %81, %83 : vector<16x512xf32>
    %85 = arith.addf %84, %9 : vector<16x512xf32>
    %86 = vector.extract_strided_slice %85 {offsets = [0, 0], sizes = [16, 128], strides = [1, 1]} : vector<16x512xf32> to vector<16x128xf32>
    %87 = arith.negf %86 : vector<16x128xf32>
    %88 = math.exp %87 : vector<16x128xf32>
    %cst_41 = arith.constant 1.000000e+00 : f32
    %89 = vector.broadcast %cst_41 : f32 to vector<16x128xf32>
    %90 = arith.addf %89, %88 : vector<16x128xf32>
    %91 = arith.divf %89, %90 : vector<16x128xf32>
    %92 = vector.extract_strided_slice %85 {offsets = [0, 128], sizes = [16, 128], strides = [1, 1]} : vector<16x512xf32> to vector<16x128xf32>
    %93 = arith.negf %92 : vector<16x128xf32>
    %94 = math.exp %93 : vector<16x128xf32>
    %cst_42 = arith.constant 1.000000e+00 : f32
    %95 = vector.broadcast %cst_42 : f32 to vector<16x128xf32>
    %96 = arith.addf %95, %94 : vector<16x128xf32>
    %97 = arith.divf %95, %96 : vector<16x128xf32>
    %98 = vector.extract_strided_slice %85 {offsets = [0, 256], sizes = [16, 128], strides = [1, 1]} : vector<16x512xf32> to vector<16x128xf32>
    %99 = math.tanh %98 : vector<16x128xf32>
    %100 = vector.extract_strided_slice %85 {offsets = [0, 384], sizes = [16, 128], strides = [1, 1]} : vector<16x512xf32> to vector<16x128xf32>
    %101 = arith.negf %100 : vector<16x128xf32>
    %102 = math.exp %101 : vector<16x128xf32>
    %cst_43 = arith.constant 1.000000e+00 : f32
    %103 = vector.broadcast %cst_43 : f32 to vector<16x128xf32>
    %104 = arith.addf %103, %102 : vector<16x128xf32>
    %105 = arith.divf %103, %104 : vector<16x128xf32>
    %106 = arith.mulf %97, %17 : vector<16x128xf32>
    %107 = arith.mulf %91, %99 : vector<16x128xf32>
    %108 = arith.addf %106, %107 : vector<16x128xf32>
    %109 = math.tanh %108 : vector<16x128xf32>
    %110 = arith.mulf %105, %109 : vector<16x128xf32>
    %111 = arith.truncf %110 : vector<16x128xf32> to vector<16x128xbf16>
    %c32 = arith.constant 32 : index
    %c0_44 = arith.constant 0 : index
    %112 = vector.load %arg13[%c32, %c0_44] : memref<128x512xf32, #tpu.memory_space<vmem>>, vector<16x512xf32>
    %c0_45 = arith.constant 0 : index
    %c0_46 = arith.constant 0 : index
    %113 = vector.load %arg5[%c0_45, %c0_46] : memref<128x512xbf16, #tpu.memory_space<vmem>>, vector<128x512xbf16>
    %cst_47 = arith.constant dense<0.000000e+00> : vector<16x512xf32>
    %114 = tpu.matmul %79, %113, %cst_47 {dimension_numbers = #tpu.dot_dimension_numbers<[1], [0], [0], [1], [0, 0, 1, 1], [], []>} : vector<16x128xbf16>, vector<128x512xbf16>, vector<16x512xf32> -> vector<16x512xf32>
    %115 = arith.addf %112, %114 : vector<16x512xf32>
    %116 = vector.extract_strided_slice %115 {offsets = [0, 0], sizes = [16, 128], strides = [1, 1]} : vector<16x512xf32> to vector<16x128xf32>
    %117 = arith.negf %116 : vector<16x128xf32>
    %118 = math.exp %117 : vector<16x128xf32>
    %cst_48 = arith.constant 1.000000e+00 : f32
    %119 = vector.broadcast %cst_48 : f32 to vector<16x128xf32>
    %120 = arith.addf %119, %118 : vector<16x128xf32>
    %121 = arith.divf %119, %120 : vector<16x128xf32>
    %122 = vector.extract_strided_slice %115 {offsets = [0, 128], sizes = [16, 128], strides = [1, 1]} : vector<16x512xf32> to vector<16x128xf32>
    %123 = arith.negf %122 : vector<16x128xf32>
    %124 = math.exp %123 : vector<16x128xf32>
    %cst_49 = arith.constant 1.000000e+00 : f32
    %125 = vector.broadcast %cst_49 : f32 to vector<16x128xf32>
    %126 = arith.addf %125, %124 : vector<16x128xf32>
    %127 = arith.divf %125, %126 : vector<16x128xf32>
    %128 = vector.extract_strided_slice %115 {offsets = [0, 256], sizes = [16, 128], strides = [1, 1]} : vector<16x512xf32> to vector<16x128xf32>
    %129 = math.tanh %128 : vector<16x128xf32>
    %130 = vector.extract_strided_slice %115 {offsets = [0, 384], sizes = [16, 128], strides = [1, 1]} : vector<16x512xf32> to vector<16x128xf32>
    %131 = arith.negf %130 : vector<16x128xf32>
    %132 = math.exp %131 : vector<16x128xf32>
    %cst_50 = arith.constant 1.000000e+00 : f32
    %133 = vector.broadcast %cst_50 : f32 to vector<16x128xf32>
    %134 = arith.addf %133, %132 : vector<16x128xf32>
    %135 = arith.divf %133, %134 : vector<16x128xf32>
    %136 = arith.mulf %127, %76 : vector<16x128xf32>
    %137 = arith.mulf %121, %129 : vector<16x128xf32>
    %138 = arith.addf %136, %137 : vector<16x128xf32>
    %139 = math.tanh %138 : vector<16x128xf32>
    %140 = arith.mulf %135, %139 : vector<16x128xf32>
    %141 = arith.truncf %140 : vector<16x128xf32> to vector<16x128xbf16>
    %c0_51 = arith.constant 0 : index
    %c0_52 = arith.constant 0 : index
    %142 = vector.load %arg7[%c0_51, %c0_52] : memref<128x512xbf16, #tpu.memory_space<vmem>>, vector<128x512xbf16>
    %cst_53 = arith.constant dense<0.000000e+00> : vector<16x512xf32>
    %143 = tpu.matmul %79, %142, %cst_53 {dimension_numbers = #tpu.dot_dimension_numbers<[1], [0], [0], [1], [0, 0, 1, 1], [], []>} : vector<16x128xbf16>, vector<128x512xbf16>, vector<16x512xf32> -> vector<16x512xf32>
    %c0_54 = arith.constant 0 : index
    %c0_55 = arith.constant 0 : index
    %144 = vector.load %arg8[%c0_54, %c0_55] : memref<128x512xbf16, #tpu.memory_space<vmem>>, vector<128x512xbf16>
    %cst_56 = arith.constant dense<0.000000e+00> : vector<16x512xf32>
    %145 = tpu.matmul %111, %144, %cst_56 {dimension_numbers = #tpu.dot_dimension_numbers<[1], [0], [0], [1], [0, 0, 1, 1], [], []>} : vector<16x128xbf16>, vector<128x512xbf16>, vector<16x512xf32> -> vector<16x512xf32>
    %146 = arith.addf %143, %145 : vector<16x512xf32>
    %147 = arith.addf %146, %9 : vector<16x512xf32>
    %148 = vector.extract_strided_slice %147 {offsets = [0, 0], sizes = [16, 128], strides = [1, 1]} : vector<16x512xf32> to vector<16x128xf32>
    %149 = arith.negf %148 : vector<16x128xf32>
    %150 = math.exp %149 : vector<16x128xf32>
    %cst_57 = arith.constant 1.000000e+00 : f32
    %151 = vector.broadcast %cst_57 : f32 to vector<16x128xf32>
    %152 = arith.addf %151, %150 : vector<16x128xf32>
    %153 = arith.divf %151, %152 : vector<16x128xf32>
    %154 = vector.extract_strided_slice %147 {offsets = [0, 128], sizes = [16, 128], strides = [1, 1]} : vector<16x512xf32> to vector<16x128xf32>
    %155 = arith.negf %154 : vector<16x128xf32>
    %156 = math.exp %155 : vector<16x128xf32>
    %cst_58 = arith.constant 1.000000e+00 : f32
    %157 = vector.broadcast %cst_58 : f32 to vector<16x128xf32>
    %158 = arith.addf %157, %156 : vector<16x128xf32>
    %159 = arith.divf %157, %158 : vector<16x128xf32>
    %160 = vector.extract_strided_slice %147 {offsets = [0, 256], sizes = [16, 128], strides = [1, 1]} : vector<16x512xf32> to vector<16x128xf32>
    %161 = math.tanh %160 : vector<16x128xf32>
    %162 = vector.extract_strided_slice %147 {offsets = [0, 384], sizes = [16, 128], strides = [1, 1]} : vector<16x512xf32> to vector<16x128xf32>
    %163 = arith.negf %162 : vector<16x128xf32>
    %164 = math.exp %163 : vector<16x128xf32>
    %cst_59 = arith.constant 1.000000e+00 : f32
    %165 = vector.broadcast %cst_59 : f32 to vector<16x128xf32>
    %166 = arith.addf %165, %164 : vector<16x128xf32>
    %167 = arith.divf %165, %166 : vector<16x128xf32>
    %168 = arith.mulf %159, %108 : vector<16x128xf32>
    %169 = arith.mulf %153, %161 : vector<16x128xf32>
    %170 = arith.addf %168, %169 : vector<16x128xf32>
    %171 = math.tanh %170 : vector<16x128xf32>
    %172 = arith.mulf %167, %171 : vector<16x128xf32>
    %173 = arith.truncf %172 : vector<16x128xf32> to vector<16x128xbf16>
    %c48 = arith.constant 48 : index
    %c0_60 = arith.constant 0 : index
    %174 = vector.load %arg13[%c48, %c0_60] : memref<128x512xf32, #tpu.memory_space<vmem>>, vector<16x512xf32>
    %c0_61 = arith.constant 0 : index
    %c0_62 = arith.constant 0 : index
    %175 = vector.load %arg5[%c0_61, %c0_62] : memref<128x512xbf16, #tpu.memory_space<vmem>>, vector<128x512xbf16>
    %cst_63 = arith.constant dense<0.000000e+00> : vector<16x512xf32>
    %176 = tpu.matmul %141, %175, %cst_63 {dimension_numbers = #tpu.dot_dimension_numbers<[1], [0], [0], [1], [0, 0, 1, 1], [], []>} : vector<16x128xbf16>, vector<128x512xbf16>, vector<16x512xf32> -> vector<16x512xf32>
    %177 = arith.addf %174, %176 : vector<16x512xf32>
    %178 = vector.extract_strided_slice %177 {offsets = [0, 0], sizes = [16, 128], strides = [1, 1]} : vector<16x512xf32> to vector<16x128xf32>
    %179 = arith.negf %178 : vector<16x128xf32>
    %180 = math.exp %179 : vector<16x128xf32>
    %cst_64 = arith.constant 1.000000e+00 : f32
    %181 = vector.broadcast %cst_64 : f32 to vector<16x128xf32>
    %182 = arith.addf %181, %180 : vector<16x128xf32>
    %183 = arith.divf %181, %182 : vector<16x128xf32>
    %184 = vector.extract_strided_slice %177 {offsets = [0, 128], sizes = [16, 128], strides = [1, 1]} : vector<16x512xf32> to vector<16x128xf32>
    %185 = arith.negf %184 : vector<16x128xf32>
    %186 = math.exp %185 : vector<16x128xf32>
    %cst_65 = arith.constant 1.000000e+00 : f32
    %187 = vector.broadcast %cst_65 : f32 to vector<16x128xf32>
    %188 = arith.addf %187, %186 : vector<16x128xf32>
    %189 = arith.divf %187, %188 : vector<16x128xf32>
    %190 = vector.extract_strided_slice %177 {offsets = [0, 256], sizes = [16, 128], strides = [1, 1]} : vector<16x512xf32> to vector<16x128xf32>
    %191 = math.tanh %190 : vector<16x128xf32>
    %192 = vector.extract_strided_slice %177 {offsets = [0, 384], sizes = [16, 128], strides = [1, 1]} : vector<16x512xf32> to vector<16x128xf32>
    %193 = arith.negf %192 : vector<16x128xf32>
    %194 = math.exp %193 : vector<16x128xf32>
    %cst_66 = arith.constant 1.000000e+00 : f32
    %195 = vector.broadcast %cst_66 : f32 to vector<16x128xf32>
    %196 = arith.addf %195, %194 : vector<16x128xf32>
    %197 = arith.divf %195, %196 : vector<16x128xf32>
    %198 = arith.mulf %189, %138 : vector<16x128xf32>
    %199 = arith.mulf %183, %191 : vector<16x128xf32>
    %200 = arith.addf %198, %199 : vector<16x128xf32>
    %201 = math.tanh %200 : vector<16x128xf32>
    %202 = arith.mulf %197, %201 : vector<16x128xf32>
    %203 = arith.truncf %202 : vector<16x128xf32> to vector<16x128xbf16>
    %c0_67 = arith.constant 0 : index
    %c0_68 = arith.constant 0 : index
    %204 = vector.load %arg7[%c0_67, %c0_68] : memref<128x512xbf16, #tpu.memory_space<vmem>>, vector<128x512xbf16>
    %cst_69 = arith.constant dense<0.000000e+00> : vector<16x512xf32>
    %205 = tpu.matmul %141, %204, %cst_69 {dimension_numbers = #tpu.dot_dimension_numbers<[1], [0], [0], [1], [0, 0, 1, 1], [], []>} : vector<16x128xbf16>, vector<128x512xbf16>, vector<16x512xf32> -> vector<16x512xf32>
    %c0_70 = arith.constant 0 : index
    %c0_71 = arith.constant 0 : index
    %206 = vector.load %arg8[%c0_70, %c0_71] : memref<128x512xbf16, #tpu.memory_space<vmem>>, vector<128x512xbf16>
    %cst_72 = arith.constant dense<0.000000e+00> : vector<16x512xf32>
    %207 = tpu.matmul %173, %206, %cst_72 {dimension_numbers = #tpu.dot_dimension_numbers<[1], [0], [0], [1], [0, 0, 1, 1], [], []>} : vector<16x128xbf16>, vector<128x512xbf16>, vector<16x512xf32> -> vector<16x512xf32>
    %208 = arith.addf %205, %207 : vector<16x512xf32>
    %209 = arith.addf %208, %9 : vector<16x512xf32>
    %210 = vector.extract_strided_slice %209 {offsets = [0, 0], sizes = [16, 128], strides = [1, 1]} : vector<16x512xf32> to vector<16x128xf32>
    %211 = arith.negf %210 : vector<16x128xf32>
    %212 = math.exp %211 : vector<16x128xf32>
    %cst_73 = arith.constant 1.000000e+00 : f32
    %213 = vector.broadcast %cst_73 : f32 to vector<16x128xf32>
    %214 = arith.addf %213, %212 : vector<16x128xf32>
    %215 = arith.divf %213, %214 : vector<16x128xf32>
    %216 = vector.extract_strided_slice %209 {offsets = [0, 128], sizes = [16, 128], strides = [1, 1]} : vector<16x512xf32> to vector<16x128xf32>
    %217 = arith.negf %216 : vector<16x128xf32>
    %218 = math.exp %217 : vector<16x128xf32>
    %cst_74 = arith.constant 1.000000e+00 : f32
    %219 = vector.broadcast %cst_74 : f32 to vector<16x128xf32>
    %220 = arith.addf %219, %218 : vector<16x128xf32>
    %221 = arith.divf %219, %220 : vector<16x128xf32>
    %222 = vector.extract_strided_slice %209 {offsets = [0, 256], sizes = [16, 128], strides = [1, 1]} : vector<16x512xf32> to vector<16x128xf32>
    %223 = math.tanh %222 : vector<16x128xf32>
    %224 = vector.extract_strided_slice %209 {offsets = [0, 384], sizes = [16, 128], strides = [1, 1]} : vector<16x512xf32> to vector<16x128xf32>
    %225 = arith.negf %224 : vector<16x128xf32>
    %226 = math.exp %225 : vector<16x128xf32>
    %cst_75 = arith.constant 1.000000e+00 : f32
    %227 = vector.broadcast %cst_75 : f32 to vector<16x128xf32>
    %228 = arith.addf %227, %226 : vector<16x128xf32>
    %229 = arith.divf %227, %228 : vector<16x128xf32>
    %230 = arith.mulf %221, %170 : vector<16x128xf32>
    %231 = arith.mulf %215, %223 : vector<16x128xf32>
    %232 = arith.addf %230, %231 : vector<16x128xf32>
    %233 = math.tanh %232 : vector<16x128xf32>
    %234 = arith.mulf %229, %233 : vector<16x128xf32>
    %235 = arith.truncf %234 : vector<16x128xf32> to vector<16x128xbf16>
    %c64 = arith.constant 64 : index
    %c0_76 = arith.constant 0 : index
    %236 = vector.load %arg13[%c64, %c0_76] : memref<128x512xf32, #tpu.memory_space<vmem>>, vector<16x512xf32>
    %c0_77 = arith.constant 0 : index
    %c0_78 = arith.constant 0 : index
    %237 = vector.load %arg5[%c0_77, %c0_78] : memref<128x512xbf16, #tpu.memory_space<vmem>>, vector<128x512xbf16>
    %cst_79 = arith.constant dense<0.000000e+00> : vector<16x512xf32>
    %238 = tpu.matmul %203, %237, %cst_79 {dimension_numbers = #tpu.dot_dimension_numbers<[1], [0], [0], [1], [0, 0, 1, 1], [], []>} : vector<16x128xbf16>, vector<128x512xbf16>, vector<16x512xf32> -> vector<16x512xf32>
    %239 = arith.addf %236, %238 : vector<16x512xf32>
    %240 = vector.extract_strided_slice %239 {offsets = [0, 0], sizes = [16, 128], strides = [1, 1]} : vector<16x512xf32> to vector<16x128xf32>
    %241 = arith.negf %240 : vector<16x128xf32>
    %242 = math.exp %241 : vector<16x128xf32>
    %cst_80 = arith.constant 1.000000e+00 : f32
    %243 = vector.broadcast %cst_80 : f32 to vector<16x128xf32>
    %244 = arith.addf %243, %242 : vector<16x128xf32>
    %245 = arith.divf %243, %244 : vector<16x128xf32>
    %246 = vector.extract_strided_slice %239 {offsets = [0, 128], sizes = [16, 128], strides = [1, 1]} : vector<16x512xf32> to vector<16x128xf32>
    %247 = arith.negf %246 : vector<16x128xf32>
    %248 = math.exp %247 : vector<16x128xf32>
    %cst_81 = arith.constant 1.000000e+00 : f32
    %249 = vector.broadcast %cst_81 : f32 to vector<16x128xf32>
    %250 = arith.addf %249, %248 : vector<16x128xf32>
    %251 = arith.divf %249, %250 : vector<16x128xf32>
    %252 = vector.extract_strided_slice %239 {offsets = [0, 256], sizes = [16, 128], strides = [1, 1]} : vector<16x512xf32> to vector<16x128xf32>
    %253 = math.tanh %252 : vector<16x128xf32>
    %254 = vector.extract_strided_slice %239 {offsets = [0, 384], sizes = [16, 128], strides = [1, 1]} : vector<16x512xf32> to vector<16x128xf32>
    %255 = arith.negf %254 : vector<16x128xf32>
    %256 = math.exp %255 : vector<16x128xf32>
    %cst_82 = arith.constant 1.000000e+00 : f32
    %257 = vector.broadcast %cst_82 : f32 to vector<16x128xf32>
    %258 = arith.addf %257, %256 : vector<16x128xf32>
    %259 = arith.divf %257, %258 : vector<16x128xf32>
    %260 = arith.mulf %251, %200 : vector<16x128xf32>
    %261 = arith.mulf %245, %253 : vector<16x128xf32>
    %262 = arith.addf %260, %261 : vector<16x128xf32>
    %263 = math.tanh %262 : vector<16x128xf32>
    %264 = arith.mulf %259, %263 : vector<16x128xf32>
    %265 = arith.truncf %264 : vector<16x128xf32> to vector<16x128xbf16>
    %c0_83 = arith.constant 0 : index
    %c0_84 = arith.constant 0 : index
    %266 = vector.load %arg7[%c0_83, %c0_84] : memref<128x512xbf16, #tpu.memory_space<vmem>>, vector<128x512xbf16>
    %cst_85 = arith.constant dense<0.000000e+00> : vector<16x512xf32>
    %267 = tpu.matmul %203, %266, %cst_85 {dimension_numbers = #tpu.dot_dimension_numbers<[1], [0], [0], [1], [0, 0, 1, 1], [], []>} : vector<16x128xbf16>, vector<128x512xbf16>, vector<16x512xf32> -> vector<16x512xf32>
    %c0_86 = arith.constant 0 : index
    %c0_87 = arith.constant 0 : index
    %268 = vector.load %arg8[%c0_86, %c0_87] : memref<128x512xbf16, #tpu.memory_space<vmem>>, vector<128x512xbf16>
    %cst_88 = arith.constant dense<0.000000e+00> : vector<16x512xf32>
    %269 = tpu.matmul %235, %268, %cst_88 {dimension_numbers = #tpu.dot_dimension_numbers<[1], [0], [0], [1], [0, 0, 1, 1], [], []>} : vector<16x128xbf16>, vector<128x512xbf16>, vector<16x512xf32> -> vector<16x512xf32>
    %270 = arith.addf %267, %269 : vector<16x512xf32>
    %271 = arith.addf %270, %9 : vector<16x512xf32>
    %272 = vector.extract_strided_slice %271 {offsets = [0, 0], sizes = [16, 128], strides = [1, 1]} : vector<16x512xf32> to vector<16x128xf32>
    %273 = arith.negf %272 : vector<16x128xf32>
    %274 = math.exp %273 : vector<16x128xf32>
    %cst_89 = arith.constant 1.000000e+00 : f32
    %275 = vector.broadcast %cst_89 : f32 to vector<16x128xf32>
    %276 = arith.addf %275, %274 : vector<16x128xf32>
    %277 = arith.divf %275, %276 : vector<16x128xf32>
    %278 = vector.extract_strided_slice %271 {offsets = [0, 128], sizes = [16, 128], strides = [1, 1]} : vector<16x512xf32> to vector<16x128xf32>
    %279 = arith.negf %278 : vector<16x128xf32>
    %280 = math.exp %279 : vector<16x128xf32>
    %cst_90 = arith.constant 1.000000e+00 : f32
    %281 = vector.broadcast %cst_90 : f32 to vector<16x128xf32>
    %282 = arith.addf %281, %280 : vector<16x128xf32>
    %283 = arith.divf %281, %282 : vector<16x128xf32>
    %284 = vector.extract_strided_slice %271 {offsets = [0, 256], sizes = [16, 128], strides = [1, 1]} : vector<16x512xf32> to vector<16x128xf32>
    %285 = math.tanh %284 : vector<16x128xf32>
    %286 = vector.extract_strided_slice %271 {offsets = [0, 384], sizes = [16, 128], strides = [1, 1]} : vector<16x512xf32> to vector<16x128xf32>
    %287 = arith.negf %286 : vector<16x128xf32>
    %288 = math.exp %287 : vector<16x128xf32>
    %cst_91 = arith.constant 1.000000e+00 : f32
    %289 = vector.broadcast %cst_91 : f32 to vector<16x128xf32>
    %290 = arith.addf %289, %288 : vector<16x128xf32>
    %291 = arith.divf %289, %290 : vector<16x128xf32>
    %292 = arith.mulf %283, %232 : vector<16x128xf32>
    %293 = arith.mulf %277, %285 : vector<16x128xf32>
    %294 = arith.addf %292, %293 : vector<16x128xf32>
    %295 = math.tanh %294 : vector<16x128xf32>
    %296 = arith.mulf %291, %295 : vector<16x128xf32>
    %297 = arith.truncf %296 : vector<16x128xf32> to vector<16x128xbf16>
    %c80 = arith.constant 80 : index
    %c0_92 = arith.constant 0 : index
    %298 = vector.load %arg13[%c80, %c0_92] : memref<128x512xf32, #tpu.memory_space<vmem>>, vector<16x512xf32>
    %c0_93 = arith.constant 0 : index
    %c0_94 = arith.constant 0 : index
    %299 = vector.load %arg5[%c0_93, %c0_94] : memref<128x512xbf16, #tpu.memory_space<vmem>>, vector<128x512xbf16>
    %cst_95 = arith.constant dense<0.000000e+00> : vector<16x512xf32>
    %300 = tpu.matmul %265, %299, %cst_95 {dimension_numbers = #tpu.dot_dimension_numbers<[1], [0], [0], [1], [0, 0, 1, 1], [], []>} : vector<16x128xbf16>, vector<128x512xbf16>, vector<16x512xf32> -> vector<16x512xf32>
    %301 = arith.addf %298, %300 : vector<16x512xf32>
    %302 = vector.extract_strided_slice %301 {offsets = [0, 0], sizes = [16, 128], strides = [1, 1]} : vector<16x512xf32> to vector<16x128xf32>
    %303 = arith.negf %302 : vector<16x128xf32>
    %304 = math.exp %303 : vector<16x128xf32>
    %cst_96 = arith.constant 1.000000e+00 : f32
    %305 = vector.broadcast %cst_96 : f32 to vector<16x128xf32>
    %306 = arith.addf %305, %304 : vector<16x128xf32>
    %307 = arith.divf %305, %306 : vector<16x128xf32>
    %308 = vector.extract_strided_slice %301 {offsets = [0, 128], sizes = [16, 128], strides = [1, 1]} : vector<16x512xf32> to vector<16x128xf32>
    %309 = arith.negf %308 : vector<16x128xf32>
    %310 = math.exp %309 : vector<16x128xf32>
    %cst_97 = arith.constant 1.000000e+00 : f32
    %311 = vector.broadcast %cst_97 : f32 to vector<16x128xf32>
    %312 = arith.addf %311, %310 : vector<16x128xf32>
    %313 = arith.divf %311, %312 : vector<16x128xf32>
    %314 = vector.extract_strided_slice %301 {offsets = [0, 256], sizes = [16, 128], strides = [1, 1]} : vector<16x512xf32> to vector<16x128xf32>
    %315 = math.tanh %314 : vector<16x128xf32>
    %316 = vector.extract_strided_slice %301 {offsets = [0, 384], sizes = [16, 128], strides = [1, 1]} : vector<16x512xf32> to vector<16x128xf32>
    %317 = arith.negf %316 : vector<16x128xf32>
    %318 = math.exp %317 : vector<16x128xf32>
    %cst_98 = arith.constant 1.000000e+00 : f32
    %319 = vector.broadcast %cst_98 : f32 to vector<16x128xf32>
    %320 = arith.addf %319, %318 : vector<16x128xf32>
    %321 = arith.divf %319, %320 : vector<16x128xf32>
    %322 = arith.mulf %313, %262 : vector<16x128xf32>
    %323 = arith.mulf %307, %315 : vector<16x128xf32>
    %324 = arith.addf %322, %323 : vector<16x128xf32>
    %325 = math.tanh %324 : vector<16x128xf32>
    %326 = arith.mulf %321, %325 : vector<16x128xf32>
    %327 = arith.truncf %326 : vector<16x128xf32> to vector<16x128xbf16>
    %c0_99 = arith.constant 0 : index
    %c0_100 = arith.constant 0 : index
    %328 = vector.load %arg7[%c0_99, %c0_100] : memref<128x512xbf16, #tpu.memory_space<vmem>>, vector<128x512xbf16>
    %cst_101 = arith.constant dense<0.000000e+00> : vector<16x512xf32>
    %329 = tpu.matmul %265, %328, %cst_101 {dimension_numbers = #tpu.dot_dimension_numbers<[1], [0], [0], [1], [0, 0, 1, 1], [], []>} : vector<16x128xbf16>, vector<128x512xbf16>, vector<16x512xf32> -> vector<16x512xf32>
    %c0_102 = arith.constant 0 : index
    %c0_103 = arith.constant 0 : index
    %330 = vector.load %arg8[%c0_102, %c0_103] : memref<128x512xbf16, #tpu.memory_space<vmem>>, vector<128x512xbf16>
    %cst_104 = arith.constant dense<0.000000e+00> : vector<16x512xf32>
    %331 = tpu.matmul %297, %330, %cst_104 {dimension_numbers = #tpu.dot_dimension_numbers<[1], [0], [0], [1], [0, 0, 1, 1], [], []>} : vector<16x128xbf16>, vector<128x512xbf16>, vector<16x512xf32> -> vector<16x512xf32>
    %332 = arith.addf %329, %331 : vector<16x512xf32>
    %333 = arith.addf %332, %9 : vector<16x512xf32>
    %334 = vector.extract_strided_slice %333 {offsets = [0, 0], sizes = [16, 128], strides = [1, 1]} : vector<16x512xf32> to vector<16x128xf32>
    %335 = arith.negf %334 : vector<16x128xf32>
    %336 = math.exp %335 : vector<16x128xf32>
    %cst_105 = arith.constant 1.000000e+00 : f32
    %337 = vector.broadcast %cst_105 : f32 to vector<16x128xf32>
    %338 = arith.addf %337, %336 : vector<16x128xf32>
    %339 = arith.divf %337, %338 : vector<16x128xf32>
    %340 = vector.extract_strided_slice %333 {offsets = [0, 128], sizes = [16, 128], strides = [1, 1]} : vector<16x512xf32> to vector<16x128xf32>
    %341 = arith.negf %340 : vector<16x128xf32>
    %342 = math.exp %341 : vector<16x128xf32>
    %cst_106 = arith.constant 1.000000e+00 : f32
    %343 = vector.broadcast %cst_106 : f32 to vector<16x128xf32>
    %344 = arith.addf %343, %342 : vector<16x128xf32>
    %345 = arith.divf %343, %344 : vector<16x128xf32>
    %346 = vector.extract_strided_slice %333 {offsets = [0, 256], sizes = [16, 128], strides = [1, 1]} : vector<16x512xf32> to vector<16x128xf32>
    %347 = math.tanh %346 : vector<16x128xf32>
    %348 = vector.extract_strided_slice %333 {offsets = [0, 384], sizes = [16, 128], strides = [1, 1]} : vector<16x512xf32> to vector<16x128xf32>
    %349 = arith.negf %348 : vector<16x128xf32>
    %350 = math.exp %349 : vector<16x128xf32>
    %cst_107 = arith.constant 1.000000e+00 : f32
    %351 = vector.broadcast %cst_107 : f32 to vector<16x128xf32>
    %352 = arith.addf %351, %350 : vector<16x128xf32>
    %353 = arith.divf %351, %352 : vector<16x128xf32>
    %354 = arith.mulf %345, %294 : vector<16x128xf32>
    %355 = arith.mulf %339, %347 : vector<16x128xf32>
    %356 = arith.addf %354, %355 : vector<16x128xf32>
    %357 = math.tanh %356 : vector<16x128xf32>
    %358 = arith.mulf %353, %357 : vector<16x128xf32>
    %359 = arith.truncf %358 : vector<16x128xf32> to vector<16x128xbf16>
    %c96 = arith.constant 96 : index
    %c0_108 = arith.constant 0 : index
    %360 = vector.load %arg13[%c96, %c0_108] : memref<128x512xf32, #tpu.memory_space<vmem>>, vector<16x512xf32>
    %c0_109 = arith.constant 0 : index
    %c0_110 = arith.constant 0 : index
    %361 = vector.load %arg5[%c0_109, %c0_110] : memref<128x512xbf16, #tpu.memory_space<vmem>>, vector<128x512xbf16>
    %cst_111 = arith.constant dense<0.000000e+00> : vector<16x512xf32>
    %362 = tpu.matmul %327, %361, %cst_111 {dimension_numbers = #tpu.dot_dimension_numbers<[1], [0], [0], [1], [0, 0, 1, 1], [], []>} : vector<16x128xbf16>, vector<128x512xbf16>, vector<16x512xf32> -> vector<16x512xf32>
    %363 = arith.addf %360, %362 : vector<16x512xf32>
    %364 = vector.extract_strided_slice %363 {offsets = [0, 0], sizes = [16, 128], strides = [1, 1]} : vector<16x512xf32> to vector<16x128xf32>
    %365 = arith.negf %364 : vector<16x128xf32>
    %366 = math.exp %365 : vector<16x128xf32>
    %cst_112 = arith.constant 1.000000e+00 : f32
    %367 = vector.broadcast %cst_112 : f32 to vector<16x128xf32>
    %368 = arith.addf %367, %366 : vector<16x128xf32>
    %369 = arith.divf %367, %368 : vector<16x128xf32>
    %370 = vector.extract_strided_slice %363 {offsets = [0, 128], sizes = [16, 128], strides = [1, 1]} : vector<16x512xf32> to vector<16x128xf32>
    %371 = arith.negf %370 : vector<16x128xf32>
    %372 = math.exp %371 : vector<16x128xf32>
    %cst_113 = arith.constant 1.000000e+00 : f32
    %373 = vector.broadcast %cst_113 : f32 to vector<16x128xf32>
    %374 = arith.addf %373, %372 : vector<16x128xf32>
    %375 = arith.divf %373, %374 : vector<16x128xf32>
    %376 = vector.extract_strided_slice %363 {offsets = [0, 256], sizes = [16, 128], strides = [1, 1]} : vector<16x512xf32> to vector<16x128xf32>
    %377 = math.tanh %376 : vector<16x128xf32>
    %378 = vector.extract_strided_slice %363 {offsets = [0, 384], sizes = [16, 128], strides = [1, 1]} : vector<16x512xf32> to vector<16x128xf32>
    %379 = arith.negf %378 : vector<16x128xf32>
    %380 = math.exp %379 : vector<16x128xf32>
    %cst_114 = arith.constant 1.000000e+00 : f32
    %381 = vector.broadcast %cst_114 : f32 to vector<16x128xf32>
    %382 = arith.addf %381, %380 : vector<16x128xf32>
    %383 = arith.divf %381, %382 : vector<16x128xf32>
    %384 = arith.mulf %375, %324 : vector<16x128xf32>
    %385 = arith.mulf %369, %377 : vector<16x128xf32>
    %386 = arith.addf %384, %385 : vector<16x128xf32>
    %387 = math.tanh %386 : vector<16x128xf32>
    %388 = arith.mulf %383, %387 : vector<16x128xf32>
    %389 = arith.truncf %388 : vector<16x128xf32> to vector<16x128xbf16>
    %c0_115 = arith.constant 0 : index
    %c0_116 = arith.constant 0 : index
    %390 = vector.load %arg7[%c0_115, %c0_116] : memref<128x512xbf16, #tpu.memory_space<vmem>>, vector<128x512xbf16>
    %cst_117 = arith.constant dense<0.000000e+00> : vector<16x512xf32>
    %391 = tpu.matmul %327, %390, %cst_117 {dimension_numbers = #tpu.dot_dimension_numbers<[1], [0], [0], [1], [0, 0, 1, 1], [], []>} : vector<16x128xbf16>, vector<128x512xbf16>, vector<16x512xf32> -> vector<16x512xf32>
    %c0_118 = arith.constant 0 : index
    %c0_119 = arith.constant 0 : index
    %392 = vector.load %arg8[%c0_118, %c0_119] : memref<128x512xbf16, #tpu.memory_space<vmem>>, vector<128x512xbf16>
    %cst_120 = arith.constant dense<0.000000e+00> : vector<16x512xf32>
    %393 = tpu.matmul %359, %392, %cst_120 {dimension_numbers = #tpu.dot_dimension_numbers<[1], [0], [0], [1], [0, 0, 1, 1], [], []>} : vector<16x128xbf16>, vector<128x512xbf16>, vector<16x512xf32> -> vector<16x512xf32>
    %394 = arith.addf %391, %393 : vector<16x512xf32>
    %395 = arith.addf %394, %9 : vector<16x512xf32>
    %396 = vector.extract_strided_slice %395 {offsets = [0, 0], sizes = [16, 128], strides = [1, 1]} : vector<16x512xf32> to vector<16x128xf32>
    %397 = arith.negf %396 : vector<16x128xf32>
    %398 = math.exp %397 : vector<16x128xf32>
    %cst_121 = arith.constant 1.000000e+00 : f32
    %399 = vector.broadcast %cst_121 : f32 to vector<16x128xf32>
    %400 = arith.addf %399, %398 : vector<16x128xf32>
    %401 = arith.divf %399, %400 : vector<16x128xf32>
    %402 = vector.extract_strided_slice %395 {offsets = [0, 128], sizes = [16, 128], strides = [1, 1]} : vector<16x512xf32> to vector<16x128xf32>
    %403 = arith.negf %402 : vector<16x128xf32>
    %404 = math.exp %403 : vector<16x128xf32>
    %cst_122 = arith.constant 1.000000e+00 : f32
    %405 = vector.broadcast %cst_122 : f32 to vector<16x128xf32>
    %406 = arith.addf %405, %404 : vector<16x128xf32>
    %407 = arith.divf %405, %406 : vector<16x128xf32>
    %408 = vector.extract_strided_slice %395 {offsets = [0, 256], sizes = [16, 128], strides = [1, 1]} : vector<16x512xf32> to vector<16x128xf32>
    %409 = math.tanh %408 : vector<16x128xf32>
    %410 = vector.extract_strided_slice %395 {offsets = [0, 384], sizes = [16, 128], strides = [1, 1]} : vector<16x512xf32> to vector<16x128xf32>
    %411 = arith.negf %410 : vector<16x128xf32>
    %412 = math.exp %411 : vector<16x128xf32>
    %cst_123 = arith.constant 1.000000e+00 : f32
    %413 = vector.broadcast %cst_123 : f32 to vector<16x128xf32>
    %414 = arith.addf %413, %412 : vector<16x128xf32>
    %415 = arith.divf %413, %414 : vector<16x128xf32>
    %416 = arith.mulf %407, %356 : vector<16x128xf32>
    %417 = arith.mulf %401, %409 : vector<16x128xf32>
    %418 = arith.addf %416, %417 : vector<16x128xf32>
    %419 = math.tanh %418 : vector<16x128xf32>
    %420 = arith.mulf %415, %419 : vector<16x128xf32>
    %421 = arith.truncf %420 : vector<16x128xf32> to vector<16x128xbf16>
    %c112 = arith.constant 112 : index
    %c0_124 = arith.constant 0 : index
    %422 = vector.load %arg13[%c112, %c0_124] : memref<128x512xf32, #tpu.memory_space<vmem>>, vector<16x512xf32>
    %c0_125 = arith.constant 0 : index
    %c0_126 = arith.constant 0 : index
    %423 = vector.load %arg5[%c0_125, %c0_126] : memref<128x512xbf16, #tpu.memory_space<vmem>>, vector<128x512xbf16>
    %cst_127 = arith.constant dense<0.000000e+00> : vector<16x512xf32>
    %424 = tpu.matmul %389, %423, %cst_127 {dimension_numbers = #tpu.dot_dimension_numbers<[1], [0], [0], [1], [0, 0, 1, 1], [], []>} : vector<16x128xbf16>, vector<128x512xbf16>, vector<16x512xf32> -> vector<16x512xf32>
    %425 = arith.addf %422, %424 : vector<16x512xf32>
    %426 = vector.extract_strided_slice %425 {offsets = [0, 0], sizes = [16, 128], strides = [1, 1]} : vector<16x512xf32> to vector<16x128xf32>
    %427 = arith.negf %426 : vector<16x128xf32>
    %428 = math.exp %427 : vector<16x128xf32>
    %cst_128 = arith.constant 1.000000e+00 : f32
    %429 = vector.broadcast %cst_128 : f32 to vector<16x128xf32>
    %430 = arith.addf %429, %428 : vector<16x128xf32>
    %431 = arith.divf %429, %430 : vector<16x128xf32>
    %432 = vector.extract_strided_slice %425 {offsets = [0, 128], sizes = [16, 128], strides = [1, 1]} : vector<16x512xf32> to vector<16x128xf32>
    %433 = arith.negf %432 : vector<16x128xf32>
    %434 = math.exp %433 : vector<16x128xf32>
    %cst_129 = arith.constant 1.000000e+00 : f32
    %435 = vector.broadcast %cst_129 : f32 to vector<16x128xf32>
    %436 = arith.addf %435, %434 : vector<16x128xf32>
    %437 = arith.divf %435, %436 : vector<16x128xf32>
    %438 = vector.extract_strided_slice %425 {offsets = [0, 256], sizes = [16, 128], strides = [1, 1]} : vector<16x512xf32> to vector<16x128xf32>
    %439 = math.tanh %438 : vector<16x128xf32>
    %440 = vector.extract_strided_slice %425 {offsets = [0, 384], sizes = [16, 128], strides = [1, 1]} : vector<16x512xf32> to vector<16x128xf32>
    %441 = arith.negf %440 : vector<16x128xf32>
    %442 = math.exp %441 : vector<16x128xf32>
    %cst_130 = arith.constant 1.000000e+00 : f32
    %443 = vector.broadcast %cst_130 : f32 to vector<16x128xf32>
    %444 = arith.addf %443, %442 : vector<16x128xf32>
    %445 = arith.divf %443, %444 : vector<16x128xf32>
    %446 = arith.mulf %437, %386 : vector<16x128xf32>
    %447 = arith.mulf %431, %439 : vector<16x128xf32>
    %448 = arith.addf %446, %447 : vector<16x128xf32>
    %449 = math.tanh %448 : vector<16x128xf32>
    %450 = arith.mulf %445, %449 : vector<16x128xf32>
    %451 = arith.truncf %450 : vector<16x128xf32> to vector<16x128xbf16>
    %c0_131 = arith.constant 0 : index
    %c0_132 = arith.constant 0 : index
    %452 = vector.load %arg7[%c0_131, %c0_132] : memref<128x512xbf16, #tpu.memory_space<vmem>>, vector<128x512xbf16>
    %cst_133 = arith.constant dense<0.000000e+00> : vector<16x512xf32>
    %453 = tpu.matmul %389, %452, %cst_133 {dimension_numbers = #tpu.dot_dimension_numbers<[1], [0], [0], [1], [0, 0, 1, 1], [], []>} : vector<16x128xbf16>, vector<128x512xbf16>, vector<16x512xf32> -> vector<16x512xf32>
    %c0_134 = arith.constant 0 : index
    %c0_135 = arith.constant 0 : index
    %454 = vector.load %arg8[%c0_134, %c0_135] : memref<128x512xbf16, #tpu.memory_space<vmem>>, vector<128x512xbf16>
    %cst_136 = arith.constant dense<0.000000e+00> : vector<16x512xf32>
    %455 = tpu.matmul %421, %454, %cst_136 {dimension_numbers = #tpu.dot_dimension_numbers<[1], [0], [0], [1], [0, 0, 1, 1], [], []>} : vector<16x128xbf16>, vector<128x512xbf16>, vector<16x512xf32> -> vector<16x512xf32>
    %456 = arith.addf %453, %455 : vector<16x512xf32>
    %457 = arith.addf %456, %9 : vector<16x512xf32>
    %458 = vector.extract_strided_slice %457 {offsets = [0, 0], sizes = [16, 128], strides = [1, 1]} : vector<16x512xf32> to vector<16x128xf32>
    %459 = arith.negf %458 : vector<16x128xf32>
    %460 = math.exp %459 : vector<16x128xf32>
    %cst_137 = arith.constant 1.000000e+00 : f32
    %461 = vector.broadcast %cst_137 : f32 to vector<16x128xf32>
    %462 = arith.addf %461, %460 : vector<16x128xf32>
    %463 = arith.divf %461, %462 : vector<16x128xf32>
    %464 = vector.extract_strided_slice %457 {offsets = [0, 128], sizes = [16, 128], strides = [1, 1]} : vector<16x512xf32> to vector<16x128xf32>
    %465 = arith.negf %464 : vector<16x128xf32>
    %466 = math.exp %465 : vector<16x128xf32>
    %cst_138 = arith.constant 1.000000e+00 : f32
    %467 = vector.broadcast %cst_138 : f32 to vector<16x128xf32>
    %468 = arith.addf %467, %466 : vector<16x128xf32>
    %469 = arith.divf %467, %468 : vector<16x128xf32>
    %470 = vector.extract_strided_slice %457 {offsets = [0, 256], sizes = [16, 128], strides = [1, 1]} : vector<16x512xf32> to vector<16x128xf32>
    %471 = math.tanh %470 : vector<16x128xf32>
    %472 = vector.extract_strided_slice %457 {offsets = [0, 384], sizes = [16, 128], strides = [1, 1]} : vector<16x512xf32> to vector<16x128xf32>
    %473 = arith.negf %472 : vector<16x128xf32>
    %474 = math.exp %473 : vector<16x128xf32>
    %cst_139 = arith.constant 1.000000e+00 : f32
    %475 = vector.broadcast %cst_139 : f32 to vector<16x128xf32>
    %476 = arith.addf %475, %474 : vector<16x128xf32>
    %477 = arith.divf %475, %476 : vector<16x128xf32>
    %478 = arith.mulf %469, %418 : vector<16x128xf32>
    %479 = arith.mulf %463, %471 : vector<16x128xf32>
    %480 = arith.addf %478, %479 : vector<16x128xf32>
    %481 = math.tanh %480 : vector<16x128xf32>
    %482 = arith.mulf %477, %481 : vector<16x128xf32>
    %483 = arith.truncf %482 : vector<16x128xf32> to vector<16x128xbf16>
    %c0_140 = arith.constant 0 : index
    %c0_141 = arith.constant 0 : index
    %484 = vector.load %arg7[%c0_140, %c0_141] : memref<128x512xbf16, #tpu.memory_space<vmem>>, vector<128x512xbf16>
    %cst_142 = arith.constant dense<0.000000e+00> : vector<16x512xf32>
    %485 = tpu.matmul %451, %484, %cst_142 {dimension_numbers = #tpu.dot_dimension_numbers<[1], [0], [0], [1], [0, 0, 1, 1], [], []>} : vector<16x128xbf16>, vector<128x512xbf16>, vector<16x512xf32> -> vector<16x512xf32>
    %c0_143 = arith.constant 0 : index
    %c0_144 = arith.constant 0 : index
    %486 = vector.load %arg8[%c0_143, %c0_144] : memref<128x512xbf16, #tpu.memory_space<vmem>>, vector<128x512xbf16>
    %cst_145 = arith.constant dense<0.000000e+00> : vector<16x512xf32>
    %487 = tpu.matmul %483, %486, %cst_145 {dimension_numbers = #tpu.dot_dimension_numbers<[1], [0], [0], [1], [0, 0, 1, 1], [], []>} : vector<16x128xbf16>, vector<128x512xbf16>, vector<16x512xf32> -> vector<16x512xf32>
    %488 = arith.addf %485, %487 : vector<16x512xf32>
    %489 = arith.addf %488, %9 : vector<16x512xf32>
    %490 = vector.extract_strided_slice %489 {offsets = [0, 0], sizes = [16, 128], strides = [1, 1]} : vector<16x512xf32> to vector<16x128xf32>
    %491 = arith.negf %490 : vector<16x128xf32>
    %492 = math.exp %491 : vector<16x128xf32>
    %cst_146 = arith.constant 1.000000e+00 : f32
    %493 = vector.broadcast %cst_146 : f32 to vector<16x128xf32>
    %494 = arith.addf %493, %492 : vector<16x128xf32>
    %495 = arith.divf %493, %494 : vector<16x128xf32>
    %496 = vector.extract_strided_slice %489 {offsets = [0, 128], sizes = [16, 128], strides = [1, 1]} : vector<16x512xf32> to vector<16x128xf32>
    %497 = arith.negf %496 : vector<16x128xf32>
    %498 = math.exp %497 : vector<16x128xf32>
    %cst_147 = arith.constant 1.000000e+00 : f32
    %499 = vector.broadcast %cst_147 : f32 to vector<16x128xf32>
    %500 = arith.addf %499, %498 : vector<16x128xf32>
    %501 = arith.divf %499, %500 : vector<16x128xf32>
    %502 = vector.extract_strided_slice %489 {offsets = [0, 256], sizes = [16, 128], strides = [1, 1]} : vector<16x512xf32> to vector<16x128xf32>
    %503 = math.tanh %502 : vector<16x128xf32>
    %504 = vector.extract_strided_slice %489 {offsets = [0, 384], sizes = [16, 128], strides = [1, 1]} : vector<16x512xf32> to vector<16x128xf32>
    %505 = arith.negf %504 : vector<16x128xf32>
    %506 = math.exp %505 : vector<16x128xf32>
    %cst_148 = arith.constant 1.000000e+00 : f32
    %507 = vector.broadcast %cst_148 : f32 to vector<16x128xf32>
    %508 = arith.addf %507, %506 : vector<16x128xf32>
    %509 = arith.divf %507, %508 : vector<16x128xf32>
    %510 = arith.mulf %501, %480 : vector<16x128xf32>
    %511 = arith.mulf %495, %503 : vector<16x128xf32>
    %512 = arith.addf %510, %511 : vector<16x128xf32>
    %513 = math.tanh %512 : vector<16x128xf32>
    %514 = arith.mulf %509, %513 : vector<16x128xf32>
    %515 = arith.truncf %514 : vector<16x128xf32> to vector<16x128xbf16>
    %c0_149 = arith.constant 0 : index
    %c0_150 = arith.constant 0 : index
    %516 = vector.load %arg10[%c0_149, %c0_150] : memref<128x128xbf16, #tpu.memory_space<vmem>>, vector<128x128xbf16>
    %cst_151 = arith.constant dense<0.000000e+00> : vector<16x128xf32>
    %517 = tpu.matmul %515, %516, %cst_151 {dimension_numbers = #tpu.dot_dimension_numbers<[1], [0], [0], [1], [0, 0, 1, 1], [], []>} : vector<16x128xbf16>, vector<128x128xbf16>, vector<16x128xf32> -> vector<16x128xf32>
    %c0_152 = arith.constant 0 : index
    %c0_153 = arith.constant 0 : index
    %518 = vector.load %arg11[%c0_152, %c0_153] : memref<1x128xf32, #tpu.memory_space<vmem>>, vector<1x128xf32>
    %519 = vector.broadcast %518 : vector<1x128xf32> to vector<16x128xf32>
    %520 = arith.addf %517, %519 : vector<16x128xf32>
    %c0_154 = arith.constant 0 : index
    %c0_155 = arith.constant 0 : index
    %521 = vector.load %arg12[%c0_154, %c0_155] : memref<16x128xf32, #tpu.memory_space<vmem>>, vector<16x128xf32>
    tpu.vector_store %arg12[%c0_154, %c0_155], %520 {strides = array<i32>} : memref<16x128xf32, #tpu.memory_space<vmem>>, vector<16x128xf32>,
    return
  }
  func.func @transform_0(%arg0: i32) -> (i32, i32) {
    %c0_i32 = arith.constant 0 : i32
    %c0_i32_0 = arith.constant 0 : i32
    %c0_i32_1 = arith.constant 0 : i32
    return %c0_i32, %c0_i32_0 : i32, i32
  }
  func.func @transform_1(%arg0: i32) -> (i32, i32, i32) {
    %c0_i32 = arith.constant 0 : i32
    %c0_i32_0 = arith.constant 0 : i32
    %c0_i32_1 = arith.constant 0 : i32
    %c0_i32_2 = arith.constant 0 : i32
    return %c0_i32, %c0_i32_0, %c0_i32_1 : i32, i32, i32
  }
  func.func @transform_2(%arg0: i32) -> (i32, i32, i32) {
    %c0_i32 = arith.constant 0 : i32
    %c0_i32_0 = arith.constant 0 : i32
    %c0_i32_1 = arith.constant 0 : i32
    %c0_i32_2 = arith.constant 0 : i32
    return %c0_i32, %c0_i32_0, %c0_i32_1 : i32, i32, i32
  }
  func.func @transform_3(%arg0: i32) -> (i32, i32) {
    %c0_i32 = arith.constant 0 : i32
    %c0_i32_0 = arith.constant 0 : i32
    %c0_i32_1 = arith.constant 0 : i32
    return %c0_i32, %c0_i32_0 : i32, i32
  }
  func.func @transform_4(%arg0: i32) -> (i32, i32) {
    %c0_i32 = arith.constant 0 : i32
    %c0_i32_0 = arith.constant 0 : i32
    %c0_i32_1 = arith.constant 0 : i32
    return %c0_i32, %c0_i32_0 : i32, i32
  }
  func.func @transform_5(%arg0: i32) -> (i32, i32) {
    %c0_i32 = arith.constant 0 : i32
    %c0_i32_0 = arith.constant 0 : i32
    %c0_i32_1 = arith.constant 0 : i32
    return %c0_i32, %c0_i32_0 : i32, i32
  }
  func.func @transform_6(%arg0: i32) -> (i32, i32) {
    %c0_i32 = arith.constant 0 : i32
    %c0_i32_0 = arith.constant 0 : i32
    %c0_i32_1 = arith.constant 0 : i32
    return %c0_i32, %c0_i32_0 : i32, i32
  }
  func.func @transform_7(%arg0: i32) -> (i32, i32) {
    %c0_i32 = arith.constant 0 : i32
    %c0_i32_0 = arith.constant 0 : i32
    %c0_i32_1 = arith.constant 0 : i32
    return %c0_i32, %c0_i32_0 : i32, i32
  }
  func.func @transform_8(%arg0: i32) -> (i32, i32) {
    %c0_i32 = arith.constant 0 : i32
    %c0_i32_0 = arith.constant 0 : i32
    %c0_i32_1 = arith.constant 0 : i32
    return %c0_i32, %c0_i32_0 : i32, i32
  }
  func.func @transform_9(%arg0: i32) -> (i32, i32) {
    %c0_i32 = arith.constant 0 : i32
    %c0_i32_0 = arith.constant 0 : i32
    %c0_i32_1 = arith.constant 0 : i32
    return %c0_i32, %c0_i32_0 : i32, i32
  }
  func.func @transform_10(%arg0: i32) -> (i32, i32) {
    %c0_i32 = arith.constant 0 : i32
    %c0_i32_0 = arith.constant 0 : i32
    %c0_i32_1 = arith.constant 0 : i32
    return %c0_i32, %c0_i32_0 : i32, i32
  }
  func.func @transform_11(%arg0: i32) -> (i32, i32) {
    %c0_i32 = arith.constant 0 : i32
    %c0_i32_0 = arith.constant 0 : i32
    %c0_i32_1 = arith.constant 0 : i32
    return %c0_i32, %c0_i32_0 : i32, i32
  }
}

</mosaic_0001>

<bundles_post_ra>
// kernel: tpu_custom_call.1
= control target key start
LH: loop header
LB: loop body
LE: loop exit
PB: predicated region body
PF: predicated region fallthrough
CT: control target
= control target key end

     0   :  { %16 = vsyncpa [#allocation4], 0  ;;  %s7797_s0 = inlined_call_operand.vmem [shape: bf16[128,16], index: 0, kind: input, shape index: {}]   ;;  %s7798_s1 = inlined_call_operand.vmem [shape: f32[2,16,128], index: 1, kind: input, shape index: {}]   ;;  %s7799_s2 = inlined_call_operand.hbm [shape: f32[2,16,128], index: 2, kind: input, shape index: {}]   ;;  %s7800_s3 = inlined_call_operand.hbm [shape: bf16[16,512], index: 3, kind: input, shape index: {}]   ;;  %s7801_s4 = inlined_call_operand.hbm [shape: bf16[128,512], index: 4, kind: input, shape index: {}]   ;;  %s7802_s5 = inlined_call_operand.vmem [shape: f32[1,512], index: 5, kind: input, shape index: {}]   ;;  %s7803_s6 = inlined_call_operand.hbm [shape: bf16[128,512], index: 6, kind: input, shape index: {}]   ;;  %s7804_s7 = inlined_call_operand.hbm [shape: bf16[128,512], index: 7, kind: input, shape index: {}]   ;;  %s7805_s8 = inlined_call_operand.vmem [shape: f32[1,512], index: 8, kind: input, shape index: {}]   ;;  %s7806_s9 = inlined_call_operand.vmem [shape: bf16[128,128], index: 9, kind: input, shape index: {}]   ;;  %s7807_s10 = inlined_call_operand.vmem [shape: f32[1,128], index: 10, kind: input, shape index: {}]   ;;  %s7808_s11 = inlined_call_operand.hbm [shape: f32[16,128], index: 11, kind: output, shape index: {}]  }
   0x1   :  { %17 = vsyncpa [#allocation7], 0 }
   0x2   :  { %18 = vsyncpa [#allocation10], 0 }
   0x3   :  { %19 = vsyncpa [#allocation5], 0  ;;  %s5785_s17 = smov [#allocation6]   ;;  %s5645_s21 = scalar_lea.hbm %s7800_s3, 512 }
   0x4   :  { %s41_s18 = sshll.u32 %s5785_s17, 4  ;;  %p5646_p0 = scmp.ne.s32.totalorder %s7800_s3, %s5645_s21  ;;  %s42_s18 = int_to_ptr.vmem [resolvable:$true] %s41_s18 }
   0x5   :  { %p5649_p1 = scmp.lt.u32.totalorder %s5645_s21, %s7800_s3 }
   0x7   :  { %p5651_p2 = pnand %p5649_p1, %p5646_p0 }
   0x9   :  { %5654 = shalt.err (!%p5651_p2)
}
   0xa   :  { %s5655_s26 = scalar_lea.vmem %s42_s18, 512  ;;  %p5660_p4 = scmp.lt.s32.totalorder %s42_s18, %s42_s18 }
   0xb   :  { %p5656_p3 = scmp.ne.s32.totalorder %s42_s18, %s5655_s26  ;;  %p5661_p5 = scmp.lt.s32.totalorder %s5655_s26, %s5655_s26 }
   0xd   :  { %p5662_p6 = por %p5661_p5, %p5660_p4 }
   0xf   :  { %p5663_p7 = pnand %p5662_p6, %p5656_p3 }
  0x11   :  { %5666 = shalt.err (!%p5663_p7)
}
  0x12   :  { %s5786_s27 = smov 256   ;;  %s5787_s28 = smov 16  }
  0x13   :  { %47 = dma.hbm_to_vmem [thread:$0]  %s7800_s3, 512, %s42_s18, [#allocation7], %s5786_s27, %s5786_s27, %s5787_s28  }
  0x14   :  { %s5788_s12 = smov [#allocation9]   ;;  %s5789_s14 = smov [#allocation3]  }
  0x15   :  { %s67_s13 = sshll.u32 %s5788_s12, 4  ;;  %s29_s15 = sshll.u32 %s5789_s14, 4  ;;  %s68_s13 = int_to_ptr.vmem [resolvable:$true] %s67_s13  ;;  %s30_s15 = int_to_ptr.vmem [resolvable:$true] %s29_s15 }
  0x16   :  { %s5667_s19 = scalar_lea.hbm %s7803_s6, 4096 }
  0x17   :  { %p5668_p8 = scmp.ne.s32.totalorder %s7803_s6, %s5667_s19  ;;  %p5671_p9 = scmp.lt.u32.totalorder %s5667_s19, %s7803_s6 }
  0x19   :  { %p5673_p10 = pnand %p5671_p9, %p5668_p8 }
  0x1b   :  { %5676 = shalt.err (!%p5673_p10)
}
  0x1c   :  { %s5677_s3 = scalar_lea.vmem %s68_s13, 4096  ;;  %p5682_p12 = scmp.lt.s32.totalorder %s68_s13, %s68_s13 }
  0x1d   :  { %p5678_p11 = scmp.ne.s32.totalorder %s68_s13, %s5677_s3  ;;  %p5683_p13 = scmp.lt.s32.totalorder %s5677_s3, %s5677_s3 }
  0x1f   :  { %p5684_p0 = por %p5683_p13, %p5682_p12 }
  0x21   :  { %p5685_p1 = pnand %p5684_p0, %p5678_p11 }
  0x23   :  { %5688 = shalt.err (!%p5685_p1)
}
  0x24   :  { %73 = dma.hbm_to_vmem [thread:$0]  %s7803_s6, 4096, %s68_s13, [#allocation10], %s5786_s27, %s5786_s27, %s5787_s28  }
  0x25   :  { %s5689_s29 = scalar_lea.hbm %s7799_s2, 512 }
  0x26   :  { %p5690_p2 = scmp.ne.s32.totalorder %s7799_s2, %s5689_s29  ;;  %p5693_p3 = scmp.lt.u32.totalorder %s5689_s29, %s7799_s2 }
  0x28   :  { %p5695_p4 = pnand %p5693_p3, %p5690_p2 }
  0x2a   :  { %5698 = shalt.err (!%p5695_p4)
}
  0x2b   :  { %s5699_s17 = scalar_lea.vmem %s30_s15, 512  ;;  %p5704_p6 = scmp.lt.s32.totalorder %s30_s15, %s30_s15 }
  0x2c   :  { %p5700_p5 = scmp.ne.s32.totalorder %s30_s15, %s5699_s17  ;;  %p5705_p7 = scmp.lt.s32.totalorder %s5699_s17, %s5699_s17 }
  0x2e   :  { %p5706_p8 = por %p5705_p7, %p5704_p6 }
  0x30   :  { %p5707_p9 = pnand %p5706_p8, %p5700_p5 }
  0x32   :  { %5710 = shalt.err (!%p5707_p9)
}
  0x33   :  { %s5790_s6 = smov 128   ;;  %s5791_s13 = smov 8  }
  0x34   :  { %35 = dma.hbm_to_vmem [thread:$0]  %s7799_s2, 512, %s30_s15, [#allocation4], %s5790_s6, %s5790_s6, %s5791_s13  }
  0x35   :  { %s5792_s21 = smov [#allocation8]   ;;  %s5793_s23 = smov [#allocation11]  }
  0x36   :  { %s53_s22 = sshll.u32 %s5792_s21, 4  ;;  %s79_s3 = sshll.u32 %s5793_s23, 4  ;;  %s54_s22 = int_to_ptr.vmem [resolvable:$true] %s53_s22  ;;  %s80_s3 = int_to_ptr.vmem [resolvable:$true] %s79_s3 }
  0x37   :  { %s5711_s25 = scalar_lea.hbm %s7801_s4, 4096 }
  0x38   :  { %p5712_p10 = scmp.ne.s32.totalorder %s7801_s4, %s5711_s25  ;;  %p5715_p11 = scmp.lt.u32.totalorder %s5711_s25, %s7801_s4 }
  0x3a   :  { %p5717_p12 = pnand %p5715_p11, %p5712_p10 }
  0x3c   :  { %5720 = shalt.err (!%p5717_p12)
}
  0x3d   :  { %s5721_s2 = scalar_lea.vmem %s54_s22, 4096  ;;  %p5726_p0 = scmp.lt.s32.totalorder %s54_s22, %s54_s22 }
  0x3e   :  { %p5722_p13 = scmp.ne.s32.totalorder %s54_s22, %s5721_s2  ;;  %p5727_p1 = scmp.lt.s32.totalorder %s5721_s2, %s5721_s2 }
  0x40   :  { %p5728_p2 = por %p5727_p1, %p5726_p0 }
  0x42   :  { %p5729_p3 = pnand %p5728_p2, %p5722_p13 }
  0x44   :  { %5732 = shalt.err (!%p5729_p3)
}
  0x45   :  { %59 = dma.hbm_to_vmem [thread:$0]  %s7801_s4, 4096, %s54_s22, [#allocation7], %s5786_s27, %s5786_s27, %s5787_s28  }
  0x46   :  { %s5733_s19 = scalar_lea.hbm %s7804_s7, 4096 }
  0x47   :  { %p5734_p4 = scmp.ne.s32.totalorder %s7804_s7, %s5733_s19  ;;  %p5737_p5 = scmp.lt.u32.totalorder %s5733_s19, %s7804_s7 }
  0x49   :  { %p5739_p6 = pnand %p5737_p5, %p5734_p4 }
  0x4b   :  { %5742 = shalt.err (!%p5739_p6)
}
  0x4c   :  { %s5743_s24 = scalar_lea.vmem %s80_s3, 4096  ;;  %p5748_p8 = scmp.lt.s32.totalorder %s80_s3, %s80_s3 }
  0x4d   :  { %p5744_p7 = scmp.ne.s32.totalorder %s80_s3, %s5743_s24  ;;  %p5749_p9 = scmp.lt.s32.totalorder %s5743_s24, %s5743_s24 }
  0x4f   :  { %p5750_p10 = por %p5749_p9, %p5748_p8 }
  0x51   :  { %p5751_p11 = pnand %p5750_p10, %p5744_p7 }
  0x53   :  { %5754 = shalt.err (!%p5751_p11)
}
  0x54   :  { %85 = dma.hbm_to_vmem [thread:$0]  %s7804_s7, 4096, %s80_s3, [#allocation10], %s5786_s27, %s5786_s27, %s5787_s28  }
  0x55   :  { %5777 = dma.done.wait [#allocation4], 512  }
  0x56   :  { %5778 = vsyncadd [#allocation4], 4294966784 }
  0x57   :  { %5779 = dma.done.wait [#allocation7], 4608  }
  0x58   :  { %5780 = vsyncadd [#allocation7], 4294962688 }
  0x59   :  { %5781 = dma.done.wait [#allocation10], 8192  }
  0x5a   :  { %5782 = vsyncadd [#allocation10], 4294959104  ;;  %v7813_v0 = vmov 0   ;;  %v4775_v1 = vld [vmem:[#allocation6 + $0x4] ss:$16 sps:$4 sm:$0xff]   ;;  %vm210_vm0 = vcmask 130048   ;;  %v130_v58 = vlaneseq }
  0x5b   :  { %267 = vmatprep.mubr.bf16.mxu0 %v7813_v0  ;;  %327 = vmatprep.mubr.bf16.mxu1 %v7813_v0  ;;  %v4777_v2 = vld [vmem:[#allocation6] ss:$16 sps:$4 sm:$0xff]   ;;  %v4780_v5 = vld [vmem:[#allocation6 + $0x8] ss:$16 sps:$4 sm:$0xff]   ;;  %v4782_v6 = vld [vmem:[#allocation6 + $0xc] ss:$16 sps:$4 sm:$0xff]  }
  0x5c   :  { %235 = vmatprep.subr.bf16.mxu0 %v4775_v1  ;;  %4568 = vmatprep.subr.bf16.mxu1 %v4775_v1  ;;  %v4778_v3 = vld [vmem:[%s7797_s0] sm:$0xff]   ;;  %v5941_v4 = vld [vmem:[%s7797_s0 + $0x30] sm:$0xff]   ;;  %v4783_v7 = vld [vmem:[%s7797_s0 + $0x8] sm:$0xff]   ;;  %v6157_v59 = vshrl.u32 %v130_v58, 7  ;;  %vm5796_vm1 = vmmov 0   ;;  %s5797_s18 = smov [#allocation12]  }
  0x5d   :  { %236 = vmatpush1.bf16.msra.mxu0 %v4777_v2  ;;  %4569 = vmatpush1.bf16.msra.mxu1 %v4777_v2  ;;  %v5951_v8 = vld [vmem:[#allocation8 + $0x4] ss:$16 sps:$4 sm:$0xff]   ;;  %v5953_v9 = vld [vmem:[#allocation8 + $0xc] ss:$16 sps:$4 sm:$0xff]   ;;  %v5955_v10 = vld [vmem:[#allocation8] ss:$16 sps:$4 sm:$0xff]  }
  0x5e   :  { %348 = vmatprep.subr.bf16.mxu1 %v4782_v6  ;;  %v5960_v11 = vld [vmem:[%s7797_s0 + $0x38] sm:$0xff]   ;;  %759 = vmatprep.subr.bf16.mxu0 %v5951_v8  ;;  %v5965_v12 = vld [vmem:[#allocation8 + $0x24] ss:$16 sps:$4 sm:$0xff]   ;;  %v5967_v13 = vld [vmem:[#allocation8 + $0x20] ss:$16 sps:$4 sm:$0xff]   ;;  %v7810_v61 = vsub.s32 0, %v6157_v59 }
  0x5f   :  { %v5970_v14 = vld [vmem:[#allocation8 + $0x44] ss:$16 sps:$4 sm:$0xff]   ;;  %v5978_v15 = vld [vmem:[#allocation8 + $0x40] ss:$16 sps:$4 sm:$0xff]   ;;  %v5986_v18 = vld [vmem:[#allocation8 + $0x8] ss:$16 sps:$4 sm:$0xff]  }
  0x60   :  { %4320 = vmatmul.mubr.msk.bf16.vlgmr.msra.gmra.mrb[0].mxu0 %vm210_vm0, %v4778_v3  ;;  %4326 = vmatmul.mubr.msk.bf16.vlgmr.msra.gmra.mrb[0].mxu1 %vm210_vm0, %v5941_v4  ;;  %v5981_v16 = vld [vmem:[#allocation8 + $0x64] ss:$16 sps:$4 sm:$0xff]   ;;  %v5988_v19 = vld [vmem:[#allocation8 + $0x2c] ss:$16 sps:$4 sm:$0xff]   ;;  %v5992_v20 = vld [vmem:[#allocation8 + $0x60] ss:$16 sps:$4 sm:$0xff]  }
  0x61   :  { %277 = vmatprep.mubr.bf16.mxu0 %v7813_v0  ;;  %349 = vmatpush1.bf16.msra.mxu1 %v4780_v5  ;;  %v4785_v17 = vld [vmem:[%s7797_s0 + $0x10] sm:$0xff]   ;;  %v6000_v22 = vld [vmem:[#allocation8 + $0x28] ss:$16 sps:$4 sm:$0xff]   ;;  %v6004_v23 = vld [vmem:[#allocation8 + $0x4c] ss:$16 sps:$4 sm:$0xff]   ;;  %v7809_v1 = vsub.s32 1, %v6157_v59 }
  0x62   :  { %337 = vmatprep.mubr.bf16.mxu1 %v7813_v0  ;;  %802 = vmatprep.subr.bf16.mxu1 %v5953_v9  ;;  %v5996_v21 = vld [vmem:[#allocation8 + $0x84] ss:$16 sps:$4 sm:$0xff]   ;;  %v6007_v24 = vld [vmem:[#allocation8 + $0x80] ss:$16 sps:$4 sm:$0xff]   ;;  %v4795_v25 = vld [vmem:[%s7797_s0 + $0x18] sm:$0xff]   ;;  %s4294_s24 = sshll.u32 %s5797_s18, 4  ;;  %s4295_s24 = int_to_ptr.vmem [resolvable:$true] %s4294_s24 }
  0x63   :  { %760 = vmatpush1.bf16.msra.mxu0 %v5955_v10  ;;  %v6015_v26 = vld [vmem:[#allocation8 + $0x48] ss:$16 sps:$4 sm:$0xff]   ;;  %v6017_v27 = vld [vmem:[#allocation8 + $0xa4] ss:$16 sps:$4 sm:$0xff]   ;;  %v6020_v28 = vld [vmem:[#allocation8 + $0xa0] ss:$16 sps:$4 sm:$0xff]   ;;  %p5760_p13 = scmp.lt.s32.totalorder %s4295_s24, %s4295_s24 }
  0x64   :  { %761 = vmatprep.subr.bf16.mxu0 %v5965_v12  ;;  %v6022_v29 = vld [vmem:[#allocation8 + $0x6c] ss:$16 sps:$4 sm:$0xff]   ;;  %v6026_v30 = vld [vmem:[#allocation8 + $0xc4] ss:$16 sps:$4 sm:$0xff]   ;;  %v6035_v32 = vld [vmem:[#allocation8 + $0xc0] ss:$16 sps:$4 sm:$0xff]  }
  0x65   :  { %v4805_v31 = vld [vmem:[%s7797_s0 + $0x20] sm:$0xff]   ;;  %v6037_v33 = vld [vmem:[#allocation8 + $0x68] ss:$16 sps:$4 sm:$0xff]   ;;  %v6039_v34 = vld [vmem:[#allocation8 + $0x8c] ss:$16 sps:$4 sm:$0xff]   ;;  %s5755_s4 = scalar_lea.vmem %s4295_s24, 256 }
  0x66   :  { %v6044_v35 = vld [vmem:[#allocation8 + $0xe4] ss:$16 sps:$4 sm:$0xff]   ;;  %v6046_v36 = vld [vmem:[#allocation8 + $0x88] ss:$16 sps:$4 sm:$0xff]   ;;  %v6048_v37 = vld [vmem:[#allocation8 + $0xe0] ss:$16 sps:$4 sm:$0xff]   ;;  %p5756_p12 = scmp.ne.s32.totalorder %s4295_s24, %s5755_s4  ;;  %p5761_p0 = scmp.lt.s32.totalorder %s5755_s4, %s5755_s4 }
  0x67   :  { %762 = vmatpush1.bf16.msra.mxu0 %v5967_v13  ;;  %v6050_v38 = vld [vmem:[#allocation8 + $0xac] ss:$16 sps:$4 sm:$0xff]   ;;  %v6057_v39 = vld [vmem:[#allocation8 + $0xa8] ss:$16 sps:$4 sm:$0xff]   ;;  %v547_v44 = vld [vmem:[%s7798_s1] sm:$0xff] }
  0x68   :  { %4321 = vmatmul.mubr.msk.bf16.gmra.mrb[4].mxu0 %vm210_vm0, %v4783_v7  ;;  %4327 = vmatmul.mubr.msk.bf16.gmra.mrb[4].mxu1 %vm210_vm0, %v5960_v11  ;;  %v6061_v40 = vld [vmem:[#allocation8 + $0xcc] ss:$16 sps:$4 sm:$0xff]   ;;  %v6070_v42 = vld [vmem:[#allocation8 + $0xc8] ss:$16 sps:$4 sm:$0xff]   ;;  %v6135_v48 = vld [vmem:[#allocation11 + $0x4] ss:$16 sps:$4 sm:$0xff]   ;;  %p5762_p1 = por %p5761_p0, %p5760_p13 }
  0x69   :  { %287 = vmatprep.mubr.bf16.mxu0 %v7813_v0  ;;  %380 = vmatprep.mubr.bf16.mxu1 %v7813_v0  ;;  %v4815_v41 = vld [vmem:[%s7797_s0 + $0x28] sm:$0xff]   ;;  %v128_v63 = vld [vmem:[%s7802_s5] sm:$0xf] }
  0x6a   :  { %763 = vmatprep.subr.bf16.mxu0 %v5970_v14  ;;  %v6073_v43 = vld [vmem:[#allocation8 + $0xec] ss:$16 sps:$4 sm:$0xff]   ;;  %v6085_v46 = vld [vmem:[#allocation8 + $0xe8] ss:$16 sps:$4 sm:$0xff]   ;;  %v6170_v5 = vrot.slane %v128_v63, %v7809_v1  ;;  %p5763_p2 = pnand %p5762_p1, %p5756_p12 }
  0x6b   :  { %764 = vmatpush1.bf16.msra.mxu0 %v5978_v15  ;;  %v548_v45 = vld [vmem:[%s7798_s1 + $0x8] sm:$0xff] }
  0x6c   :  { %765 = vmatprep.subr.bf16.mxu0 %v5981_v16  ;;  %v557_v47 = vpack.c.bf16 %v548_v45, %v547_v44  ;;  %v6137_v49 = vld [vmem:[#allocation11 + $0xc] ss:$16 sps:$4 sm:$0xff]  }
  0x6f   :  { %766 = vmatpush1.bf16.msra.mxu0 %v5992_v20 }
  0x70   :  { %4322 = vmatmul.mubr.msk.bf16.gmra.mrb[8].mxu0 %vm210_vm0, %v4785_v17  ;;  %4328 = vmatmul.mubr.msk.bf16.vlgmr.msra.gmra.mrb[8].mxu1 %vm210_vm0, %v4778_v3 }
  0x71   :  { %803 = vmatpush1.bf16.msra.mxu1 %v5986_v18  ;;  %297 = vmatprep.mubr.bf16.mxu0 %v7813_v0 }
  0x72   :  { %390 = vmatprep.mubr.bf16.mxu1 %v7813_v0  ;;  %804 = vmatprep.subr.bf16.mxu1 %v5988_v19 }
  0x73   :  { %767 = vmatprep.subr.bf16.mxu0 %v5996_v21 }
  0x74   :  { %768 = vmatpush1.bf16.msra.mxu0 %v6007_v24 }
  0x75   :  { %805 = vmatpush1.bf16.msra.mxu1 %v6000_v22  ;;  %769 = vmatprep.subr.bf16.mxu0 %v6017_v27 }
  0x76   :  { %806 = vmatprep.subr.bf16.mxu1 %v6004_v23 }
  0x78   :  { %4323 = vmatmul.mubr.msk.bf16.gmra.mrb[12].mxu0 %vm210_vm0, %v4795_v25  ;;  %4329 = vmatmul.mubr.msk.bf16.gmra.mrb[12].mxu1 %vm210_vm0, %v4783_v7 }
  0x79   :  { %307 = vmatprep.mubr.bf16.mxu0 %v7813_v0  ;;  %400 = vmatprep.mubr.bf16.mxu1 %v7813_v0 }
  0x7a   :  { %807 = vmatpush1.bf16.msra.mxu1 %v6015_v26  ;;  %770 = vmatpush1.bf16.msra.mxu0 %v6020_v28 }
  0x7b   :  { %808 = vmatprep.subr.bf16.mxu1 %v6022_v29  ;;  %771 = vmatprep.subr.bf16.mxu0 %v6026_v30 }
  0x7e   :  { %809 = vmatpush1.bf16.msra.mxu1 %v6037_v33  ;;  %772 = vmatpush1.bf16.msra.mxu0 %v6035_v32 }
  0x7f   :  { %810 = vmatprep.subr.bf16.mxu1 %v6039_v34  ;;  %773 = vmatprep.subr.bf16.mxu0 %v6044_v35 }
  0x80   :  { %4324 = vmatmul.mubr.msk.bf16.gmra.mrb[16].mxu0 %vm210_vm0, %v4805_v31  ;;  %4330 = vmatmul.mubr.msk.bf16.gmra.mrb[16].mxu1 %vm210_vm0, %v4785_v17 }
  0x81   :  { %317 = vmatprep.mubr.bf16.mxu0 %v7813_v0  ;;  %410 = vmatprep.mubr.bf16.mxu1 %v7813_v0 }
  0x82   :  { %811 = vmatpush1.bf16.msra.mxu1 %v6046_v36  ;;  %774 = vmatpush1.bf16.msra.mxu0 %v6048_v37 }
  0x83   :  { %812 = vmatprep.subr.bf16.mxu1 %v6050_v38  ;;  %910 = vmatprep.subr.bf16.mxu0 %v5951_v8 }
  0x86   :  { %813 = vmatpush1.bf16.msra.mxu1 %v6057_v39 }
  0x87   :  { %814 = vmatprep.subr.bf16.mxu1 %v6061_v40 }
  0x88   :  { %4325 = vmatmul.mubr.msk.bf16.gmra.mrb[20].mxu0 %vm210_vm0, %v4815_v41  ;;  %4331 = vmatmul.mubr.msk.bf16.gmra.mrb[20].mxu1 %vm210_vm0, %v4795_v25 }
  0x89   :  { %420 = vmatprep.mubr.bf16.mxu1 %v7813_v0  ;;  %791 = vmatprep.mubr.bf16.mxu0 %v7813_v0 }
  0x8a   :  { %815 = vmatpush1.bf16.msra.mxu1 %v6070_v42 }
  0x8b   :  { %816 = vmatprep.subr.bf16.mxu1 %v6073_v43 }
  0x8e   :  { %817 = vmatpush1.bf16.msra.mxu1 %v6085_v46 }
  0x8f   :  { %953 = vmatprep.subr.bf16.mxu1 %v5953_v9 }
  0x90   :  { %4332 = vmatmul.mubr.msk.bf16.gmra.mrb[24].mxu1 %vm210_vm0, %v4805_v31  ;;  %792 = vmatmul.mubr.bf16.vlgmr.msra.gmra.mrb[0].mxu0 %v557_v47 }
  0x91   :  { %430 = vmatprep.mubr.bf16.mxu1 %v7813_v0  ;;  %911 = vmatpush1.bf16.msra.mxu0 %v5955_v10 }
  0x92   :  { %912 = vmatprep.subr.bf16.mxu0 %v5965_v12  ;;  %942 = vmatprep.mubr.bf16.mxu0 %v7813_v0 }
  0x95   :  { %913 = vmatpush1.bf16.msra.mxu0 %v5967_v13 }
  0x96   :  { %914 = vmatprep.subr.bf16.mxu0 %v5970_v14 }
  0x98   :  { %4333 = vmatmul.mubr.msk.bf16.gmra.mrb[28].mxu1 %vm210_vm0, %v4815_v41 }
  0x99   :  { %440 = vmatprep.mubr.bf16.mxu1 %v7813_v0  ;;  %915 = vmatpush1.bf16.msra.mxu0 %v5978_v15 }
  0x9a   :  { %916 = vmatprep.subr.bf16.mxu0 %v5981_v16 }
  0x9d   :  { %917 = vmatpush1.bf16.msra.mxu0 %v5992_v20 }
  0x9e   :  { %918 = vmatprep.subr.bf16.mxu0 %v5996_v21 }
  0xa0   :  { %4334 = vmatmul.mubr.msk.bf16.gmra.mrb[32].mxu1 %vm210_vm0, %v5941_v4  ;;  %v6166_v4 = vrot.slane %v128_v63, %v7810_v61 }
  0xa1   :  { %450 = vmatprep.mubr.bf16.mxu1 %v7813_v0  ;;  %919 = vmatpush1.bf16.msra.mxu0 %v6007_v24 }
  0xa2   :  { %920 = vmatprep.subr.bf16.mxu0 %v6017_v27  ;;  %8094 = vst [vmem:[#allocation25_spill] sm:$0xff] %v6166_v4 }
  0xa5   :  { %921 = vmatpush1.bf16.msra.mxu0 %v6020_v28 }
  0xa6   :  { %922 = vmatprep.subr.bf16.mxu0 %v6026_v30 }
  0xa8   :  { %4335 = vmatmul.mubr.msk.bf16.gmra.mrb[36].mxu1 %vm210_vm0, %v5960_v11 }
  0xa9   :  { %834 = vmatprep.mubr.bf16.mxu1 %v7813_v0  ;;  %923 = vmatpush1.bf16.msra.mxu0 %v6035_v32 }
  0xaa   :  { %924 = vmatprep.subr.bf16.mxu0 %v6044_v35 }
  0xad   :  { %925 = vmatpush1.bf16.msra.mxu0 %v6048_v37 }
  0xae   :  { %1277 = vmatprep.subr.bf16.mxu0 %v6135_v48 }
  0xb0   :  { %835 = vmatmul.mubr.bf16.vlgmr.msra.gmra.mrb[8].mxu1 %v557_v47  ;;  %v7811_v47 = vsub.s32 2, %v6157_v59 }
  0xb1   :  { %954 = vmatpush1.bf16.msra.mxu1 %v5986_v18  ;;  %985 = vmatprep.mubr.bf16.mxu1 %v7813_v0 }
  0xb2   :  { %955 = vmatprep.subr.bf16.mxu1 %v5988_v19 }
  0xb5   :  { %956 = vmatpush1.bf16.msra.mxu1 %v6000_v22 }
  0xb6   :  { %957 = vmatprep.subr.bf16.mxu1 %v6004_v23 }
  0xb9   :  { %958 = vmatpush1.bf16.msra.mxu1 %v6015_v26 }
  0xba   :  { %959 = vmatprep.subr.bf16.mxu1 %v6022_v29 }
  0xbd   :  { %960 = vmatpush1.bf16.msra.mxu1 %v6037_v33 }
  0xbe   :  { %961 = vmatprep.subr.bf16.mxu1 %v6039_v34 }
  0xc1   :  { %962 = vmatpush1.bf16.msra.mxu1 %v6046_v36 }
  0xc2   :  { %963 = vmatprep.subr.bf16.mxu1 %v6050_v38 }
  0xc5   :  { %964 = vmatpush1.bf16.msra.mxu1 %v6057_v39 }
  0xc6   :  { %965 = vmatprep.subr.bf16.mxu1 %v6061_v40 }
  0xc9   :  { %966 = vmatpush1.bf16.msra.mxu1 %v6070_v42 }
  0xca   :  { %967 = vmatprep.subr.bf16.mxu1 %v6073_v43 }
  0xcd   :  { %968 = vmatpush1.bf16.msra.mxu1 %v6085_v46 }
  0xce   :  { %1320 = vmatprep.subr.bf16.mxu1 %v6137_v49 }
 0x133   :  { %v6141_v50 = vpop.f32.mrb[0].mxu1 }
 0x134   :  { %8086 = vst [vmem:[#allocation17_spill] sm:$0xff] %v6141_v50  ;;  %v6143_v51 = vpop.f32.mrb[1].mxu1  ;;  %v6260_v50 = vld [vmem:[#allocation11 + $0xa0] ss:$16 sps:$4 sm:$0xff]  }
 0x135   :  { %8087 = vst [vmem:[#allocation18_spill] sm:$0xff] %v6143_v51  ;;  %v6145_v52 = vpop.f32.mrb[2].mxu1  ;;  %v6256_v51 = vld [vmem:[#allocation11 + $0xac] ss:$16 sps:$4 sm:$0xff]   ;;  %8106 = vst [vmem:[#allocation36_spill] sm:$0xff] %v6260_v50 }
 0x136   :  { %8088 = vst [vmem:[#allocation19_spill] sm:$0xff] %v6145_v52  ;;  %v6147_v53 = vpop.f32.mrb[3].mxu1  ;;  %v6254_v52 = vld [vmem:[#allocation11 + $0xa4] ss:$16 sps:$4 sm:$0xff]   ;;  %8105 = vst [vmem:[#allocation35_spill] sm:$0xff] %v6256_v51 }
 0x137   :  { %8089 = vst [vmem:[#allocation20_spill] sm:$0xff] %v6147_v53  ;;  %v6250_v53 = vld [vmem:[#allocation11 + $0x88] ss:$16 sps:$4 sm:$0xff]   ;;  %8104 = vst [vmem:[#allocation34_spill] sm:$0xff] %v6254_v52 }
 0x138   :  { %8103 = vst [vmem:[#allocation33_spill] sm:$0xff] %v6250_v53 }
 0x13b   :  { %v6149_v54 = vpop.f32.mrb[4].mxu1 }
 0x13c   :  { %8090 = vst [vmem:[#allocation21_spill] sm:$0xff] %v6149_v54  ;;  %v6151_v55 = vpop.f32.mrb[5].mxu1  ;;  %v6248_v54 = vld [vmem:[#allocation11 + $0x80] ss:$16 sps:$4 sm:$0xff]  }
 0x13d   :  { %8091 = vst [vmem:[#allocation22_spill] sm:$0xff] %v6151_v55  ;;  %v6153_v56 = vpop.f32.mrb[6].mxu1  ;;  %v6244_v55 = vld [vmem:[#allocation11 + $0x8c] ss:$16 sps:$4 sm:$0xff]   ;;  %8102 = vst [vmem:[#allocation32_spill] sm:$0xff] %v6248_v54 }
 0x13e   :  { %8092 = vst [vmem:[#allocation23_spill] sm:$0xff] %v6153_v56  ;;  %v6155_v57 = vpop.f32.mrb[7].mxu1  ;;  %8101 = vst [vmem:[#allocation31_spill] sm:$0xff] %v6244_v55 }
 0x13f   :  { %8093 = vst [vmem:[#allocation24_spill] sm:$0xff] %v6155_v57 }
 0x163   :  { %v793_v60 = vpop.f32.mrb[0].mxu0 }
 0x164   :  { %v795_v62 = vpop.f32.mrb[1].mxu0  ;;  %v4570_v6 = vadd.f32 %v793_v60, %v6166_v4  ;;  %v7812_v60 = vsub.s32 3, %v6157_v59 }
 0x165   :  { %v797_v2 = vpop.f32.mrb[2].mxu0  ;;  %v4571_v7 = vadd.f32 %v795_v62, %v6170_v5 }
 0x166   :  { %v799_v3 = vpop.f32.mrb[3].mxu0  ;;  %v4370_v17 = vmul.f32 -1.442695, %v4570_v6  ;;  %v4572_v25 = vadd.f32 %v797_v2, %v6166_v4  ;;  %v6180_v2 = vrot.slane %v128_v63, %v7811_v47 }
 0x167   :  { %v4573_v11 = vadd.f32 %v799_v3, %v6170_v5  ;;  %v4372_v31 = vmul.f32 -1.442695, %v4571_v7  ;;  %v6184_v7 = vrot.slane %v128_v63, %v7812_v60  ;;  %v553_v60 = vld [vmem:[#allocation3 + $0x8] sm:$0xff] }
 0x168   :  { %4941 = vpow2.f32 %v4370_v17  ;;  %v4371_v44 = vmul.f32 -1.442695, %v4572_v25 }
 0x169   :  { %v4373_v41 = vmul.f32 -1.442695, %v4573_v11  ;;  %4943 = vpow2.f32 %v4372_v31 }
 0x16b   :  { %4945 = vpow2.f32 %v4373_v41 }
 0x16c   :  { %4947 = vpow2.f32 %v4371_v44 }
 0x172   :  { %v4942_v45 = vpop.eup %4941 }
 0x173   :  { %v4944_v58 = vpop.eup %4943  ;;  %v859_v62 = vadd.f32 1.0, %v4942_v45 }
 0x174   :  { %v871_v3 = vadd.f32 1.0, %v4944_v58 }
 0x175   :  { %v4946_v1 = vpop.eup %4945  ;;  %4949 = vrcp.f32 %v859_v62 }
 0x176   :  { %v4948_v61 = vpop.eup %4947  ;;  %v872_v6 = vadd.f32 1.0, %v4946_v1  ;;  %4951 = vrcp.f32 %v871_v3 }
 0x177   :  { %v860_v11 = vadd.f32 1.0, %v4948_v61 }
 0x178   :  { %4953 = vrcp.f32 %v872_v6 }
 0x17f   :  { %v4950_v62 = vpop.eup %4949 }
 0x180   :  { %v4952_v3 = vpop.eup %4951 }
 0x182   :  { %v4954_v47 = vpop.eup %4953 }
 0x183   :  { %v836_v17 = vpop.f32.mrb[8].mxu1  ;;  %v892_v56 = vmul.f32 %v4954_v47, %v553_v60 }
 0x184   :  { %v4610_v25 = vadd.f32 %v836_v17, %v6180_v2  ;;  %v838_v31 = vpop.f32.mrb[9].mxu1  ;;  %v552_v17 = vld [vmem:[#allocation3] sm:$0xff] }
 0x185   :  { %v4611_v41 = vadd.f32 %v838_v31, %v6184_v7  ;;  %v840_v44 = vpop.f32.mrb[10].mxu1  ;;  %v891_v0 = vmul.f32 %v4952_v3, %v552_v17 }
 0x186   :  { %4955 = vtanh.f32 %v4610_v25  ;;  %v4612_v45 = vadd.f32 %v840_v44, %v6180_v2  ;;  %v842_v58 = vpop.f32.mrb[11].mxu1 }
 0x187   :  { %4957 = vrcp.f32 %v860_v11  ;;  %v4374_v1 = vmul.f32 -1.442695, %v4611_v41  ;;  %v4613_v63 = vadd.f32 %v842_v58, %v6184_v7 }
 0x188   :  { %4959 = vtanh.f32 %v4612_v45 }
 0x189   :  { %4961 = vpow2.f32 %v4374_v1  ;;  %v4375_v61 = vmul.f32 -1.442695, %v4613_v63 }
 0x18b   :  { %4963 = vpow2.f32 %v4375_v61 }
 0x190   :  { %v4956_v6 = vpop.eup %4955 }
 0x191   :  { %v4958_v31 = vpop.eup %4957  ;;  %v893_v25 = vmul.f32 %v4956_v6, %v4950_v62 }
 0x192   :  { %v4960_v57 = vpop.eup %4959 }
 0x193   :  { %v4962_v44 = vpop.eup %4961  ;;  %v6190_v11 = vadd.f32 %v893_v25, %v891_v0  ;;  %v894_v41 = vmul.f32 %v4960_v57, %v4958_v31  ;;  %v6196_v0 = vld [vmem:[#allocation11] ss:$16 sps:$4 sm:$0xff]   ;;  %v6198_v57 = vld [vmem:[#allocation11 + $0x8] ss:$16 sps:$4 sm:$0xff]   ;;  %v6202_v31 = vld [vmem:[#allocation11 + $0x24] ss:$16 sps:$4 sm:$0xff]  }
 0x194   :  { %v885_v58 = vadd.f32 1.0, %v4962_v44  ;;  %v6210_v25 = vld [vmem:[#allocation11 + $0x20] ss:$16 sps:$4 sm:$0xff]   ;;  %v6212_v44 = vld [vmem:[#allocation11 + $0x28] ss:$16 sps:$4 sm:$0xff]  }
 0x195   :  { %v4964_v45 = vpop.eup %4963  ;;  %4965 = vtanh.f32 %v6190_v11  ;;  %v6193_v1 = vadd.f32 %v894_v41, %v892_v56  ;;  %v6204_v56 = vld [vmem:[#allocation11 + $0x2c] ss:$16 sps:$4 sm:$0xff]   ;;  %v6216_v41 = vld [vmem:[#allocation11 + $0x44] ss:$16 sps:$4 sm:$0xff]  }
 0x196   :  { %4967 = vrcp.f32 %v885_v58  ;;  %v886_v63 = vadd.f32 1.0, %v4964_v45  ;;  %v6218_v58 = vld [vmem:[#allocation11 + $0x4c] ss:$16 sps:$4 sm:$0xff]   ;;  %v8095_v45 = vmov 0  }
 0x197   :  { %4969 = vtanh.f32 %v6193_v1 }
 0x198   :  { %4971 = vrcp.f32 %v886_v63  ;;  %v6224_v63 = vld [vmem:[#allocation11 + $0x40] ss:$16 sps:$4 sm:$0xff]  }
 0x19f   :  { %v4966_v61 = vpop.eup %4965 }
 0x1a0   :  { %v4968_v3 = vpop.eup %4967 }
 0x1a1   :  { %v4970_v62 = vpop.eup %4969  ;;  %v899_v6 = vmul.f32 %v4968_v3, %v4966_v61  ;;  %v6226_v61 = vld [vmem:[#allocation11 + $0x48] ss:$16 sps:$4 sm:$0xff]   ;;  %v6230_v3 = vld [vmem:[#allocation11 + $0x64] ss:$16 sps:$4 sm:$0xff]  }
 0x1a2   :  { %v4972_v17 = vpop.eup %4971  ;;  %8096 = vst [vmem:[#allocation26_spill] sm:$0xff] %v6230_v3 }
 0x1a3   :  { %v900_v47 = vmul.f32 %v4972_v17, %v4970_v62  ;;  %v6232_v62 = vld [vmem:[#allocation11 + $0x6c] ss:$16 sps:$4 sm:$0xff]   ;;  %v6236_v17 = vld [vmem:[#allocation11 + $0x60] ss:$16 sps:$4 sm:$0xff]  }
 0x1a4   :  { %8097 = vst [vmem:[#allocation27_spill] sm:$0xff] %v6232_v62  ;;  %8098 = vst [vmem:[#allocation28_spill] sm:$0xff] %v6236_v17 }
 0x1a5   :  { %v6200_v60 = vpack.c.bf16 %v900_v47, %v899_v6  ;;  %v6238_v6 = vld [vmem:[#allocation11 + $0x68] ss:$16 sps:$4 sm:$0xff]   ;;  %v6242_v47 = vld [vmem:[#allocation11 + $0x84] ss:$16 sps:$4 sm:$0xff]  }
 0x1a6   :  { %8099 = vst [vmem:[#allocation29_spill] sm:$0xff] %v6238_v6  ;;  %8100 = vst [vmem:[#allocation30_spill] sm:$0xff] %v6242_v47 }
 0x1a7   :  { %943 = vmatmul.mubr.bf16.vlgmr.msra.gmra.mrb[4].mxu0 %v6200_v60  ;;  %986 = vmatmul.mubr.bf16.vlgmr.msra.gmra.mrb[12].mxu1 %v6200_v60 }
 0x1a8   :  { %1278 = vmatpush1.bf16.msra.mxu0 %v6196_v0  ;;  %1321 = vmatpush1.bf16.msra.mxu1 %v6198_v57 }
 0x1a9   :  { %1279 = vmatprep.subr.bf16.mxu0 %v6202_v31  ;;  %1322 = vmatprep.subr.bf16.mxu1 %v6204_v56 }
 0x1aa   :  { %1309 = vmatprep.mubr.bf16.mxu0 %v8095_v45  ;;  %1352 = vmatprep.mubr.bf16.mxu1 %v8095_v45 }
 0x1ac   :  { %1280 = vmatpush1.bf16.msra.mxu0 %v6210_v25  ;;  %1323 = vmatpush1.bf16.msra.mxu1 %v6212_v44 }
 0x1ad   :  { %1281 = vmatprep.subr.bf16.mxu0 %v6216_v41  ;;  %1324 = vmatprep.subr.bf16.mxu1 %v6218_v58 }
 0x1b0   :  { %1282 = vmatpush1.bf16.msra.mxu0 %v6224_v63  ;;  %1325 = vmatpush1.bf16.msra.mxu1 %v6226_v61 }
 0x1b1   :  { %1283 = vmatprep.subr.bf16.mxu0 %v6230_v3  ;;  %1326 = vmatprep.subr.bf16.mxu1 %v6232_v62  ;;  %v6298_v62 = vld [vmem:[#allocation9 + $0xc] ss:$16 sps:$4 sm:$0xff]   ;;  %v6304_v3 = vld [vmem:[#allocation9 + $0x8] ss:$16 sps:$4 sm:$0xff]  }
 0x1b2   :  { %8117 = vst [vmem:[#allocation47_spill] sm:$0xff] %v6298_v62  ;;  %8119 = vst [vmem:[#allocation49_spill] sm:$0xff] %v6304_v3 }
 0x1b4   :  { %1284 = vmatpush1.bf16.msra.mxu0 %v6236_v17  ;;  %1327 = vmatpush1.bf16.msra.mxu1 %v6238_v6  ;;  %v6262_v17 = vld [vmem:[#allocation11 + $0xa8] ss:$16 sps:$4 sm:$0xff]   ;;  %v6266_v6 = vld [vmem:[#allocation11 + $0xc4] ss:$16 sps:$4 sm:$0xff]  }
 0x1b5   :  { %1285 = vmatprep.subr.bf16.mxu0 %v6242_v47  ;;  %1328 = vmatprep.subr.bf16.mxu1 %v6244_v55  ;;  %8107 = vst [vmem:[#allocation37_spill] sm:$0xff] %v6262_v17  ;;  %8108 = vst [vmem:[#allocation38_spill] sm:$0xff] %v6266_v6  ;;  %v6268_v47 = vld [vmem:[#allocation11 + $0xcc] ss:$16 sps:$4 sm:$0xff]   ;;  %v6272_v55 = vld [vmem:[#allocation11 + $0xc0] ss:$16 sps:$4 sm:$0xff]  }
 0x1b6   :  { %8109 = vst [vmem:[#allocation39_spill] sm:$0xff] %v6268_v47  ;;  %8110 = vst [vmem:[#allocation40_spill] sm:$0xff] %v6272_v55 }
 0x1b8   :  { %1286 = vmatpush1.bf16.msra.mxu0 %v6248_v54  ;;  %1329 = vmatpush1.bf16.msra.mxu1 %v6250_v53  ;;  %v6274_v54 = vld [vmem:[#allocation11 + $0xc8] ss:$16 sps:$4 sm:$0xff]   ;;  %v6278_v53 = vld [vmem:[#allocation11 + $0xe4] ss:$16 sps:$4 sm:$0xff]  }
 0x1b9   :  { %1287 = vmatprep.subr.bf16.mxu0 %v6254_v52  ;;  %1330 = vmatprep.subr.bf16.mxu1 %v6256_v51  ;;  %8111 = vst [vmem:[#allocation41_spill] sm:$0xff] %v6274_v54  ;;  %8112 = vst [vmem:[#allocation42_spill] sm:$0xff] %v6278_v53  ;;  %v6280_v52 = vld [vmem:[#allocation11 + $0xec] ss:$16 sps:$4 sm:$0xff]   ;;  %v6282_v51 = vld [vmem:[#allocation11 + $0xe0] ss:$16 sps:$4 sm:$0xff]  }
 0x1ba   :  { %8113 = vst [vmem:[#allocation43_spill] sm:$0xff] %v6280_v52  ;;  %8114 = vst [vmem:[#allocation44_spill] sm:$0xff] %v6282_v51 }
 0x1bc   :  { %1288 = vmatpush1.bf16.msra.mxu0 %v6260_v50  ;;  %1331 = vmatpush1.bf16.msra.mxu1 %v6262_v17  ;;  %v6286_v50 = vld [vmem:[#allocation11 + $0xe8] ss:$16 sps:$4 sm:$0xff]   ;;  %v4336_v17 = vld [vmem:[%s7798_s1 + $0x10] sm:$0xff] }
 0x1bd   :  { %1289 = vmatprep.subr.bf16.mxu0 %v6266_v6  ;;  %1332 = vmatprep.subr.bf16.mxu1 %v6268_v47  ;;  %8115 = vst [vmem:[#allocation45_spill] sm:$0xff] %v6286_v50  ;;  %v4337_v47 = vld [vmem:[%s7798_s1 + $0x18] sm:$0xff]  ;;  %v6296_v6 = vld [vmem:[#allocation9 + $0x4] ss:$16 sps:$4 sm:$0xff]  }
 0x1be   :  { %8116 = vst [vmem:[#allocation46_spill] sm:$0xff] %v6296_v6 }
 0x1c0   :  { %1290 = vmatpush1.bf16.msra.mxu0 %v6272_v55  ;;  %1333 = vmatpush1.bf16.msra.mxu1 %v6274_v54  ;;  %v558_v55 = vpack.c.bf16 %v4337_v47, %v4336_v17  ;;  %v6302_v54 = vld [vmem:[#allocation9] ss:$16 sps:$4 sm:$0xff]   ;;  %v6316_v47 = vld [vmem:[#allocation9 + $0x28] ss:$16 sps:$4 sm:$0xff]  }
 0x1c1   :  { %1291 = vmatprep.subr.bf16.mxu0 %v6278_v53  ;;  %1334 = vmatprep.subr.bf16.mxu1 %v6280_v52  ;;  %8118 = vst [vmem:[#allocation48_spill] sm:$0xff] %v6302_v54  ;;  %v6308_v53 = vld [vmem:[#allocation9 + $0x24] ss:$16 sps:$4 sm:$0xff]   ;;  %v6310_v52 = vld [vmem:[#allocation9 + $0x2c] ss:$16 sps:$4 sm:$0xff]   ;;  %8123 = vst [vmem:[#allocation53_spill] sm:$0xff] %v6316_v47 }
 0x1c2   :  { %8120 = vst [vmem:[#allocation50_spill] sm:$0xff] %v6308_v53  ;;  %8121 = vst [vmem:[#allocation51_spill] sm:$0xff] %v6310_v52  ;;  %v6314_v17 = vld [vmem:[#allocation9 + $0x20] ss:$16 sps:$4 sm:$0xff]  }
 0x1c3   :  { %8122 = vst [vmem:[#allocation52_spill] sm:$0xff] %v6314_v17 }
 0x1c4   :  { %1292 = vmatpush1.bf16.msra.mxu0 %v6282_v51  ;;  %1335 = vmatpush1.bf16.msra.mxu1 %v6286_v50 }
 0x1c5   :  { %1523 = vmatprep.subr.bf16.mxu0 %v6296_v6  ;;  %1566 = vmatprep.subr.bf16.mxu1 %v6298_v62  ;;  %v6320_v6 = vld [vmem:[#allocation9 + $0x44] ss:$16 sps:$4 sm:$0xff]   ;;  %v6322_v62 = vld [vmem:[#allocation9 + $0x4c] ss:$16 sps:$4 sm:$0xff]  }
 0x1c6   :  { %8124 = vst [vmem:[#allocation54_spill] sm:$0xff] %v6320_v6  ;;  %8125 = vst [vmem:[#allocation55_spill] sm:$0xff] %v6322_v62 }
 0x1c7   :  { %1310 = vmatmul.mubr.bf16.vlgmr.msra.gmra.mrb[24].mxu0 %v558_v55  ;;  %1353 = vmatmul.mubr.bf16.vlgmr.msra.gmra.mrb[40].mxu1 %v558_v55  ;;  %v6328_v55 = vld [vmem:[#allocation9 + $0x40] ss:$16 sps:$4 sm:$0xff]  }
 0x1c8   :  { %1524 = vmatpush1.bf16.msra.mxu0 %v6302_v54  ;;  %1567 = vmatpush1.bf16.msra.mxu1 %v6304_v3  ;;  %8126 = vst [vmem:[#allocation56_spill] sm:$0xff] %v6328_v55  ;;  %v6330_v3 = vld [vmem:[#allocation9 + $0x48] ss:$16 sps:$4 sm:$0xff]   ;;  %v6340_v54 = vld [vmem:[#allocation9 + $0x60] ss:$16 sps:$4 sm:$0xff]  }
 0x1c9   :  { %1525 = vmatprep.subr.bf16.mxu0 %v6308_v53  ;;  %1568 = vmatprep.subr.bf16.mxu1 %v6310_v52  ;;  %8127 = vst [vmem:[#allocation57_spill] sm:$0xff] %v6330_v3  ;;  %v6334_v52 = vld [vmem:[#allocation9 + $0x64] ss:$16 sps:$4 sm:$0xff]   ;;  %v6336_v53 = vld [vmem:[#allocation9 + $0x6c] ss:$16 sps:$4 sm:$0xff]   ;;  %8130 = vst [vmem:[#allocation60_spill] sm:$0xff] %v6340_v54 }
 0x1ca   :  { %1555 = vmatprep.mubr.bf16.mxu0 %v8095_v45  ;;  %1598 = vmatprep.mubr.bf16.mxu1 %v8095_v45  ;;  %8128 = vst [vmem:[#allocation58_spill] sm:$0xff] %v6334_v52  ;;  %8129 = vst [vmem:[#allocation59_spill] sm:$0xff] %v6336_v53 }
 0x1cc   :  { %1526 = vmatpush1.bf16.msra.mxu0 %v6314_v17  ;;  %1569 = vmatpush1.bf16.msra.mxu1 %v6316_v47  ;;  %v6342_v17 = vld [vmem:[#allocation9 + $0x68] ss:$16 sps:$4 sm:$0xff]   ;;  %v6346_v47 = vld [vmem:[#allocation9 + $0x84] ss:$16 sps:$4 sm:$0xff]  }
 0x1cd   :  { %1527 = vmatprep.subr.bf16.mxu0 %v6320_v6  ;;  %1570 = vmatprep.subr.bf16.mxu1 %v6322_v62  ;;  %8131 = vst [vmem:[#allocation61_spill] sm:$0xff] %v6342_v17  ;;  %8132 = vst [vmem:[#allocation62_spill] sm:$0xff] %v6346_v47  ;;  %v6348_v6 = vld [vmem:[#allocation9 + $0x8c] ss:$16 sps:$4 sm:$0xff]   ;;  %v6352_v62 = vld [vmem:[#allocation9 + $0x80] ss:$16 sps:$4 sm:$0xff]  }
 0x1ce   :  { %8133 = vst [vmem:[#allocation63_spill] sm:$0xff] %v6348_v6  ;;  %8134 = vst [vmem:[#allocation64_spill] sm:$0xff] %v6352_v62 }
 0x1d0   :  { %1528 = vmatpush1.bf16.msra.mxu0 %v6328_v55  ;;  %1571 = vmatpush1.bf16.msra.mxu1 %v6330_v3  ;;  %v6354_v55 = vld [vmem:[#allocation9 + $0x88] ss:$16 sps:$4 sm:$0xff]   ;;  %v6358_v3 = vld [vmem:[#allocation9 + $0xa4] ss:$16 sps:$4 sm:$0xff]  }
 0x1d1   :  { %1529 = vmatprep.subr.bf16.mxu0 %v6334_v52  ;;  %1572 = vmatprep.subr.bf16.mxu1 %v6336_v53  ;;  %8135 = vst [vmem:[#allocation65_spill] sm:$0xff] %v6354_v55  ;;  %8136 = vst [vmem:[#allocation66_spill] sm:$0xff] %v6358_v3  ;;  %v6360_v52 = vld [vmem:[#allocation9 + $0xac] ss:$16 sps:$4 sm:$0xff]   ;;  %v6364_v53 = vld [vmem:[#allocation9 + $0xa0] ss:$16 sps:$4 sm:$0xff]  }
 0x1d2   :  { %8137 = vst [vmem:[#allocation67_spill] sm:$0xff] %v6360_v52  ;;  %8138 = vst [vmem:[#allocation68_spill] sm:$0xff] %v6364_v53 }
 0x1d4   :  { %1530 = vmatpush1.bf16.msra.mxu0 %v6340_v54  ;;  %1573 = vmatpush1.bf16.msra.mxu1 %v6342_v17  ;;  %v6366_v54 = vld [vmem:[#allocation9 + $0xa8] ss:$16 sps:$4 sm:$0xff]   ;;  %v6370_v17 = vld [vmem:[#allocation9 + $0xc4] ss:$16 sps:$4 sm:$0xff]  }
 0x1d5   :  { %1531 = vmatprep.subr.bf16.mxu0 %v6346_v47  ;;  %1574 = vmatprep.subr.bf16.mxu1 %v6348_v6  ;;  %v6372_v47 = vld [vmem:[#allocation9 + $0xcc] ss:$16 sps:$4 sm:$0xff]   ;;  %v6376_v6 = vld [vmem:[#allocation9 + $0xc0] ss:$16 sps:$4 sm:$0xff]  }
 0x1d8   :  { %1532 = vmatpush1.bf16.msra.mxu0 %v6352_v62  ;;  %1575 = vmatpush1.bf16.msra.mxu1 %v6354_v55  ;;  %v6378_v62 = vld [vmem:[#allocation9 + $0xc8] ss:$16 sps:$4 sm:$0xff]   ;;  %v6382_v55 = vld [vmem:[#allocation9 + $0xe4] ss:$16 sps:$4 sm:$0xff]  }
 0x1d9   :  { %1533 = vmatprep.subr.bf16.mxu0 %v6358_v3  ;;  %1576 = vmatprep.subr.bf16.mxu1 %v6360_v52  ;;  %v6384_v3 = vld [vmem:[#allocation9 + $0xec] ss:$16 sps:$4 sm:$0xff]   ;;  %v6388_v52 = vld [vmem:[#allocation9 + $0xe0] ss:$16 sps:$4 sm:$0xff]  }
 0x1dc   :  { %1534 = vmatpush1.bf16.msra.mxu0 %v6364_v53  ;;  %1577 = vmatpush1.bf16.msra.mxu1 %v6366_v54  ;;  %v6390_v53 = vld [vmem:[#allocation9 + $0xe8] ss:$16 sps:$4 sm:$0xff]  }
 0x1dd   :  { %1535 = vmatprep.subr.bf16.mxu0 %v6370_v17  ;;  %1578 = vmatprep.subr.bf16.mxu1 %v6372_v47  ;;  %8139 = vst [vmem:[#allocation69_spill] sm:$0xff] %v6390_v53 }
 0x1e0   :  { %1536 = vmatpush1.bf16.msra.mxu0 %v6376_v6  ;;  %1579 = vmatpush1.bf16.msra.mxu1 %v6378_v62 }
 0x1e1   :  { %1537 = vmatprep.subr.bf16.mxu0 %v6382_v55  ;;  %1580 = vmatprep.subr.bf16.mxu1 %v6384_v3 }
 0x1e4   :  { %1538 = vmatpush1.bf16.msra.mxu0 %v6388_v52  ;;  %1581 = vmatpush1.bf16.msra.mxu1 %v6390_v53 }
 0x1e5   :  { %1674 = vmatprep.subr.bf16.mxu0 %v5951_v8  ;;  %1717 = vmatprep.subr.bf16.mxu1 %v5953_v9 }
 0x1e7   :  { %1556 = vmatmul.mubr.bf16.vlgmr.msra.gmra.mrb[24].mxu0 %v6200_v60  ;;  %1599 = vmatmul.mubr.bf16.vlgmr.msra.gmra.mrb[40].mxu1 %v6200_v60 }
 0x1e8   :  { %1675 = vmatpush1.bf16.msra.mxu0 %v5955_v10  ;;  %1718 = vmatpush1.bf16.msra.mxu1 %v5986_v18 }
 0x1e9   :  { %1676 = vmatprep.subr.bf16.mxu0 %v5965_v12  ;;  %1719 = vmatprep.subr.bf16.mxu1 %v5988_v19 }
 0x1ea   :  { %1706 = vmatprep.mubr.bf16.mxu0 %v8095_v45  ;;  %1749 = vmatprep.mubr.bf16.mxu1 %v8095_v45 }
 0x1ec   :  { %1677 = vmatpush1.bf16.msra.mxu0 %v5967_v13  ;;  %1720 = vmatpush1.bf16.msra.mxu1 %v6000_v22 }
 0x1ed   :  { %1678 = vmatprep.subr.bf16.mxu0 %v5970_v14  ;;  %1721 = vmatprep.subr.bf16.mxu1 %v6004_v23 }
 0x1f0   :  { %1679 = vmatpush1.bf16.msra.mxu0 %v5978_v15  ;;  %1722 = vmatpush1.bf16.msra.mxu1 %v6015_v26 }
 0x1f1   :  { %1680 = vmatprep.subr.bf16.mxu0 %v5981_v16  ;;  %1723 = vmatprep.subr.bf16.mxu1 %v6022_v29 }
 0x1f4   :  { %1681 = vmatpush1.bf16.msra.mxu0 %v5992_v20  ;;  %1724 = vmatpush1.bf16.msra.mxu1 %v6037_v33 }
 0x1f5   :  { %1682 = vmatprep.subr.bf16.mxu0 %v5996_v21  ;;  %1725 = vmatprep.subr.bf16.mxu1 %v6039_v34 }
 0x1f8   :  { %1683 = vmatpush1.bf16.msra.mxu0 %v6007_v24  ;;  %1726 = vmatpush1.bf16.msra.mxu1 %v6046_v36 }
 0x1f9   :  { %1684 = vmatprep.subr.bf16.mxu0 %v6017_v27  ;;  %1727 = vmatprep.subr.bf16.mxu1 %v6050_v38 }
 0x1fc   :  { %1685 = vmatpush1.bf16.msra.mxu0 %v6020_v28  ;;  %1728 = vmatpush1.bf16.msra.mxu1 %v6057_v39 }
 0x1fd   :  { %1686 = vmatprep.subr.bf16.mxu0 %v6026_v30  ;;  %1729 = vmatprep.subr.bf16.mxu1 %v6061_v40 }
 0x200   :  { %1687 = vmatpush1.bf16.msra.mxu0 %v6035_v32  ;;  %1730 = vmatpush1.bf16.msra.mxu1 %v6070_v42 }
 0x201   :  { %1688 = vmatprep.subr.bf16.mxu0 %v6044_v35  ;;  %1731 = vmatprep.subr.bf16.mxu1 %v6073_v43 }
 0x204   :  { %1689 = vmatpush1.bf16.msra.mxu0 %v6048_v37  ;;  %1732 = vmatpush1.bf16.msra.mxu1 %v6085_v46 }
 0x205   :  { %1817 = vmatprep.subr.bf16.mxu0 %v6135_v48  ;;  %1860 = vmatprep.subr.bf16.mxu1 %v6137_v49 }
 0x27a   :  { %v944_v8 = vpop.f32.mrb[4].mxu0  ;;  %v987_v9 = vpop.f32.mrb[12].mxu1 }
 0x27b   :  { %v4574_v10 = vadd.f32 %v944_v8, %v6166_v4  ;;  %v946_v12 = vpop.f32.mrb[5].mxu0  ;;  %v989_v13 = vpop.f32.mrb[13].mxu1  ;;  %v4614_v28 = vadd.f32 %v987_v9, %v6180_v2 }
 0x27c   :  { %v4575_v14 = vadd.f32 %v946_v12, %v6170_v5  ;;  %v948_v15 = vpop.f32.mrb[6].mxu0  ;;  %v991_v16 = vpop.f32.mrb[14].mxu1  ;;  %v4615_v27 = vadd.f32 %v989_v13, %v6184_v7 }
 0x27d   :  { %v4376_v18 = vmul.f32 -1.442695, %v4574_v10  ;;  %v4576_v19 = vadd.f32 %v948_v15, %v6166_v4  ;;  %v950_v20 = vpop.f32.mrb[7].mxu0  ;;  %v993_v21 = vpop.f32.mrb[15].mxu1  ;;  %v4616_v32 = vadd.f32 %v991_v16, %v6180_v2 }
 0x27e   :  { %v4378_v22 = vmul.f32 -1.442695, %v4575_v14  ;;  %v4577_v23 = vadd.f32 %v950_v20, %v6170_v5  ;;  %v4380_v29 = vmul.f32 -1.442695, %v4615_v27  ;;  %v4617_v30 = vadd.f32 %v993_v21, %v6184_v7 }
 0x27f   :  { %4973 = vpow2.f32 %v4376_v18  ;;  %v4377_v24 = vmul.f32 -1.442695, %v4576_v19 }
 0x280   :  { %4975 = vpow2.f32 %v4378_v22  ;;  %v4379_v26 = vmul.f32 -1.442695, %v4577_v23  ;;  %v4381_v36 = vmul.f32 -1.442695, %v4617_v30  ;;  %v8142_v30 = vsub.s32 1, %v6157_v59 }
 0x281   :  { %4977 = vpow2.f32 %v4377_v24 }
 0x282   :  { %4979 = vpow2.f32 %v4379_v26 }
 0x283   :  { %4981 = vtanh.f32 %v4614_v28  ;;  %v8140_v28 = vsub.s32 0, %v6157_v59 }
 0x284   :  { %4983 = vpow2.f32 %v4380_v29 }
 0x285   :  { %4985 = vtanh.f32 %v4616_v32 }
 0x289   :  { %v4974_v33 = vpop.eup %4973 }
 0x28a   :  { %v4976_v34 = vpop.eup %4975  ;;  %v1010_v35 = vadd.f32 1.0, %v4974_v33  ;;  %v8144_v33 = vld [vmem:[#allocation26_spill] sm:$0xff] }
 0x28b   :  { %v1022_v37 = vadd.f32 1.0, %v4976_v34  ;;  %v4978_v38 = vpop.eup %4977  ;;  %v8145_v34 = vld [vmem:[#allocation27_spill] sm:$0xff] }
 0x28c   :  { %4987 = vrcp.f32 %v1010_v35  ;;  %v1011_v39 = vadd.f32 1.0, %v4978_v38  ;;  %v4980_v40 = vpop.eup %4979 }
 0x28d   :  { %4989 = vrcp.f32 %v1022_v37  ;;  %v1023_v42 = vadd.f32 1.0, %v4980_v40  ;;  %v4982_v43 = vpop.eup %4981 }
 0x28e   :  { %4991 = vpow2.f32 %v4381_v36  ;;  %v4984_v46 = vpop.eup %4983 }
 0x28f   :  { %4993 = vrcp.f32 %v1011_v39  ;;  %v4986_v48 = vpop.eup %4985  ;;  %v1036_v13 = vadd.f32 1.0, %v4984_v46  ;;  %v8146_v46 = vld [vmem:[#allocation28_spill] sm:$0xff] }
 0x290   :  { %4995 = vrcp.f32 %v1023_v42 }
 0x291   :  { %4997 = vrcp.f32 %v1036_v13 }
 0x296   :  { %v4988_v49 = vpop.eup %4987 }
 0x297   :  { %v4990_v60 = vpop.eup %4989  ;;  %v1044_v8 = vmul.f32 %v4988_v49, %v4982_v43 }
 0x298   :  { %v4992_v9 = vpop.eup %4991  ;;  %v1042_v10 = vmul.f32 %v4990_v60, %v6190_v11 }
 0x299   :  { %v4994_v12 = vpop.eup %4993  ;;  %v1037_v18 = vadd.f32 1.0, %v4992_v9 }
 0x29a   :  { %v6443_v14 = vadd.f32 %v1044_v8, %v1042_v10  ;;  %v1045_v15 = vmul.f32 %v4994_v12, %v4986_v48  ;;  %v4996_v16 = vpop.eup %4995  ;;  %v8147_v48 = vld [vmem:[#allocation29_spill] sm:$0xff]  ;;  %v8148_v10 = vld [vmem:[#allocation30_spill] sm:$0xff]  ;;  %v8149_v12 = vld [vmem:[#allocation31_spill] sm:$0xff] }
 0x29b   :  { %v1043_v19 = vmul.f32 %v4996_v16, %v6193_v1  ;;  %v4998_v21 = vpop.eup %4997  ;;  %v525_v1 = vld [vmem:[%s7805_s8] sm:$0xf] }
 0x29c   :  { %4999 = vtanh.f32 %v6443_v14  ;;  %v6469_v29 = vrot.slane %v525_v1, %v8140_v28  ;;  %v6473_v32 = vrot.slane %v525_v1, %v8142_v30  ;;  %v8157_v28 = vld [vmem:[#allocation35_spill] sm:$0xff] }
 0x29d   :  { %v6447_v20 = vadd.f32 %v1045_v15, %v1043_v19  ;;  %5001 = vrcp.f32 %v1037_v18  ;;  %v8150_v15 = vsub.s32 3, %v6157_v59 }
 0x29e   :  { %8141 = vst [vmem:[#allocation70_spill] sm:$0xff] %v6469_v29  ;;  %8143 = vst [vmem:[#allocation71_spill] sm:$0xff] %v6473_v32 }
 0x29f   :  { %5003 = vtanh.f32 %v6447_v20  ;;  %v6488_v16 = vrot.slane %v525_v1, %v8150_v15  ;;  %v8165_v15 = vld [vmem:[#allocation43_spill] sm:$0xff] }
 0x2a1   :  { %8151 = vst [vmem:[#allocation26_spill] sm:$0xff] %v6488_v16 }
 0x2a6   :  { %v5000_v22 = vpop.eup %4999 }
 0x2a7   :  { %v5002_v11 = vpop.eup %5001  ;;  %v1050_v24 = vmul.f32 %v5000_v22, %v4998_v21  ;;  %v8152_v22 = vld [vmem:[#allocation32_spill] sm:$0xff] }
 0x2a9   :  { %v5004_v23 = vpop.eup %5003 }
 0x2aa   :  { %v1051_v26 = vmul.f32 %v5004_v23, %v5002_v11  ;;  %v8153_v11 = vld [vmem:[#allocation33_spill] sm:$0xff]  ;;  %v8154_v23 = vsub.s32 2, %v6157_v59 }
 0x2ac   :  { %v6450_v27 = vpack.c.bf16 %v1051_v26, %v1050_v24  ;;  %v6495_v24 = vrot.slane %v525_v1, %v8154_v23  ;;  %v8156_v26 = vld [vmem:[#allocation34_spill] sm:$0xff] }
 0x2ae   :  { %1707 = vmatmul.mubr.bf16.vlgmr.msra.gmra.mrb[8].mxu0 %v6450_v27  ;;  %1750 = vmatmul.mubr.bf16.vlgmr.msra.gmra.mrb[16].mxu1 %v6450_v27  ;;  %8155 = vst [vmem:[#allocation27_spill] sm:$0xff] %v6495_v24 }
 0x2af   :  { %1818 = vmatpush1.bf16.msra.mxu0 %v6196_v0  ;;  %1861 = vmatpush1.bf16.msra.mxu1 %v6198_v57 }
 0x2b0   :  { %1819 = vmatprep.subr.bf16.mxu0 %v6202_v31  ;;  %1862 = vmatprep.subr.bf16.mxu1 %v6204_v56 }
 0x2b1   :  { %1849 = vmatprep.mubr.bf16.mxu0 %v8095_v45  ;;  %1892 = vmatprep.mubr.bf16.mxu1 %v8095_v45 }
 0x2b3   :  { %1820 = vmatpush1.bf16.msra.mxu0 %v6210_v25  ;;  %1863 = vmatpush1.bf16.msra.mxu1 %v6212_v44 }
 0x2b4   :  { %1821 = vmatprep.subr.bf16.mxu0 %v6216_v41  ;;  %1864 = vmatprep.subr.bf16.mxu1 %v6218_v58 }
 0x2b7   :  { %1822 = vmatpush1.bf16.msra.mxu0 %v6224_v63  ;;  %1865 = vmatpush1.bf16.msra.mxu1 %v6226_v61 }
 0x2b8   :  { %1823 = vmatprep.subr.bf16.mxu0 %v8144_v33  ;;  %1866 = vmatprep.subr.bf16.mxu1 %v8145_v34 }
 0x2ba   :  { %v1557_v35 = vpop.f32.mrb[24].mxu0  ;;  %v1600_v36 = vpop.f32.mrb[40].mxu1 }
 0x2bb   :  { %v1609_v37 = vadd.f32 %v1557_v35, %v6469_v29  ;;  %v1559_v38 = vpop.f32.mrb[25].mxu0  ;;  %v1602_v39 = vpop.f32.mrb[41].mxu1  ;;  %1824 = vmatpush1.bf16.msra.mxu0 %v8146_v46  ;;  %1867 = vmatpush1.bf16.msra.mxu1 %v8147_v48  ;;  %v8158_v35 = vld [vmem:[#allocation36_spill] sm:$0xff] }
 0x2bc   :  { %v1610_v40 = vadd.f32 %v1559_v38, %v6473_v32  ;;  %v1561_v42 = vpop.f32.mrb[26].mxu0  ;;  %v1604_v43 = vpop.f32.mrb[42].mxu1  ;;  %1825 = vmatprep.subr.bf16.mxu0 %v8148_v10  ;;  %1868 = vmatprep.subr.bf16.mxu1 %v8149_v12  ;;  %v1612_v30 = vadd.f32 %v1602_v39, %v6488_v16  ;;  %v1611_v38 = vadd.f32 %v1600_v36, %v6495_v24  ;;  %v8163_v39 = vld [vmem:[#allocation41_spill] sm:$0xff] }
 0x2bd   :  { %v4446_v49 = vmul.f32 -1.442695, %v1609_v37  ;;  %v1613_v60 = vadd.f32 %v1561_v42, %v6469_v29  ;;  %v1563_v8 = vpop.f32.mrb[27].mxu0  ;;  %v1606_v9 = vpop.f32.mrb[43].mxu1  ;;  %v8159_v37 = vld [vmem:[#allocation37_spill] sm:$0xff]  ;;  %v8161_v42 = vld [vmem:[#allocation39_spill] sm:$0xff] }
 0x2be   :  { %v4448_v13 = vmul.f32 -1.442695, %v1610_v40  ;;  %v1614_v18 = vadd.f32 %v1563_v8, %v6473_v32  ;;  %v8160_v40 = vld [vmem:[#allocation38_spill] sm:$0xff]  ;;  %v4450_v59 = vmul.f32 -1.442695, %v1612_v30  ;;  %v1616_v1 = vadd.f32 %v1606_v9, %v6488_v16  ;;  %v8167_v30 = vld [vmem:[#allocation47_spill] sm:$0xff] }
 0x2bf   :  { %5005 = vpow2.f32 %v4446_v49  ;;  %v4447_v19 = vmul.f32 -1.442695, %v1613_v60  ;;  %1826 = vmatpush1.bf16.msra.mxu0 %v8152_v22  ;;  %1869 = vmatpush1.bf16.msra.mxu1 %v8153_v11  ;;  %v1615_v49 = vadd.f32 %v1604_v43, %v6495_v24  ;;  %v8162_v60 = vld [vmem:[#allocation40_spill] sm:$0xff]  ;;  %v8166_v9 = vld [vmem:[#allocation46_spill] sm:$0xff] }
 0x2c0   :  { %5007 = vpow2.f32 %v4448_v13  ;;  %v4449_v21 = vmul.f32 -1.442695, %v1614_v18  ;;  %1827 = vmatprep.subr.bf16.mxu0 %v8156_v26  ;;  %1870 = vmatprep.subr.bf16.mxu1 %v8157_v28  ;;  %v8164_v13 = vld [vmem:[#allocation42_spill] sm:$0xff] }
 0x2c1   :  { %5009 = vpow2.f32 %v4447_v19  ;;  %v4451_v19 = vmul.f32 -1.442695, %v1616_v1 }
 0x2c2   :  { %5011 = vpow2.f32 %v4449_v21 }
 0x2c3   :  { %1828 = vmatpush1.bf16.msra.mxu0 %v8158_v35  ;;  %1871 = vmatpush1.bf16.msra.mxu1 %v8159_v37  ;;  %5013 = vtanh.f32 %v1611_v38 }
 0x2c4   :  { %1829 = vmatprep.subr.bf16.mxu0 %v8160_v40  ;;  %1872 = vmatprep.subr.bf16.mxu1 %v8161_v42  ;;  %5015 = vpow2.f32 %v4450_v59 }
 0x2c5   :  { %5017 = vtanh.f32 %v1615_v49 }
 0x2c7   :  { %1830 = vmatpush1.bf16.msra.mxu0 %v8162_v60  ;;  %1873 = vmatpush1.bf16.msra.mxu1 %v8163_v39 }
 0x2c8   :  { %1831 = vmatprep.subr.bf16.mxu0 %v8164_v13  ;;  %1874 = vmatprep.subr.bf16.mxu1 %v8165_v15 }
 0x2c9   :  { %v5006_v8 = vpop.eup %5005 }
 0x2ca   :  { %v5008_v36 = vpop.eup %5007  ;;  %v1623_v18 = vadd.f32 1.0, %v5006_v8 }
 0x2cb   :  { %v1635_v21 = vadd.f32 1.0, %v5008_v36  ;;  %v5010_v23 = vpop.eup %5009  ;;  %1832 = vmatpush1.bf16.msra.mxu0 %v6282_v51  ;;  %1875 = vmatpush1.bf16.msra.mxu1 %v6286_v50  ;;  %v555_v36 = vld [vmem:[#allocation3 + $0x10] sm:$0xff]  ;;  %v556_v50 = vld [vmem:[#allocation3 + $0x18] sm:$0xff] }
 0x2cc   :  { %5019 = vrcp.f32 %v1623_v18  ;;  %v1624_v43 = vadd.f32 1.0, %v5010_v23  ;;  %1903 = vmatprep.subr.bf16.mxu0 %v8166_v9  ;;  %1946 = vmatprep.subr.bf16.mxu1 %v8167_v30  ;;  %v5012_v38 = vpop.eup %5011 }
 0x2cd   :  { %5021 = vrcp.f32 %v1635_v21  ;;  %v1636_v8 = vadd.f32 1.0, %v5012_v38  ;;  %v5014_v59 = vpop.eup %5013 }
 0x2ce   :  { %5023 = vpow2.f32 %v4451_v19  ;;  %v5016_v1 = vpop.eup %5015 }
 0x2cf   :  { %5025 = vrcp.f32 %v1624_v43  ;;  %v5018_v49 = vpop.eup %5017  ;;  %v1649_v23 = vadd.f32 1.0, %v5016_v1 }
 0x2d0   :  { %5027 = vrcp.f32 %v1636_v8 }
 0x2d1   :  { %5029 = vrcp.f32 %v1649_v23  ;;  %v8175_v23 = vld [vmem:[#allocation55_spill] sm:$0xff] }
 0x2d6   :  { %v5020_v18 = vpop.eup %5019 }
 0x2d7   :  { %v5022_v24 = vpop.eup %5021  ;;  %v1657_v16 = vmul.f32 %v5020_v18, %v5014_v59 }
 0x2d8   :  { %v5024_v32 = vpop.eup %5023  ;;  %v1655_v29 = vmul.f32 %v5022_v24, %v555_v36 }
 0x2d9   :  { %v5026_v21 = vpop.eup %5025  ;;  %v1650_v19 = vadd.f32 1.0, %v5024_v32  ;;  %v8171_v32 = vld [vmem:[#allocation51_spill] sm:$0xff] }
 0x2da   :  { %v6515_v9 = vadd.f32 %v1657_v16, %v1655_v29  ;;  %v1658_v30 = vmul.f32 %v5026_v21, %v5018_v49  ;;  %v5028_v51 = vpop.eup %5027  ;;  %v8168_v16 = vld [vmem:[#allocation48_spill] sm:$0xff]  ;;  %v8173_v49 = vld [vmem:[#allocation53_spill] sm:$0xff]  ;;  %v8174_v21 = vld [vmem:[#allocation54_spill] sm:$0xff] }
 0x2db   :  { %v1656_v43 = vmul.f32 %v5028_v51, %v556_v50  ;;  %v5030_v8 = vpop.eup %5029  ;;  %v8169_v50 = vld [vmem:[#allocation49_spill] sm:$0xff]  ;;  %v8170_v51 = vld [vmem:[#allocation50_spill] sm:$0xff] }
 0x2dc   :  { %5031 = vtanh.f32 %v6515_v9 }
 0x2dd   :  { %v6518_v38 = vadd.f32 %v1658_v30, %v1656_v43  ;;  %5033 = vrcp.f32 %v1650_v19  ;;  %v8172_v30 = vld [vmem:[#allocation52_spill] sm:$0xff]  ;;  %v8177_v43 = vld [vmem:[#allocation57_spill] sm:$0xff] }
 0x2de   :  { %v8176_v19 = vld [vmem:[#allocation56_spill] sm:$0xff] }
 0x2df   :  { %5035 = vtanh.f32 %v6518_v38 }
 0x2e6   :  { %v5032_v59 = vpop.eup %5031 }
 0x2e7   :  { %v5034_v24 = vpop.eup %5033  ;;  %v1663_v1 = vmul.f32 %v5032_v59, %v5030_v8  ;;  %v8178_v8 = vld [vmem:[#allocation58_spill] sm:$0xff]  ;;  %v8179_v59 = vld [vmem:[#allocation59_spill] sm:$0xff] }
 0x2e9   :  { %v5036_v36 = vpop.eup %5035 }
 0x2ea   :  { %v1664_v18 = vmul.f32 %v5036_v36, %v5034_v24  ;;  %v8180_v24 = vld [vmem:[#allocation60_spill] sm:$0xff]  ;;  %v8181_v36 = vld [vmem:[#allocation61_spill] sm:$0xff] }
 0x2ec   :  { %v1665_v29 = vpack.c.bf16 %v1664_v18, %v1663_v1  ;;  %v8182_v1 = vld [vmem:[#allocation62_spill] sm:$0xff]  ;;  %v8183_v18 = vld [vmem:[#allocation63_spill] sm:$0xff] }
 0x2ee   :  { %1850 = vmatmul.mubr.bf16.vlgmr.msra.gmra.mrb[28].mxu0 %v1665_v29  ;;  %1893 = vmatmul.mubr.bf16.vlgmr.msra.gmra.mrb[44].mxu1 %v1665_v29  ;;  %v8184_v29 = vld [vmem:[#allocation64_spill] sm:$0xff] }
 0x2ef   :  { %1904 = vmatpush1.bf16.msra.mxu0 %v8168_v16  ;;  %1947 = vmatpush1.bf16.msra.mxu1 %v8169_v50  ;;  %v8185_v16 = vld [vmem:[#allocation65_spill] sm:$0xff]  ;;  %v8186_v50 = vld [vmem:[#allocation66_spill] sm:$0xff] }
 0x2f0   :  { %1905 = vmatprep.subr.bf16.mxu0 %v8170_v51  ;;  %1948 = vmatprep.subr.bf16.mxu1 %v8171_v32  ;;  %v8187_v51 = vld [vmem:[#allocation67_spill] sm:$0xff]  ;;  %v8188_v32 = vld [vmem:[#allocation68_spill] sm:$0xff] }
 0x2f1   :  { %1935 = vmatprep.mubr.bf16.mxu0 %v8095_v45  ;;  %1978 = vmatprep.mubr.bf16.mxu1 %v8095_v45 }
 0x2f3   :  { %1906 = vmatpush1.bf16.msra.mxu0 %v8172_v30  ;;  %1949 = vmatpush1.bf16.msra.mxu1 %v8173_v49  ;;  %v6553_v30 = vld [vmem:[#allocation8 + $0x4] ss:$16 sps:$4 sm:$0xff]   ;;  %v6556_v49 = vld [vmem:[#allocation8 + $0xc] ss:$16 sps:$4 sm:$0xff]  }
 0x2f4   :  { %1907 = vmatprep.subr.bf16.mxu0 %v8174_v21  ;;  %1950 = vmatprep.subr.bf16.mxu1 %v8175_v23  ;;  %8189 = vst [vmem:[#allocation28_spill] sm:$0xff] %v6553_v30  ;;  %8190 = vst [vmem:[#allocation29_spill] sm:$0xff] %v6556_v49  ;;  %v6561_v21 = vld [vmem:[#allocation8] ss:$16 sps:$4 sm:$0xff]   ;;  %v6564_v23 = vld [vmem:[#allocation8 + $0x8] ss:$16 sps:$4 sm:$0xff]  }
 0x2f5   :  { %8191 = vst [vmem:[#allocation30_spill] sm:$0xff] %v6561_v21  ;;  %8192 = vst [vmem:[#allocation31_spill] sm:$0xff] %v6564_v23 }
 0x2f7   :  { %1908 = vmatpush1.bf16.msra.mxu0 %v8176_v19  ;;  %1951 = vmatpush1.bf16.msra.mxu1 %v8177_v43  ;;  %v6567_v19 = vld [vmem:[#allocation8 + $0x24] ss:$16 sps:$4 sm:$0xff]   ;;  %v6570_v43 = vld [vmem:[#allocation8 + $0x2c] ss:$16 sps:$4 sm:$0xff]  }
 0x2f8   :  { %1909 = vmatprep.subr.bf16.mxu0 %v8178_v8  ;;  %1952 = vmatprep.subr.bf16.mxu1 %v8179_v59  ;;  %8193 = vst [vmem:[#allocation32_spill] sm:$0xff] %v6567_v19  ;;  %8194 = vst [vmem:[#allocation33_spill] sm:$0xff] %v6570_v43  ;;  %v6578_v8 = vld [vmem:[#allocation8 + $0x28] ss:$16 sps:$4 sm:$0xff]   ;;  %v6581_v59 = vld [vmem:[#allocation8 + $0x44] ss:$16 sps:$4 sm:$0xff]  }
 0x2f9   :  { %8196 = vst [vmem:[#allocation35_spill] sm:$0xff] %v6578_v8  ;;  %8197 = vst [vmem:[#allocation36_spill] sm:$0xff] %v6581_v59 }
 0x2fb   :  { %1910 = vmatpush1.bf16.msra.mxu0 %v8180_v24  ;;  %1953 = vmatpush1.bf16.msra.mxu1 %v8181_v36  ;;  %v6584_v24 = vld [vmem:[#allocation8 + $0x4c] ss:$16 sps:$4 sm:$0xff]   ;;  %v6587_v36 = vld [vmem:[#allocation8 + $0x40] ss:$16 sps:$4 sm:$0xff]  }
 0x2fc   :  { %1911 = vmatprep.subr.bf16.mxu0 %v8182_v1  ;;  %1954 = vmatprep.subr.bf16.mxu1 %v8183_v18  ;;  %8198 = vst [vmem:[#allocation37_spill] sm:$0xff] %v6584_v24  ;;  %8199 = vst [vmem:[#allocation38_spill] sm:$0xff] %v6587_v36  ;;  %v6590_v1 = vld [vmem:[#allocation8 + $0x48] ss:$16 sps:$4 sm:$0xff]   ;;  %v6593_v18 = vld [vmem:[#allocation8 + $0x64] ss:$16 sps:$4 sm:$0xff]  }
 0x2fd   :  { %8200 = vst [vmem:[#allocation39_spill] sm:$0xff] %v6590_v1  ;;  %8201 = vst [vmem:[#allocation40_spill] sm:$0xff] %v6593_v18 }
 0x2ff   :  { %1912 = vmatpush1.bf16.msra.mxu0 %v8184_v29  ;;  %1955 = vmatpush1.bf16.msra.mxu1 %v8185_v16  ;;  %v6596_v29 = vld [vmem:[#allocation8 + $0x6c] ss:$16 sps:$4 sm:$0xff]   ;;  %v6599_v16 = vld [vmem:[#allocation8 + $0x60] ss:$16 sps:$4 sm:$0xff]  }
 0x300   :  { %1913 = vmatprep.subr.bf16.mxu0 %v8186_v50  ;;  %1956 = vmatprep.subr.bf16.mxu1 %v8187_v51  ;;  %8202 = vst [vmem:[#allocation41_spill] sm:$0xff] %v6596_v29  ;;  %8203 = vst [vmem:[#allocation42_spill] sm:$0xff] %v6599_v16  ;;  %v6602_v50 = vld [vmem:[#allocation8 + $0x68] ss:$16 sps:$4 sm:$0xff]   ;;  %v6605_v51 = vld [vmem:[#allocation8 + $0x84] ss:$16 sps:$4 sm:$0xff]  }
 0x301   :  { %8204 = vst [vmem:[#allocation43_spill] sm:$0xff] %v6602_v50  ;;  %8205 = vst [vmem:[#allocation48_spill] sm:$0xff] %v6605_v51 }
 0x303   :  { %1914 = vmatpush1.bf16.msra.mxu0 %v8188_v32  ;;  %1957 = vmatpush1.bf16.msra.mxu1 %v6366_v54 }
 0x304   :  { %1915 = vmatprep.subr.bf16.mxu0 %v6370_v17  ;;  %1958 = vmatprep.subr.bf16.mxu1 %v6372_v47 }
 0x307   :  { %1916 = vmatpush1.bf16.msra.mxu0 %v6376_v6  ;;  %1959 = vmatpush1.bf16.msra.mxu1 %v6378_v62 }
 0x308   :  { %1917 = vmatprep.subr.bf16.mxu0 %v6382_v55  ;;  %1960 = vmatprep.subr.bf16.mxu1 %v6384_v3 }
 0x30b   :  { %1918 = vmatpush1.bf16.msra.mxu0 %v6388_v52  ;;  %1961 = vmatpush1.bf16.msra.mxu1 %v6390_v53 }
 0x30c   :  { %2054 = vmatprep.subr.bf16.mxu0 %v6553_v30  ;;  %2097 = vmatprep.subr.bf16.mxu1 %v6556_v49 }
 0x30e   :  { %1936 = vmatmul.mubr.bf16.vlgmr.msra.gmra.mrb[28].mxu0 %v6450_v27  ;;  %1979 = vmatmul.mubr.bf16.vlgmr.msra.gmra.mrb[44].mxu1 %v6450_v27  ;;  %v6575_v27 = vld [vmem:[#allocation8 + $0x20] ss:$16 sps:$4 sm:$0xff]  }
 0x30f   :  { %2055 = vmatpush1.bf16.msra.mxu0 %v6561_v21  ;;  %2098 = vmatpush1.bf16.msra.mxu1 %v6564_v23  ;;  %8195 = vst [vmem:[#allocation34_spill] sm:$0xff] %v6575_v27 }
 0x310   :  { %2056 = vmatprep.subr.bf16.mxu0 %v6567_v19  ;;  %2099 = vmatprep.subr.bf16.mxu1 %v6570_v43 }
 0x311   :  { %2086 = vmatprep.mubr.bf16.mxu0 %v8095_v45  ;;  %2129 = vmatprep.mubr.bf16.mxu1 %v8095_v45 }
 0x313   :  { %2057 = vmatpush1.bf16.msra.mxu0 %v6575_v27  ;;  %2100 = vmatpush1.bf16.msra.mxu1 %v6578_v8 }
 0x314   :  { %2058 = vmatprep.subr.bf16.mxu0 %v6581_v59  ;;  %2101 = vmatprep.subr.bf16.mxu1 %v6584_v24 }
 0x317   :  { %2059 = vmatpush1.bf16.msra.mxu0 %v6587_v36  ;;  %2102 = vmatpush1.bf16.msra.mxu1 %v6590_v1  ;;  %v6608_v1 = vld [vmem:[#allocation8 + $0x8c] ss:$16 sps:$4 sm:$0xff]  }
 0x318   :  { %2060 = vmatprep.subr.bf16.mxu0 %v6593_v18  ;;  %2103 = vmatprep.subr.bf16.mxu1 %v6596_v29  ;;  %8206 = vst [vmem:[#allocation49_spill] sm:$0xff] %v6608_v1  ;;  %v6611_v18 = vld [vmem:[#allocation8 + $0x80] ss:$16 sps:$4 sm:$0xff]   ;;  %v6614_v29 = vld [vmem:[#allocation8 + $0x88] ss:$16 sps:$4 sm:$0xff]  }
 0x319   :  { %8207 = vst [vmem:[#allocation50_spill] sm:$0xff] %v6611_v18  ;;  %8208 = vst [vmem:[#allocation51_spill] sm:$0xff] %v6614_v29 }
 0x31b   :  { %2061 = vmatpush1.bf16.msra.mxu0 %v6599_v16  ;;  %2104 = vmatpush1.bf16.msra.mxu1 %v6602_v50  ;;  %v6617_v16 = vld [vmem:[#allocation8 + $0xa4] ss:$16 sps:$4 sm:$0xff]   ;;  %v6620_v50 = vld [vmem:[#allocation8 + $0xac] ss:$16 sps:$4 sm:$0xff]  }
 0x31c   :  { %2062 = vmatprep.subr.bf16.mxu0 %v6605_v51  ;;  %2105 = vmatprep.subr.bf16.mxu1 %v6608_v1  ;;  %8209 = vst [vmem:[#allocation52_spill] sm:$0xff] %v6617_v16  ;;  %8210 = vst [vmem:[#allocation53_spill] sm:$0xff] %v6620_v50  ;;  %v6623_v51 = vld [vmem:[#allocation8 + $0xa0] ss:$16 sps:$4 sm:$0xff]   ;;  %v6626_v1 = vld [vmem:[#allocation8 + $0xa8] ss:$16 sps:$4 sm:$0xff]  }
 0x31d   :  { %8211 = vst [vmem:[#allocation54_spill] sm:$0xff] %v6623_v51  ;;  %8212 = vst [vmem:[#allocation55_spill] sm:$0xff] %v6626_v1 }
 0x31f   :  { %2063 = vmatpush1.bf16.msra.mxu0 %v6611_v18  ;;  %2106 = vmatpush1.bf16.msra.mxu1 %v6614_v29  ;;  %v6629_v18 = vld [vmem:[#allocation8 + $0xc4] ss:$16 sps:$4 sm:$0xff]   ;;  %v6632_v29 = vld [vmem:[#allocation8 + $0xcc] ss:$16 sps:$4 sm:$0xff]  }
 0x320   :  { %2064 = vmatprep.subr.bf16.mxu0 %v6617_v16  ;;  %2107 = vmatprep.subr.bf16.mxu1 %v6620_v50  ;;  %8213 = vst [vmem:[#allocation56_spill] sm:$0xff] %v6629_v18  ;;  %8214 = vst [vmem:[#allocation57_spill] sm:$0xff] %v6632_v29  ;;  %v6635_v16 = vld [vmem:[#allocation8 + $0xc0] ss:$16 sps:$4 sm:$0xff]   ;;  %v6638_v50 = vld [vmem:[#allocation8 + $0xc8] ss:$16 sps:$4 sm:$0xff]  }
 0x321   :  { %8215 = vst [vmem:[#allocation58_spill] sm:$0xff] %v6635_v16  ;;  %8216 = vst [vmem:[#allocation59_spill] sm:$0xff] %v6638_v50 }
 0x323   :  { %2065 = vmatpush1.bf16.msra.mxu0 %v6623_v51  ;;  %2108 = vmatpush1.bf16.msra.mxu1 %v6626_v1  ;;  %v6641_v51 = vld [vmem:[#allocation8 + $0xe4] ss:$16 sps:$4 sm:$0xff]   ;;  %v6644_v1 = vld [vmem:[#allocation8 + $0xec] ss:$16 sps:$4 sm:$0xff]  }
 0x324   :  { %2066 = vmatprep.subr.bf16.mxu0 %v6629_v18  ;;  %2109 = vmatprep.subr.bf16.mxu1 %v6632_v29  ;;  %8217 = vst [vmem:[#allocation60_spill] sm:$0xff] %v6641_v51  ;;  %8218 = vst [vmem:[#allocation61_spill] sm:$0xff] %v6644_v1  ;;  %v6647_v18 = vld [vmem:[#allocation8 + $0xe0] ss:$16 sps:$4 sm:$0xff]   ;;  %v6650_v29 = vld [vmem:[#allocation8 + $0xe8] ss:$16 sps:$4 sm:$0xff]  }
 0x325   :  { %8219 = vst [vmem:[#allocation62_spill] sm:$0xff] %v6647_v18  ;;  %8220 = vst [vmem:[#allocation63_spill] sm:$0xff] %v6650_v29 }
 0x327   :  { %2067 = vmatpush1.bf16.msra.mxu0 %v6635_v16  ;;  %2110 = vmatpush1.bf16.msra.mxu1 %v6638_v50  ;;  %v6653_v16 = vld [vmem:[#allocation11 + $0x4] ss:$16 sps:$4 sm:$0xff]   ;;  %v6656_v50 = vld [vmem:[#allocation11 + $0xc] ss:$16 sps:$4 sm:$0xff]  }
 0x328   :  { %2068 = vmatprep.subr.bf16.mxu0 %v6641_v51  ;;  %2111 = vmatprep.subr.bf16.mxu1 %v6644_v1  ;;  %8221 = vst [vmem:[#allocation64_spill] sm:$0xff] %v6653_v16  ;;  %8222 = vst [vmem:[#allocation65_spill] sm:$0xff] %v6656_v50 }
 0x32b   :  { %2069 = vmatpush1.bf16.msra.mxu0 %v6647_v18  ;;  %2112 = vmatpush1.bf16.msra.mxu1 %v6650_v29 }
 0x32c   :  { %2197 = vmatprep.subr.bf16.mxu0 %v6653_v16  ;;  %2240 = vmatprep.subr.bf16.mxu1 %v6656_v50 }
 0x381   :  { %v1708_v51 = vpop.f32.mrb[8].mxu0  ;;  %v1751_v36 = vpop.f32.mrb[16].mxu1 }
 0x382   :  { %v4578_v1 = vadd.f32 %v1708_v51, %v6166_v4  ;;  %v1710_v24 = vpop.f32.mrb[9].mxu0  ;;  %v1753_v59 = vpop.f32.mrb[17].mxu1 }
 0x383   :  { %v4579_v18 = vadd.f32 %v1710_v24, %v6170_v5  ;;  %v1712_v8 = vpop.f32.mrb[10].mxu0  ;;  %v1755_v27 = vpop.f32.mrb[18].mxu1  ;;  %v4619_v51 = vadd.f32 %v1753_v59, %v6184_v7  ;;  %v4618_v24 = vadd.f32 %v1751_v36, %v6180_v2 }
 0x384   :  { %v4452_v43 = vmul.f32 -1.442695, %v4578_v1  ;;  %v4580_v29 = vadd.f32 %v1712_v8, %v6166_v4  ;;  %v1714_v19 = vpop.f32.mrb[11].mxu0  ;;  %v1757_v23 = vpop.f32.mrb[19].mxu1  ;;  %v4620_v8 = vadd.f32 %v1755_v27, %v6180_v2 }
 0x385   :  { %v4454_v16 = vmul.f32 -1.442695, %v4579_v18  ;;  %v4581_v21 = vadd.f32 %v1714_v19, %v6170_v5  ;;  %v4456_v30 = vmul.f32 -1.442695, %v4619_v51  ;;  %v4621_v1 = vadd.f32 %v1757_v23, %v6184_v7 }
 0x386   :  { %5037 = vpow2.f32 %v4452_v43  ;;  %v4453_v50 = vmul.f32 -1.442695, %v4580_v29 }
 0x387   :  { %5039 = vpow2.f32 %v4454_v16  ;;  %v4455_v49 = vmul.f32 -1.442695, %v4581_v21  ;;  %v4457_v19 = vmul.f32 -1.442695, %v4621_v1 }
 0x388   :  { %5041 = vpow2.f32 %v4453_v50 }
 0x389   :  { %5043 = vpow2.f32 %v4455_v49 }
 0x38a   :  { %5045 = vtanh.f32 %v4618_v24 }
 0x38b   :  { %5047 = vpow2.f32 %v4456_v30 }
 0x38c   :  { %5049 = vtanh.f32 %v4620_v8 }
 0x390   :  { %v5038_v4 = vpop.eup %5037 }
 0x391   :  { %v5040_v18 = vpop.eup %5039  ;;  %v1774_v53 = vadd.f32 1.0, %v5038_v4 }
 0x392   :  { %v1786_v43 = vadd.f32 1.0, %v5040_v18  ;;  %v5042_v21 = vpop.eup %5041 }
 0x393   :  { %5051 = vrcp.f32 %v1774_v53  ;;  %v1775_v59 = vadd.f32 1.0, %v5042_v21  ;;  %v5044_v49 = vpop.eup %5043 }
 0x394   :  { %5053 = vrcp.f32 %v1786_v43  ;;  %v1787_v36 = vadd.f32 1.0, %v5044_v49  ;;  %v5046_v23 = vpop.eup %5045 }
 0x395   :  { %5055 = vpow2.f32 %v4457_v19  ;;  %v5048_v29 = vpop.eup %5047 }
 0x396   :  { %5057 = vrcp.f32 %v1775_v59  ;;  %v5050_v27 = vpop.eup %5049  ;;  %v1800_v1 = vadd.f32 1.0, %v5048_v29 }
 0x397   :  { %5059 = vrcp.f32 %v1787_v36 }
 0x398   :  { %5061 = vrcp.f32 %v1800_v1 }
 0x39d   :  { %v5052_v16 = vpop.eup %5051 }
 0x39e   :  { %v5054_v50 = vpop.eup %5053  ;;  %v1808_v51 = vmul.f32 %v5052_v16, %v5046_v23 }
 0x39f   :  { %v5056_v4 = vpop.eup %5055  ;;  %v1806_v30 = vmul.f32 %v5054_v50, %v6443_v14 }
 0x3a0   :  { %v5058_v24 = vpop.eup %5057  ;;  %v1801_v43 = vadd.f32 1.0, %v5056_v4 }
 0x3a1   :  { %v6668_v8 = vadd.f32 %v1808_v51, %v1806_v30  ;;  %v1809_v53 = vmul.f32 %v5058_v24, %v5050_v27  ;;  %v5060_v18 = vpop.eup %5059 }
 0x3a2   :  { %v1807_v19 = vmul.f32 %v5060_v18, %v6447_v20  ;;  %v5062_v59 = vpop.eup %5061  ;;  %v8228_v20 = vld [vmem:[#allocation71_spill] sm:$0xff] }
 0x3a3   :  { %5063 = vtanh.f32 %v6668_v8 }
 0x3a4   :  { %v6672_v21 = vadd.f32 %v1809_v53, %v1807_v19  ;;  %5065 = vrcp.f32 %v1801_v43 }
 0x3a6   :  { %5067 = vtanh.f32 %v6672_v21 }
 0x3ad   :  { %v5064_v49 = vpop.eup %5063 }
 0x3ae   :  { %v5066_v14 = vpop.eup %5065  ;;  %v1814_v23 = vmul.f32 %v5064_v49, %v5062_v59 }
 0x3b0   :  { %v5068_v36 = vpop.eup %5067 }
 0x3b1   :  { %v1815_v29 = vmul.f32 %v5068_v36, %v5066_v14 }
 0x3b3   :  { %v6675_v16 = vpack.c.bf16 %v1815_v29, %v1814_v23 }
 0x3b5   :  { %2087 = vmatmul.mubr.bf16.vlgmr.msra.gmra.mrb[12].mxu0 %v6675_v16  ;;  %2130 = vmatmul.mubr.bf16.vlgmr.msra.gmra.mrb[20].mxu1 %v6675_v16 }
 0x3b6   :  { %2198 = vmatpush1.bf16.msra.mxu0 %v6196_v0  ;;  %2241 = vmatpush1.bf16.msra.mxu1 %v6198_v57  ;;  %v8223_v0 = vld [vmem:[#allocation44_spill] sm:$0xff]  ;;  %v8224_v57 = vld [vmem:[#allocation45_spill] sm:$0xff] }
 0x3b7   :  { %2199 = vmatprep.subr.bf16.mxu0 %v6202_v31  ;;  %2242 = vmatprep.subr.bf16.mxu1 %v6204_v56  ;;  %v8225_v31 = vld [vmem:[#allocation46_spill] sm:$0xff]  ;;  %v8226_v56 = vld [vmem:[#allocation47_spill] sm:$0xff] }
 0x3b8   :  { %2229 = vmatprep.mubr.bf16.mxu0 %v8095_v45  ;;  %2272 = vmatprep.mubr.bf16.mxu1 %v8095_v45 }
 0x3ba   :  { %2200 = vmatpush1.bf16.msra.mxu0 %v6210_v25  ;;  %2243 = vmatpush1.bf16.msra.mxu1 %v6212_v44 }
 0x3bb   :  { %2201 = vmatprep.subr.bf16.mxu0 %v6216_v41  ;;  %2244 = vmatprep.subr.bf16.mxu1 %v6218_v58  ;;  %v8227_v41 = vld [vmem:[#allocation70_spill] sm:$0xff] }
 0x3be   :  { %2202 = vmatpush1.bf16.msra.mxu0 %v6224_v63  ;;  %2245 = vmatpush1.bf16.msra.mxu1 %v6226_v61 }
 0x3bf   :  { %2203 = vmatprep.subr.bf16.mxu0 %v8144_v33  ;;  %2246 = vmatprep.subr.bf16.mxu1 %v8145_v34 }
 0x3c2   :  { %2204 = vmatpush1.bf16.msra.mxu0 %v8146_v46  ;;  %2247 = vmatpush1.bf16.msra.mxu1 %v8147_v48 }
 0x3c3   :  { %2205 = vmatprep.subr.bf16.mxu0 %v8148_v10  ;;  %2248 = vmatprep.subr.bf16.mxu1 %v8149_v12 }
 0x3c6   :  { %2206 = vmatpush1.bf16.msra.mxu0 %v8152_v22  ;;  %2249 = vmatpush1.bf16.msra.mxu1 %v8153_v11 }
 0x3c7   :  { %2207 = vmatprep.subr.bf16.mxu0 %v8156_v26  ;;  %2250 = vmatprep.subr.bf16.mxu1 %v8157_v28 }
 0x3ca   :  { %2208 = vmatpush1.bf16.msra.mxu0 %v8158_v35  ;;  %2251 = vmatpush1.bf16.msra.mxu1 %v8159_v37  ;;  %v8229_v37 = vld [vmem:[#allocation26_spill] sm:$0xff] }
 0x3cb   :  { %2209 = vmatprep.subr.bf16.mxu0 %v8160_v40  ;;  %2252 = vmatprep.subr.bf16.mxu1 %v8161_v42  ;;  %v8230_v42 = vld [vmem:[#allocation27_spill] sm:$0xff] }
 0x3ce   :  { %2210 = vmatpush1.bf16.msra.mxu0 %v8162_v60  ;;  %2253 = vmatpush1.bf16.msra.mxu1 %v8163_v39 }
 0x3cf   :  { %2211 = vmatprep.subr.bf16.mxu0 %v8164_v13  ;;  %2254 = vmatprep.subr.bf16.mxu1 %v8165_v15 }
 0x3d2   :  { %2212 = vmatpush1.bf16.msra.mxu0 %v8223_v0  ;;  %2255 = vmatpush1.bf16.msra.mxu1 %v8224_v57 }
 0x3d3   :  { %2283 = vmatprep.subr.bf16.mxu0 %v8225_v31  ;;  %2326 = vmatprep.subr.bf16.mxu1 %v8226_v56 }
 0x3e1   :  { %v1937_v25 = vpop.f32.mrb[28].mxu0  ;;  %v1980_v44 = vpop.f32.mrb[44].mxu1 }
 0x3e2   :  { %v1989_v58 = vadd.f32 %v1937_v25, %v8227_v41  ;;  %v1939_v63 = vpop.f32.mrb[29].mxu0  ;;  %v1982_v61 = vpop.f32.mrb[45].mxu1  ;;  %v1991_v60 = vadd.f32 %v1980_v44, %v8230_v42 }
 0x3e3   :  { %v1990_v33 = vadd.f32 %v1939_v63, %v8228_v20  ;;  %v1941_v34 = vpop.f32.mrb[30].mxu0  ;;  %v1984_v46 = vpop.f32.mrb[46].mxu1  ;;  %v1992_v40 = vadd.f32 %v1982_v61, %v8229_v37 }
 0x3e4   :  { %v4458_v48 = vmul.f32 -1.442695, %v1989_v58  ;;  %v1993_v10 = vadd.f32 %v1941_v34, %v8227_v41  ;;  %v1943_v12 = vpop.f32.mrb[31].mxu0  ;;  %v1986_v22 = vpop.f32.mrb[47].mxu1  ;;  %v1995_v15 = vadd.f32 %v1984_v46, %v8230_v42 }
 0x3e5   :  { %v4460_v11 = vmul.f32 -1.442695, %v1990_v33  ;;  %v1994_v26 = vadd.f32 %v1943_v12, %v8228_v20  ;;  %v4462_v39 = vmul.f32 -1.442695, %v1992_v40  ;;  %v1996_v13 = vadd.f32 %v1986_v22, %v8229_v37  ;;  %v6729_v12 = vld [vmem:[#allocation9] ss:$16 sps:$4 sm:$0xff]  }
 0x3e6   :  { %5069 = vpow2.f32 %v4458_v48  ;;  %v4459_v28 = vmul.f32 -1.442695, %v1993_v10  ;;  %v6735_v22 = vld [vmem:[#allocation9 + $0x24] ss:$16 sps:$4 sm:$0xff]   ;;  %v6752_v40 = vld [vmem:[#allocation9 + $0x4c] ss:$16 sps:$4 sm:$0xff]  }
 0x3e7   :  { %5071 = vpow2.f32 %v4460_v11  ;;  %v4461_v35 = vmul.f32 -1.442695, %v1994_v26  ;;  %v4463_v4 = vmul.f32 -1.442695, %v1996_v13  ;;  %v6738_v11 = vld [vmem:[#allocation9 + $0x2c] ss:$16 sps:$4 sm:$0xff]  }
 0x3e8   :  { %5073 = vpow2.f32 %v4459_v28  ;;  %v6743_v26 = vld [vmem:[#allocation9 + $0x20] ss:$16 sps:$4 sm:$0xff]   ;;  %v6746_v28 = vld [vmem:[#allocation9 + $0x28] ss:$16 sps:$4 sm:$0xff]   ;;  %v6761_v13 = vld [vmem:[#allocation9 + $0x64] ss:$16 sps:$4 sm:$0xff]  }
 0x3e9   :  { %5075 = vpow2.f32 %v4461_v35  ;;  %v6749_v35 = vld [vmem:[#allocation9 + $0x44] ss:$16 sps:$4 sm:$0xff]  }
 0x3ea   :  { %5077 = vtanh.f32 %v1991_v60  ;;  %v6755_v60 = vld [vmem:[#allocation9 + $0x40] ss:$16 sps:$4 sm:$0xff]  }
 0x3eb   :  { %5079 = vpow2.f32 %v4462_v39  ;;  %v6758_v39 = vld [vmem:[#allocation9 + $0x48] ss:$16 sps:$4 sm:$0xff]  }
 0x3ec   :  { %5081 = vtanh.f32 %v1995_v15  ;;  %v6764_v15 = vld [vmem:[#allocation9 + $0x6c] ss:$16 sps:$4 sm:$0xff]  }
 0x3f0   :  { %v5070_v27 = vpop.eup %5069 }
 0x3f1   :  { %v5072_v50 = vpop.eup %5071  ;;  %v2003_v51 = vadd.f32 1.0, %v5070_v27  ;;  %v6767_v27 = vld [vmem:[#allocation9 + $0x60] ss:$16 sps:$4 sm:$0xff]  }
 0x3f2   :  { %v2015_v30 = vadd.f32 1.0, %v5072_v50  ;;  %v5074_v24 = vpop.eup %5073  ;;  %v6770_v50 = vld [vmem:[#allocation9 + $0x68] ss:$16 sps:$4 sm:$0xff]  }
 0x3f3   :  { %5083 = vrcp.f32 %v2003_v51  ;;  %v2004_v1 = vadd.f32 1.0, %v5074_v24  ;;  %v5076_v53 = vpop.eup %5075  ;;  %v6773_v51 = vld [vmem:[#allocation9 + $0x84] ss:$16 sps:$4 sm:$0xff]   ;;  %v6782_v24 = vld [vmem:[#allocation9 + $0x88] ss:$16 sps:$4 sm:$0xff]  }
 0x3f4   :  { %5085 = vrcp.f32 %v2015_v30  ;;  %v2016_v18 = vadd.f32 1.0, %v5076_v53  ;;  %v5078_v43 = vpop.eup %5077  ;;  %v6779_v30 = vld [vmem:[#allocation9 + $0x80] ss:$16 sps:$4 sm:$0xff]   ;;  %v6788_v53 = vld [vmem:[#allocation9 + $0xac] ss:$16 sps:$4 sm:$0xff]  }
 0x3f5   :  { %5087 = vpow2.f32 %v4463_v4  ;;  %v5080_v19 = vpop.eup %5079  ;;  %v6776_v4 = vld [vmem:[#allocation9 + $0x8c] ss:$16 sps:$4 sm:$0xff]  }
 0x3f6   :  { %5089 = vrcp.f32 %v2004_v1  ;;  %v5082_v59 = vpop.eup %5081  ;;  %v2029_v57 = vadd.f32 1.0, %v5080_v19  ;;  %v6785_v1 = vld [vmem:[#allocation9 + $0xa4] ss:$16 sps:$4 sm:$0xff]  }
 0x3f7   :  { %5091 = vrcp.f32 %v2016_v18  ;;  %v8231_v18 = vld [vmem:[#allocation69_spill] sm:$0xff]  ;;  %v8243_v19 = vld [vmem:[#allocation39_spill] sm:$0xff] }
 0x3f8   :  { %5093 = vrcp.f32 %v2029_v57  ;;  %v8251_v57 = vld [vmem:[#allocation51_spill] sm:$0xff] }
 0x3fd   :  { %v5084_v49 = vpop.eup %5083 }
 0x3fe   :  { %v5086_v14 = vpop.eup %5085  ;;  %v2037_v36 = vmul.f32 %v5084_v49, %v5078_v43  ;;  %v8232_v43 = vld [vmem:[#allocation28_spill] sm:$0xff]  ;;  %v8245_v49 = vld [vmem:[#allocation41_spill] sm:$0xff] }
 0x3ff   :  { %v5088_v23 = vpop.eup %5087  ;;  %v2035_v29 = vmul.f32 %v5086_v14, %v6515_v9  ;;  %v8246_v14 = vld [vmem:[#allocation42_spill] sm:$0xff] }
 0x400   :  { %v5090_v0 = vpop.eup %5089  ;;  %v2030_v44 = vadd.f32 1.0, %v5088_v23  ;;  %v8248_v23 = vld [vmem:[#allocation48_spill] sm:$0xff] }
 0x401   :  { %v6722_v31 = vadd.f32 %v2037_v36, %v2035_v29  ;;  %v2038_v56 = vmul.f32 %v5090_v0, %v5082_v59  ;;  %v5092_v25 = vpop.eup %5091  ;;  %v8244_v59 = vld [vmem:[#allocation40_spill] sm:$0xff]  ;;  %v8247_v36 = vld [vmem:[#allocation43_spill] sm:$0xff]  ;;  %v8249_v29 = vld [vmem:[#allocation49_spill] sm:$0xff] }
 0x402   :  { %v2036_v58 = vmul.f32 %v5092_v25, %v6518_v38  ;;  %v5094_v61 = vpop.eup %5093  ;;  %v6732_v38 = vld [vmem:[#allocation9 + $0x8] ss:$16 sps:$4 sm:$0xff]   ;;  %v8253_v25 = vld [vmem:[#allocation53_spill] sm:$0xff] }
 0x403   :  { %5095 = vtanh.f32 %v6722_v31  ;;  %v8250_v0 = vld [vmem:[#allocation50_spill] sm:$0xff] }
 0x404   :  { %v6726_v63 = vadd.f32 %v2038_v56, %v2036_v58  ;;  %5097 = vrcp.f32 %v2030_v44  ;;  %v8252_v56 = vld [vmem:[#allocation52_spill] sm:$0xff]  ;;  %v8254_v44 = vld [vmem:[#allocation54_spill] sm:$0xff]  ;;  %v8255_v58 = vld [vmem:[#allocation55_spill] sm:$0xff] }
 0x406   :  { %5099 = vtanh.f32 %v6726_v63 }
 0x40d   :  { %v5096_v33 = vpop.eup %5095 }
 0x40e   :  { %v5098_v9 = vpop.eup %5097  ;;  %v2043_v46 = vmul.f32 %v5096_v33, %v5094_v61  ;;  %v8256_v61 = vld [vmem:[#allocation56_spill] sm:$0xff]  ;;  %v8257_v33 = vld [vmem:[#allocation57_spill] sm:$0xff] }
 0x410   :  { %v5100_v34 = vpop.eup %5099 }
 0x411   :  { %v2044_v48 = vmul.f32 %v5100_v34, %v5098_v9  ;;  %v8258_v9 = vld [vmem:[#allocation58_spill] sm:$0xff]  ;;  %v8259_v34 = vld [vmem:[#allocation59_spill] sm:$0xff] }
 0x413   :  { %v2045_v10 = vpack.c.bf16 %v2044_v48, %v2043_v46  ;;  %v8260_v46 = vld [vmem:[#allocation60_spill] sm:$0xff]  ;;  %v8261_v48 = vld [vmem:[#allocation61_spill] sm:$0xff] }
 0x415   :  { %2230 = vmatmul.mubr.bf16.vlgmr.msra.gmra.mrb[32].mxu0 %v2045_v10  ;;  %2273 = vmatmul.mubr.bf16.vlgmr.msra.gmra.mrb[48].mxu1 %v2045_v10  ;;  %v8262_v10 = vld [vmem:[#allocation62_spill] sm:$0xff] }
 0x416   :  { %2284 = vmatpush1.bf16.msra.mxu0 %v6729_v12  ;;  %2327 = vmatpush1.bf16.msra.mxu1 %v6732_v38 }
 0x417   :  { %2285 = vmatprep.subr.bf16.mxu0 %v6735_v22  ;;  %2328 = vmatprep.subr.bf16.mxu1 %v6738_v11 }
 0x418   :  { %2315 = vmatprep.mubr.bf16.mxu0 %v8095_v45  ;;  %2358 = vmatprep.mubr.bf16.mxu1 %v8095_v45 }
 0x41a   :  { %2286 = vmatpush1.bf16.msra.mxu0 %v6743_v26  ;;  %2329 = vmatpush1.bf16.msra.mxu1 %v6746_v28 }
 0x41b   :  { %2287 = vmatprep.subr.bf16.mxu0 %v6749_v35  ;;  %2330 = vmatprep.subr.bf16.mxu1 %v6752_v40 }
 0x41e   :  { %2288 = vmatpush1.bf16.msra.mxu0 %v6755_v60  ;;  %2331 = vmatpush1.bf16.msra.mxu1 %v6758_v39 }
 0x41f   :  { %2289 = vmatprep.subr.bf16.mxu0 %v6761_v13  ;;  %2332 = vmatprep.subr.bf16.mxu1 %v6764_v15 }
 0x422   :  { %2290 = vmatpush1.bf16.msra.mxu0 %v6767_v27  ;;  %2333 = vmatpush1.bf16.msra.mxu1 %v6770_v50 }
 0x423   :  { %2291 = vmatprep.subr.bf16.mxu0 %v6773_v51  ;;  %2334 = vmatprep.subr.bf16.mxu1 %v6776_v4 }
 0x426   :  { %2292 = vmatpush1.bf16.msra.mxu0 %v6779_v30  ;;  %2335 = vmatpush1.bf16.msra.mxu1 %v6782_v24 }
 0x427   :  { %2293 = vmatprep.subr.bf16.mxu0 %v6785_v1  ;;  %2336 = vmatprep.subr.bf16.mxu1 %v6788_v53 }
 0x42a   :  { %2294 = vmatpush1.bf16.msra.mxu0 %v8188_v32  ;;  %2337 = vmatpush1.bf16.msra.mxu1 %v6366_v54  ;;  %v8233_v32 = vld [vmem:[#allocation29_spill] sm:$0xff]  ;;  %v8234_v54 = vld [vmem:[#allocation30_spill] sm:$0xff] }
 0x42b   :  { %2295 = vmatprep.subr.bf16.mxu0 %v6370_v17  ;;  %2338 = vmatprep.subr.bf16.mxu1 %v6372_v47  ;;  %v8237_v17 = vld [vmem:[#allocation33_spill] sm:$0xff]  ;;  %v8240_v47 = vld [vmem:[#allocation36_spill] sm:$0xff] }
 0x42e   :  { %2296 = vmatpush1.bf16.msra.mxu0 %v6376_v6  ;;  %2339 = vmatpush1.bf16.msra.mxu1 %v6378_v62  ;;  %v8235_v6 = vld [vmem:[#allocation31_spill] sm:$0xff]  ;;  %v8236_v62 = vld [vmem:[#allocation32_spill] sm:$0xff] }
 0x42f   :  { %2297 = vmatprep.subr.bf16.mxu0 %v6382_v55  ;;  %2340 = vmatprep.subr.bf16.mxu1 %v6384_v3  ;;  %v8239_v3 = vld [vmem:[#allocation35_spill] sm:$0xff]  ;;  %v8241_v55 = vld [vmem:[#allocation37_spill] sm:$0xff] }
 0x432   :  { %2298 = vmatpush1.bf16.msra.mxu0 %v6388_v52  ;;  %2341 = vmatpush1.bf16.msra.mxu1 %v8231_v18  ;;  %v8238_v52 = vld [vmem:[#allocation34_spill] sm:$0xff]  ;;  %v8263_v18 = vld [vmem:[#allocation63_spill] sm:$0xff] }
 0x433   :  { %2434 = vmatprep.subr.bf16.mxu0 %v8232_v43  ;;  %2477 = vmatprep.subr.bf16.mxu1 %v8233_v32 }
 0x435   :  { %2316 = vmatmul.mubr.bf16.vlgmr.msra.gmra.mrb[32].mxu0 %v6675_v16  ;;  %2359 = vmatmul.mubr.bf16.vlgmr.msra.gmra.mrb[48].mxu1 %v6675_v16  ;;  %v8242_v16 = vld [vmem:[#allocation38_spill] sm:$0xff] }
 0x436   :  { %2435 = vmatpush1.bf16.msra.mxu0 %v8234_v54  ;;  %2478 = vmatpush1.bf16.msra.mxu1 %v8235_v6 }
 0x437   :  { %2436 = vmatprep.subr.bf16.mxu0 %v8236_v62  ;;  %2479 = vmatprep.subr.bf16.mxu1 %v8237_v17 }
 0x438   :  { %2466 = vmatprep.mubr.bf16.mxu0 %v8095_v45  ;;  %2509 = vmatprep.mubr.bf16.mxu1 %v8095_v45 }
 0x43a   :  { %2437 = vmatpush1.bf16.msra.mxu0 %v8238_v52  ;;  %2480 = vmatpush1.bf16.msra.mxu1 %v8239_v3 }
 0x43b   :  { %2438 = vmatprep.subr.bf16.mxu0 %v8240_v47  ;;  %2481 = vmatprep.subr.bf16.mxu1 %v8241_v55 }
 0x43e   :  { %2439 = vmatpush1.bf16.msra.mxu0 %v8242_v16  ;;  %2482 = vmatpush1.bf16.msra.mxu1 %v8243_v19 }
 0x43f   :  { %2440 = vmatprep.subr.bf16.mxu0 %v8244_v59  ;;  %2483 = vmatprep.subr.bf16.mxu1 %v8245_v49 }
 0x442   :  { %2441 = vmatpush1.bf16.msra.mxu0 %v8246_v14  ;;  %2484 = vmatpush1.bf16.msra.mxu1 %v8247_v36 }
 0x443   :  { %2442 = vmatprep.subr.bf16.mxu0 %v8248_v23  ;;  %2485 = vmatprep.subr.bf16.mxu1 %v8249_v29 }
 0x446   :  { %2443 = vmatpush1.bf16.msra.mxu0 %v8250_v0  ;;  %2486 = vmatpush1.bf16.msra.mxu1 %v8251_v57 }
 0x447   :  { %2444 = vmatprep.subr.bf16.mxu0 %v8252_v56  ;;  %2487 = vmatprep.subr.bf16.mxu1 %v8253_v25  ;;  %v8264_v25 = vld [vmem:[#allocation64_spill] sm:$0xff]  ;;  %v8266_v56 = vld [vmem:[#allocation25_spill] sm:$0xff] }
 0x44a   :  { %2445 = vmatpush1.bf16.msra.mxu0 %v8254_v44  ;;  %2488 = vmatpush1.bf16.msra.mxu1 %v8255_v58  ;;  %v8265_v44 = vld [vmem:[#allocation65_spill] sm:$0xff] }
 0x44b   :  { %2446 = vmatprep.subr.bf16.mxu0 %v8256_v61  ;;  %2489 = vmatprep.subr.bf16.mxu1 %v8257_v33 }
 0x44e   :  { %2447 = vmatpush1.bf16.msra.mxu0 %v8258_v9  ;;  %2490 = vmatpush1.bf16.msra.mxu1 %v8259_v34 }
 0x44f   :  { %2448 = vmatprep.subr.bf16.mxu0 %v8260_v46  ;;  %2491 = vmatprep.subr.bf16.mxu1 %v8261_v48 }
 0x452   :  { %2449 = vmatpush1.bf16.msra.mxu0 %v8262_v10  ;;  %2492 = vmatpush1.bf16.msra.mxu1 %v8263_v18 }
 0x453   :  { %2577 = vmatprep.subr.bf16.mxu0 %v8264_v25  ;;  %2620 = vmatprep.subr.bf16.mxu1 %v8265_v44 }
 0x488   :  { %v2088_v58 = vpop.f32.mrb[12].mxu0  ;;  %v2131_v61 = vpop.f32.mrb[20].mxu1 }
 0x489   :  { %v4582_v33 = vadd.f32 %v2088_v58, %v8266_v56  ;;  %v2090_v57 = vpop.f32.mrb[13].mxu0  ;;  %v2133_v9 = vpop.f32.mrb[21].mxu1 }
 0x48a   :  { %v4583_v34 = vadd.f32 %v2090_v57, %v6170_v5  ;;  %v2092_v0 = vpop.f32.mrb[14].mxu0  ;;  %v2135_v46 = vpop.f32.mrb[22].mxu1  ;;  %v4623_v58 = vadd.f32 %v2133_v9, %v6184_v7  ;;  %v4622_v57 = vadd.f32 %v2131_v61, %v6180_v2 }
 0x48b   :  { %v4464_v29 = vmul.f32 -1.442695, %v4582_v33  ;;  %v4584_v48 = vadd.f32 %v2092_v0, %v8266_v56  ;;  %v2094_v10 = vpop.f32.mrb[15].mxu0  ;;  %v2137_v23 = vpop.f32.mrb[23].mxu1  ;;  %v4624_v0 = vadd.f32 %v2135_v46, %v6180_v2 }
 0x48c   :  { %v4466_v18 = vmul.f32 -1.442695, %v4583_v34  ;;  %v4585_v25 = vadd.f32 %v2094_v10, %v6170_v5  ;;  %v4468_v14 = vmul.f32 -1.442695, %v4623_v58  ;;  %v4625_v33 = vadd.f32 %v2137_v23, %v6184_v7 }
 0x48d   :  { %5101 = vpow2.f32 %v4464_v29  ;;  %v4465_v44 = vmul.f32 -1.442695, %v4584_v48 }
 0x48e   :  { %5103 = vpow2.f32 %v4466_v18  ;;  %v4467_v36 = vmul.f32 -1.442695, %v4585_v25  ;;  %v4469_v29 = vmul.f32 -1.442695, %v4625_v33 }
 0x48f   :  { %5105 = vpow2.f32 %v4465_v44 }
 0x490   :  { %5107 = vpow2.f32 %v4467_v36 }
 0x491   :  { %5109 = vtanh.f32 %v4622_v57 }
 0x492   :  { %5111 = vpow2.f32 %v4468_v14 }
 0x493   :  { %5113 = vtanh.f32 %v4624_v0 }
 0x497   :  { %v5102_v56 = vpop.eup %5101 }
 0x498   :  { %v5104_v34 = vpop.eup %5103  ;;  %v2154_v49 = vadd.f32 1.0, %v5102_v56 }
 0x499   :  { %v2166_v48 = vadd.f32 1.0, %v5104_v34  ;;  %v5106_v25 = vpop.eup %5105 }
 0x49a   :  { %5115 = vrcp.f32 %v2154_v49  ;;  %v2155_v44 = vadd.f32 1.0, %v5106_v25  ;;  %v5108_v36 = vpop.eup %5107 }
 0x49b   :  { %5117 = vrcp.f32 %v2166_v48  ;;  %v2167_v61 = vadd.f32 1.0, %v5108_v36  ;;  %v5110_v23 = vpop.eup %5109 }
 0x49c   :  { %5119 = vpow2.f32 %v4469_v29  ;;  %v5112_v9 = vpop.eup %5111 }
 0x49d   :  { %5121 = vrcp.f32 %v2155_v44  ;;  %v5114_v46 = vpop.eup %5113  ;;  %v2180_v33 = vadd.f32 1.0, %v5112_v9 }
 0x49e   :  { %5123 = vrcp.f32 %v2167_v61 }
 0x49f   :  { %5125 = vrcp.f32 %v2180_v33  ;;  %v6882_v33 = vld [vmem:[#allocation11 + $0x4c] ss:$16 sps:$4 sm:$0xff]  }
 0x4a0   :  { %8274 = vst [vmem:[#allocation71_spill] sm:$0xff] %v6882_v33 }
 0x4a4   :  { %v5116_v10 = vpop.eup %5115 }
 0x4a5   :  { %v5118_v18 = vpop.eup %5117  ;;  %v2188_v58 = vmul.f32 %v5116_v10, %v5110_v23 }
 0x4a6   :  { %v5120_v56 = vpop.eup %5119  ;;  %v2186_v14 = vmul.f32 %v5118_v18, %v6668_v8  ;;  %v6865_v18 = vld [vmem:[#allocation11 + $0x24] ss:$16 sps:$4 sm:$0xff]  }
 0x4a7   :  { %v5122_v57 = vpop.eup %5121  ;;  %v2181_v48 = vadd.f32 1.0, %v5120_v56  ;;  %8269 = vst [vmem:[#allocation68_spill] sm:$0xff] %v6865_v18  ;;  %v6873_v56 = vld [vmem:[#allocation11 + $0x20] ss:$16 sps:$4 sm:$0xff]  }
 0x4a8   :  { %v6848_v0 = vadd.f32 %v2188_v58, %v2186_v14  ;;  %v2189_v49 = vmul.f32 %v5122_v57, %v5114_v46  ;;  %v5124_v34 = vpop.eup %5123  ;;  %v6862_v46 = vld [vmem:[#allocation11 + $0x8] ss:$16 sps:$4 sm:$0xff]   ;;  %v6868_v58 = vld [vmem:[#allocation11 + $0x2c] ss:$16 sps:$4 sm:$0xff]   ;;  %8271 = vst [vmem:[#allocation45_spill] sm:$0xff] %v6873_v56 }
 0x4a9   :  { %v2187_v29 = vmul.f32 %v5124_v34, %v6672_v21  ;;  %v5126_v44 = vpop.eup %5125  ;;  %v6859_v21 = vld [vmem:[#allocation11] ss:$16 sps:$4 sm:$0xff]   ;;  %8268 = vst [vmem:[#allocation67_spill] sm:$0xff] %v6862_v46  ;;  %8270 = vst [vmem:[#allocation44_spill] sm:$0xff] %v6868_v58  ;;  %v6876_v14 = vld [vmem:[#allocation11 + $0x28] ss:$16 sps:$4 sm:$0xff]  }
 0x4aa   :  { %5127 = vtanh.f32 %v6848_v0  ;;  %8267 = vst [vmem:[#allocation66_spill] sm:$0xff] %v6859_v21  ;;  %8272 = vst [vmem:[#allocation46_spill] sm:$0xff] %v6876_v14  ;;  %v6879_v57 = vld [vmem:[#allocation11 + $0x44] ss:$16 sps:$4 sm:$0xff]   ;;  %v6888_v34 = vld [vmem:[#allocation11 + $0x48] ss:$16 sps:$4 sm:$0xff]  }
 0x4ab   :  { %v6852_v25 = vadd.f32 %v2189_v49, %v2187_v29  ;;  %5129 = vrcp.f32 %v2181_v48  ;;  %8273 = vst [vmem:[#allocation47_spill] sm:$0xff] %v6879_v57  ;;  %v6885_v49 = vld [vmem:[#allocation11 + $0x40] ss:$16 sps:$4 sm:$0xff]   ;;  %8276 = vst [vmem:[#allocation28_spill] sm:$0xff] %v6888_v34  ;;  %v6891_v48 = vld [vmem:[#allocation11 + $0x64] ss:$16 sps:$4 sm:$0xff]  }
 0x4ac   :  { %8275 = vst [vmem:[#allocation69_spill] sm:$0xff] %v6885_v49  ;;  %8277 = vst [vmem:[#allocation29_spill] sm:$0xff] %v6891_v48  ;;  %v6894_v29 = vld [vmem:[#allocation11 + $0x6c] ss:$16 sps:$4 sm:$0xff]  }
 0x4ad   :  { %5131 = vtanh.f32 %v6852_v25  ;;  %8278 = vst [vmem:[#allocation30_spill] sm:$0xff] %v6894_v29 }
 0x4b4   :  { %v5128_v36 = vpop.eup %5127 }
 0x4b5   :  { %v5130_v8 = vpop.eup %5129  ;;  %v2194_v23 = vmul.f32 %v5128_v36, %v5126_v44  ;;  %v6897_v44 = vld [vmem:[#allocation11 + $0x60] ss:$16 sps:$4 sm:$0xff]   ;;  %v6900_v36 = vld [vmem:[#allocation11 + $0x68] ss:$16 sps:$4 sm:$0xff]  }
 0x4b6   :  { %8279 = vst [vmem:[#allocation31_spill] sm:$0xff] %v6897_v44  ;;  %8280 = vst [vmem:[#allocation32_spill] sm:$0xff] %v6900_v36 }
 0x4b7   :  { %v5132_v61 = vpop.eup %5131 }
 0x4b8   :  { %v2195_v9 = vmul.f32 %v5132_v61, %v5130_v8  ;;  %v6903_v8 = vld [vmem:[#allocation11 + $0x84] ss:$16 sps:$4 sm:$0xff]   ;;  %v6906_v61 = vld [vmem:[#allocation11 + $0x8c] ss:$16 sps:$4 sm:$0xff]  }
 0x4b9   :  { %8281 = vst [vmem:[#allocation33_spill] sm:$0xff] %v6903_v8  ;;  %8282 = vst [vmem:[#allocation34_spill] sm:$0xff] %v6906_v61 }
 0x4ba   :  { %v6855_v10 = vpack.c.bf16 %v2195_v9, %v2194_v23  ;;  %v6909_v23 = vld [vmem:[#allocation11 + $0x80] ss:$16 sps:$4 sm:$0xff]   ;;  %v6912_v9 = vld [vmem:[#allocation11 + $0x88] ss:$16 sps:$4 sm:$0xff]  }
 0x4bb   :  { %8283 = vst [vmem:[#allocation35_spill] sm:$0xff] %v6909_v23  ;;  %8284 = vst [vmem:[#allocation36_spill] sm:$0xff] %v6912_v9 }
 0x4bc   :  { %2467 = vmatmul.mubr.bf16.vlgmr.msra.gmra.mrb[16].mxu0 %v6855_v10  ;;  %2510 = vmatmul.mubr.bf16.vlgmr.msra.gmra.mrb[24].mxu1 %v6855_v10 }
 0x4bd   :  { %2578 = vmatpush1.bf16.msra.mxu0 %v6859_v21  ;;  %2621 = vmatpush1.bf16.msra.mxu1 %v6862_v46 }
 0x4be   :  { %2579 = vmatprep.subr.bf16.mxu0 %v6865_v18  ;;  %2622 = vmatprep.subr.bf16.mxu1 %v6868_v58 }
 0x4bf   :  { %2609 = vmatprep.mubr.bf16.mxu0 %v8095_v45  ;;  %2652 = vmatprep.mubr.bf16.mxu1 %v8095_v45 }
 0x4c1   :  { %2580 = vmatpush1.bf16.msra.mxu0 %v6873_v56  ;;  %2623 = vmatpush1.bf16.msra.mxu1 %v6876_v14 }
 0x4c2   :  { %2581 = vmatprep.subr.bf16.mxu0 %v6879_v57  ;;  %2624 = vmatprep.subr.bf16.mxu1 %v6882_v33 }
 0x4c5   :  { %2582 = vmatpush1.bf16.msra.mxu0 %v6885_v49  ;;  %2625 = vmatpush1.bf16.msra.mxu1 %v6888_v34 }
 0x4c6   :  { %2583 = vmatprep.subr.bf16.mxu0 %v6891_v48  ;;  %2626 = vmatprep.subr.bf16.mxu1 %v6894_v29 }
 0x4c9   :  { %2584 = vmatpush1.bf16.msra.mxu0 %v6897_v44  ;;  %2627 = vmatpush1.bf16.msra.mxu1 %v6900_v36  ;;  %v6915_v44 = vld [vmem:[#allocation11 + $0xa4] ss:$16 sps:$4 sm:$0xff]   ;;  %v6918_v36 = vld [vmem:[#allocation11 + $0xac] ss:$16 sps:$4 sm:$0xff]  }
 0x4ca   :  { %2585 = vmatprep.subr.bf16.mxu0 %v6903_v8  ;;  %2628 = vmatprep.subr.bf16.mxu1 %v6906_v61  ;;  %8285 = vst [vmem:[#allocation37_spill] sm:$0xff] %v6915_v44  ;;  %8286 = vst [vmem:[#allocation38_spill] sm:$0xff] %v6918_v36  ;;  %v6921_v8 = vld [vmem:[#allocation11 + $0xa0] ss:$16 sps:$4 sm:$0xff]   ;;  %v6924_v61 = vld [vmem:[#allocation11 + $0xa8] ss:$16 sps:$4 sm:$0xff]  }
 0x4cb   :  { %8287 = vst [vmem:[#allocation39_spill] sm:$0xff] %v6921_v8  ;;  %8288 = vst [vmem:[#allocation40_spill] sm:$0xff] %v6924_v61 }
 0x4cd   :  { %2586 = vmatpush1.bf16.msra.mxu0 %v6909_v23  ;;  %2629 = vmatpush1.bf16.msra.mxu1 %v6912_v9  ;;  %v6927_v23 = vld [vmem:[#allocation11 + $0xc4] ss:$16 sps:$4 sm:$0xff]   ;;  %v6930_v9 = vld [vmem:[#allocation11 + $0xcc] ss:$16 sps:$4 sm:$0xff]  }
 0x4ce   :  { %2587 = vmatprep.subr.bf16.mxu0 %v6915_v44  ;;  %2630 = vmatprep.subr.bf16.mxu1 %v6918_v36  ;;  %8289 = vst [vmem:[#allocation72_spill] sm:$0xff] %v6927_v23  ;;  %8290 = vst [vmem:[#allocation73_spill] sm:$0xff] %v6930_v9  ;;  %v6933_v44 = vld [vmem:[#allocation11 + $0xc0] ss:$16 sps:$4 sm:$0xff]   ;;  %v6936_v36 = vld [vmem:[#allocation11 + $0xc8] ss:$16 sps:$4 sm:$0xff]  }
 0x4cf   :  { %8291 = vst [vmem:[#allocation74_spill] sm:$0xff] %v6933_v44  ;;  %8292 = vst [vmem:[#allocation75_spill] sm:$0xff] %v6936_v36 }
 0x4d1   :  { %2588 = vmatpush1.bf16.msra.mxu0 %v6921_v8  ;;  %2631 = vmatpush1.bf16.msra.mxu1 %v6924_v61  ;;  %v6939_v8 = vld [vmem:[#allocation11 + $0xe4] ss:$16 sps:$4 sm:$0xff]   ;;  %v6942_v61 = vld [vmem:[#allocation11 + $0xec] ss:$16 sps:$4 sm:$0xff]  }
 0x4d2   :  { %2589 = vmatprep.subr.bf16.mxu0 %v6927_v23  ;;  %2632 = vmatprep.subr.bf16.mxu1 %v6930_v9  ;;  %8293 = vst [vmem:[#allocation76_spill] sm:$0xff] %v6939_v8  ;;  %8294 = vst [vmem:[#allocation77_spill] sm:$0xff] %v6942_v61  ;;  %v6945_v23 = vld [vmem:[#allocation11 + $0xe0] ss:$16 sps:$4 sm:$0xff]   ;;  %v6948_v9 = vld [vmem:[#allocation11 + $0xe8] ss:$16 sps:$4 sm:$0xff]  }
 0x4d3   :  { %8295 = vst [vmem:[#allocation78_spill] sm:$0xff] %v6945_v23  ;;  %8296 = vst [vmem:[#allocation79_spill] sm:$0xff] %v6948_v9 }
 0x4d5   :  { %2590 = vmatpush1.bf16.msra.mxu0 %v6933_v44  ;;  %2633 = vmatpush1.bf16.msra.mxu1 %v6936_v36  ;;  %v6951_v44 = vld [vmem:[#allocation9 + $0x4] ss:$16 sps:$4 sm:$0xff]   ;;  %v6954_v36 = vld [vmem:[#allocation9 + $0xc] ss:$16 sps:$4 sm:$0xff]  }
 0x4d6   :  { %2591 = vmatprep.subr.bf16.mxu0 %v6939_v8  ;;  %2634 = vmatprep.subr.bf16.mxu1 %v6942_v61  ;;  %8297 = vst [vmem:[#allocation80_spill] sm:$0xff] %v6951_v44  ;;  %8298 = vst [vmem:[#allocation81_spill] sm:$0xff] %v6954_v36 }
 0x4d9   :  { %2592 = vmatpush1.bf16.msra.mxu0 %v6945_v23  ;;  %2635 = vmatpush1.bf16.msra.mxu1 %v6948_v9 }
 0x4da   :  { %2663 = vmatprep.subr.bf16.mxu0 %v6951_v44  ;;  %2706 = vmatprep.subr.bf16.mxu1 %v6954_v36 }
 0x508   :  { %v2317_v8 = vpop.f32.mrb[32].mxu0  ;;  %v2360_v29 = vpop.f32.mrb[48].mxu1 }
 0x509   :  { %v2369_v61 = vadd.f32 %v2317_v8, %v8227_v41  ;;  %v2319_v48 = vpop.f32.mrb[33].mxu0  ;;  %v2362_v34 = vpop.f32.mrb[49].mxu1 }
 0x50a   :  { %v2370_v23 = vadd.f32 %v2319_v48, %v8228_v20  ;;  %v2321_v49 = vpop.f32.mrb[34].mxu0  ;;  %v2364_v33 = vpop.f32.mrb[50].mxu1  ;;  %v2372_v8 = vadd.f32 %v2362_v34, %v8229_v37  ;;  %v2371_v48 = vadd.f32 %v2360_v29, %v8230_v42 }
 0x50b   :  { %v4470_v57 = vmul.f32 -1.442695, %v2369_v61  ;;  %v2373_v9 = vadd.f32 %v2321_v49, %v8227_v41  ;;  %v2323_v14 = vpop.f32.mrb[35].mxu0  ;;  %v2366_v56 = vpop.f32.mrb[51].mxu1  ;;  %v2375_v49 = vadd.f32 %v2364_v33, %v8230_v42 }
 0x50c   :  { %v4472_v44 = vmul.f32 -1.442695, %v2370_v23  ;;  %v2374_v58 = vadd.f32 %v2323_v14, %v8228_v20  ;;  %v4474_v46 = vmul.f32 -1.442695, %v2372_v8  ;;  %v2376_v61 = vadd.f32 %v2366_v56, %v8229_v37 }
 0x50d   :  { %5133 = vpow2.f32 %v4470_v57  ;;  %v4471_v36 = vmul.f32 -1.442695, %v2373_v9 }
 0x50e   :  { %5135 = vpow2.f32 %v4472_v44  ;;  %v4473_v18 = vmul.f32 -1.442695, %v2374_v58  ;;  %v4475_v14 = vmul.f32 -1.442695, %v2376_v61 }
 0x50f   :  { %5137 = vpow2.f32 %v4471_v36 }
 0x510   :  { %5139 = vpow2.f32 %v4473_v18 }
 0x511   :  { %5141 = vtanh.f32 %v2371_v48 }
 0x512   :  { %5143 = vpow2.f32 %v4474_v46 }
 0x513   :  { %5145 = vtanh.f32 %v2375_v49 }
 0x517   :  { %v5134_v41 = vpop.eup %5133 }
 0x518   :  { %v5136_v23 = vpop.eup %5135  ;;  %v2383_v21 = vadd.f32 1.0, %v5134_v41 }
 0x519   :  { %v2395_v57 = vadd.f32 1.0, %v5136_v23  ;;  %v5138_v58 = vpop.eup %5137 }
 0x51a   :  { %5147 = vrcp.f32 %v2383_v21  ;;  %v2384_v34 = vadd.f32 1.0, %v5138_v58  ;;  %v5140_v18 = vpop.eup %5139 }
 0x51b   :  { %5149 = vrcp.f32 %v2395_v57  ;;  %v2396_v29 = vadd.f32 1.0, %v5140_v18  ;;  %v5142_v56 = vpop.eup %5141 }
 0x51c   :  { %5151 = vpow2.f32 %v4475_v14  ;;  %v5144_v44 = vpop.eup %5143 }
 0x51d   :  { %5153 = vrcp.f32 %v2384_v34  ;;  %v5146_v33 = vpop.eup %5145  ;;  %v2409_v61 = vadd.f32 1.0, %v5144_v44 }
 0x51e   :  { %5155 = vrcp.f32 %v2396_v29 }
 0x51f   :  { %5157 = vrcp.f32 %v2409_v61  ;;  %v7016_v61 = vld [vmem:[#allocation9 + $0xec] ss:$16 sps:$4 sm:$0xff]  }
 0x524   :  { %v5148_v36 = vpop.eup %5147 }
 0x525   :  { %v5150_v9 = vpop.eup %5149  ;;  %v2417_v8 = vmul.f32 %v5148_v36, %v5142_v56 }
 0x526   :  { %v5152_v41 = vpop.eup %5151  ;;  %v2415_v46 = vmul.f32 %v5150_v9, %v6722_v31  ;;  %v7001_v9 = vld [vmem:[#allocation9 + $0xc4] ss:$16 sps:$4 sm:$0xff]  }
 0x527   :  { %v5154_v48 = vpop.eup %5153  ;;  %v2410_v57 = vadd.f32 1.0, %v5152_v41  ;;  %v7007_v41 = vld [vmem:[#allocation9 + $0xc0] ss:$16 sps:$4 sm:$0xff]  }
 0x528   :  { %v6966_v49 = vadd.f32 %v2417_v8, %v2415_v46  ;;  %v2418_v21 = vmul.f32 %v5154_v48, %v5146_v33  ;;  %v5156_v23 = vpop.eup %5155  ;;  %v6998_v33 = vld [vmem:[#allocation9 + $0xa8] ss:$16 sps:$4 sm:$0xff]   ;;  %v7004_v8 = vld [vmem:[#allocation9 + $0xcc] ss:$16 sps:$4 sm:$0xff]   ;;  %v7013_v48 = vld [vmem:[#allocation9 + $0xe4] ss:$16 sps:$4 sm:$0xff]  }
 0x529   :  { %v2416_v14 = vmul.f32 %v5156_v23, %v6726_v63  ;;  %v5158_v34 = vpop.eup %5157  ;;  %v6995_v63 = vld [vmem:[#allocation9 + $0xa0] ss:$16 sps:$4 sm:$0xff]   ;;  %v7010_v46 = vld [vmem:[#allocation9 + $0xc8] ss:$16 sps:$4 sm:$0xff]  }
 0x52a   :  { %5159 = vtanh.f32 %v6966_v49  ;;  %v7022_v23 = vld [vmem:[#allocation9 + $0xe8] ss:$16 sps:$4 sm:$0xff]  }
 0x52b   :  { %v6970_v58 = vadd.f32 %v2418_v21, %v2416_v14  ;;  %5161 = vrcp.f32 %v2410_v57  ;;  %v7019_v21 = vld [vmem:[#allocation9 + $0xe0] ss:$16 sps:$4 sm:$0xff]   ;;  %v8314_v14 = vld [vmem:[#allocation60_spill] sm:$0xff] }
 0x52c   :  { %v8313_v57 = vld [vmem:[#allocation59_spill] sm:$0xff] }
 0x52d   :  { %5163 = vtanh.f32 %v6970_v58 }
 0x534   :  { %v5160_v18 = vpop.eup %5159 }
 0x535   :  { %v5162_v31 = vpop.eup %5161  ;;  %v2423_v56 = vmul.f32 %v5160_v18, %v5158_v34  ;;  %v8315_v34 = vld [vmem:[#allocation61_spill] sm:$0xff]  ;;  %v8316_v18 = vld [vmem:[#allocation62_spill] sm:$0xff] }
 0x537   :  { %v5164_v29 = vpop.eup %5163 }
 0x538   :  { %v2424_v44 = vmul.f32 %v5164_v29, %v5162_v31  ;;  %v8317_v31 = vld [vmem:[#allocation63_spill] sm:$0xff]  ;;  %v8318_v29 = vld [vmem:[#allocation64_spill] sm:$0xff] }
 0x53a   :  { %v2425_v36 = vpack.c.bf16 %v2424_v44, %v2423_v56  ;;  %v8319_v56 = vld [vmem:[#allocation65_spill] sm:$0xff] }
 0x53c   :  { %2610 = vmatmul.mubr.bf16.vlgmr.msra.gmra.mrb[36].mxu0 %v2425_v36  ;;  %2653 = vmatmul.mubr.bf16.vlgmr.msra.gmra.mrb[52].mxu1 %v2425_v36 }
 0x53d   :  { %2664 = vmatpush1.bf16.msra.mxu0 %v6729_v12  ;;  %2707 = vmatpush1.bf16.msra.mxu1 %v6732_v38 }
 0x53e   :  { %2665 = vmatprep.subr.bf16.mxu0 %v6735_v22  ;;  %2708 = vmatprep.subr.bf16.mxu1 %v6738_v11 }
 0x53f   :  { %2695 = vmatprep.mubr.bf16.mxu0 %v8095_v45  ;;  %2738 = vmatprep.mubr.bf16.mxu1 %v8095_v45 }
 0x541   :  { %2666 = vmatpush1.bf16.msra.mxu0 %v6743_v26  ;;  %2709 = vmatpush1.bf16.msra.mxu1 %v6746_v28 }
 0x542   :  { %2667 = vmatprep.subr.bf16.mxu0 %v6749_v35  ;;  %2710 = vmatprep.subr.bf16.mxu1 %v6752_v40 }
 0x545   :  { %2668 = vmatpush1.bf16.msra.mxu0 %v6755_v60  ;;  %2711 = vmatpush1.bf16.msra.mxu1 %v6758_v39 }
 0x546   :  { %2669 = vmatprep.subr.bf16.mxu0 %v6761_v13  ;;  %2712 = vmatprep.subr.bf16.mxu1 %v6764_v15 }
 0x549   :  { %2670 = vmatpush1.bf16.msra.mxu0 %v6767_v27  ;;  %2713 = vmatpush1.bf16.msra.mxu1 %v6770_v50 }
 0x54a   :  { %2671 = vmatprep.subr.bf16.mxu0 %v6773_v51  ;;  %2714 = vmatprep.subr.bf16.mxu1 %v6776_v4 }
 0x54d   :  { %2672 = vmatpush1.bf16.msra.mxu0 %v6779_v30  ;;  %2715 = vmatpush1.bf16.msra.mxu1 %v6782_v24 }
 0x54e   :  { %2673 = vmatprep.subr.bf16.mxu0 %v6785_v1  ;;  %2716 = vmatprep.subr.bf16.mxu1 %v6788_v53 }
 0x551   :  { %2674 = vmatpush1.bf16.msra.mxu0 %v6995_v63  ;;  %2717 = vmatpush1.bf16.msra.mxu1 %v6998_v33 }
 0x552   :  { %2675 = vmatprep.subr.bf16.mxu0 %v7001_v9  ;;  %2718 = vmatprep.subr.bf16.mxu1 %v7004_v8 }
 0x555   :  { %2676 = vmatpush1.bf16.msra.mxu0 %v7007_v41  ;;  %2719 = vmatpush1.bf16.msra.mxu1 %v7010_v46 }
 0x556   :  { %2677 = vmatprep.subr.bf16.mxu0 %v7013_v48  ;;  %2720 = vmatprep.subr.bf16.mxu1 %v7016_v61 }
 0x559   :  { %2678 = vmatpush1.bf16.msra.mxu0 %v7019_v21  ;;  %2721 = vmatpush1.bf16.msra.mxu1 %v7022_v23 }
 0x55a   :  { %2814 = vmatprep.subr.bf16.mxu0 %v8232_v43  ;;  %2857 = vmatprep.subr.bf16.mxu1 %v8233_v32  ;;  %v8299_v43 = vld [vmem:[#allocation41_spill] sm:$0xff]  ;;  %v8300_v32 = vld [vmem:[#allocation42_spill] sm:$0xff] }
 0x55c   :  { %2696 = vmatmul.mubr.bf16.vlgmr.msra.gmra.mrb[36].mxu0 %v6855_v10  ;;  %2739 = vmatmul.mubr.bf16.vlgmr.msra.gmra.mrb[52].mxu1 %v6855_v10  ;;  %v8312_v10 = vld [vmem:[#allocation58_spill] sm:$0xff] }
 0x55d   :  { %2815 = vmatpush1.bf16.msra.mxu0 %v8234_v54  ;;  %2858 = vmatpush1.bf16.msra.mxu1 %v8235_v6  ;;  %v8301_v54 = vld [vmem:[#allocation43_spill] sm:$0xff]  ;;  %v8302_v6 = vld [vmem:[#allocation48_spill] sm:$0xff] }
 0x55e   :  { %2816 = vmatprep.subr.bf16.mxu0 %v8236_v62  ;;  %2859 = vmatprep.subr.bf16.mxu1 %v8237_v17  ;;  %v8303_v62 = vld [vmem:[#allocation49_spill] sm:$0xff]  ;;  %v8304_v17 = vld [vmem:[#allocation50_spill] sm:$0xff] }
 0x55f   :  { %2846 = vmatprep.mubr.bf16.mxu0 %v8095_v45  ;;  %2889 = vmatprep.mubr.bf16.mxu1 %v8095_v45 }
 0x561   :  { %2817 = vmatpush1.bf16.msra.mxu0 %v8238_v52  ;;  %2860 = vmatpush1.bf16.msra.mxu1 %v8239_v3  ;;  %v8305_v52 = vld [vmem:[#allocation51_spill] sm:$0xff]  ;;  %v8306_v3 = vld [vmem:[#allocation52_spill] sm:$0xff] }
 0x562   :  { %2818 = vmatprep.subr.bf16.mxu0 %v8240_v47  ;;  %2861 = vmatprep.subr.bf16.mxu1 %v8241_v55  ;;  %v8307_v47 = vld [vmem:[#allocation53_spill] sm:$0xff]  ;;  %v8308_v55 = vld [vmem:[#allocation54_spill] sm:$0xff] }
 0x565   :  { %2819 = vmatpush1.bf16.msra.mxu0 %v8242_v16  ;;  %2862 = vmatpush1.bf16.msra.mxu1 %v8243_v19  ;;  %v8309_v16 = vld [vmem:[#allocation55_spill] sm:$0xff]  ;;  %v8310_v19 = vld [vmem:[#allocation56_spill] sm:$0xff] }
 0x566   :  { %2820 = vmatprep.subr.bf16.mxu0 %v8244_v59  ;;  %2863 = vmatprep.subr.bf16.mxu1 %v8299_v43  ;;  %v8311_v59 = vld [vmem:[#allocation57_spill] sm:$0xff] }
 0x567   :  { %v8320_v43 = vld [vmem:[#allocation25_spill] sm:$0xff] }
 0x569   :  { %2821 = vmatpush1.bf16.msra.mxu0 %v8300_v32  ;;  %2864 = vmatpush1.bf16.msra.mxu1 %v8301_v54 }
 0x56a   :  { %2822 = vmatprep.subr.bf16.mxu0 %v8302_v6  ;;  %2865 = vmatprep.subr.bf16.mxu1 %v8303_v62 }
 0x56d   :  { %2823 = vmatpush1.bf16.msra.mxu0 %v8304_v17  ;;  %2866 = vmatpush1.bf16.msra.mxu1 %v8305_v52 }
 0x56e   :  { %2824 = vmatprep.subr.bf16.mxu0 %v8306_v3  ;;  %2867 = vmatprep.subr.bf16.mxu1 %v8307_v47 }
 0x571   :  { %2825 = vmatpush1.bf16.msra.mxu0 %v8308_v55  ;;  %2868 = vmatpush1.bf16.msra.mxu1 %v8309_v16 }
 0x572   :  { %2826 = vmatprep.subr.bf16.mxu0 %v8310_v19  ;;  %2869 = vmatprep.subr.bf16.mxu1 %v8311_v59 }
 0x575   :  { %2827 = vmatpush1.bf16.msra.mxu0 %v8312_v10  ;;  %2870 = vmatpush1.bf16.msra.mxu1 %v8313_v57 }
 0x576   :  { %2828 = vmatprep.subr.bf16.mxu0 %v8314_v14  ;;  %2871 = vmatprep.subr.bf16.mxu1 %v8315_v34 }
 0x579   :  { %2829 = vmatpush1.bf16.msra.mxu0 %v8316_v18  ;;  %2872 = vmatpush1.bf16.msra.mxu1 %v8317_v31 }
 0x57a   :  { %2957 = vmatprep.subr.bf16.mxu0 %v8318_v29  ;;  %3000 = vmatprep.subr.bf16.mxu1 %v8319_v56 }
 0x58f   :  { %v2468_v44 = vpop.f32.mrb[16].mxu0  ;;  %v2511_v36 = vpop.f32.mrb[24].mxu1 }
 0x590   :  { %v4586_v32 = vadd.f32 %v2468_v44, %v8320_v43  ;;  %v2470_v54 = vpop.f32.mrb[17].mxu0  ;;  %v2513_v6 = vpop.f32.mrb[25].mxu1  ;;  %v4626_v34 = vadd.f32 %v2511_v36, %v6180_v2 }
 0x591   :  { %v4587_v62 = vadd.f32 %v2470_v54, %v6170_v5  ;;  %v2472_v17 = vpop.f32.mrb[18].mxu0  ;;  %v2515_v52 = vpop.f32.mrb[26].mxu1  ;;  %v4627_v14 = vadd.f32 %v2513_v6, %v6184_v7 }
 0x592   :  { %v4476_v3 = vmul.f32 -1.442695, %v4586_v32  ;;  %v4588_v47 = vadd.f32 %v2472_v17, %v8320_v43  ;;  %v2474_v55 = vpop.f32.mrb[19].mxu0  ;;  %v2517_v16 = vpop.f32.mrb[27].mxu1  ;;  %v4628_v29 = vadd.f32 %v2515_v52, %v6180_v2 }
 0x593   :  { %v4478_v19 = vmul.f32 -1.442695, %v4587_v62  ;;  %v4589_v59 = vadd.f32 %v2474_v55, %v6170_v5  ;;  %v4480_v18 = vmul.f32 -1.442695, %v4627_v14  ;;  %v4629_v31 = vadd.f32 %v2517_v16, %v6184_v7 }
 0x594   :  { %5165 = vpow2.f32 %v4476_v3  ;;  %v4477_v10 = vmul.f32 -1.442695, %v4588_v47 }
 0x595   :  { %5167 = vpow2.f32 %v4478_v19  ;;  %v4479_v57 = vmul.f32 -1.442695, %v4589_v59  ;;  %v4481_v54 = vmul.f32 -1.442695, %v4629_v31 }
 0x596   :  { %5169 = vpow2.f32 %v4477_v10 }
 0x597   :  { %5171 = vpow2.f32 %v4479_v57 }
 0x598   :  { %5173 = vtanh.f32 %v4626_v34 }
 0x599   :  { %5175 = vpow2.f32 %v4480_v18 }
 0x59a   :  { %5177 = vtanh.f32 %v4628_v29 }
 0x59e   :  { %v5166_v56 = vpop.eup %5165 }
 0x59f   :  { %v5168_v44 = vpop.eup %5167  ;;  %v2534_v32 = vadd.f32 1.0, %v5166_v56 }
 0x5a0   :  { %v2546_v62 = vadd.f32 1.0, %v5168_v44  ;;  %v5170_v17 = vpop.eup %5169 }
 0x5a1   :  { %5179 = vrcp.f32 %v2534_v32  ;;  %v2535_v6 = vadd.f32 1.0, %v5170_v17  ;;  %v5172_v3 = vpop.eup %5171 }
 0x5a2   :  { %5181 = vrcp.f32 %v2546_v62  ;;  %v2547_v36 = vadd.f32 1.0, %v5172_v3  ;;  %v5174_v47 = vpop.eup %5173 }
 0x5a3   :  { %5183 = vpow2.f32 %v4481_v54  ;;  %v5176_v55 = vpop.eup %5175 }
 0x5a4   :  { %5185 = vrcp.f32 %v2535_v6  ;;  %v5178_v52 = vpop.eup %5177  ;;  %v2560_v34 = vadd.f32 1.0, %v5176_v55  ;;  %v8323_v55 = vld [vmem:[#allocation68_spill] sm:$0xff] }
 0x5a5   :  { %5187 = vrcp.f32 %v2547_v36 }
 0x5a6   :  { %5189 = vrcp.f32 %v2560_v34  ;;  %v8331_v34 = vld [vmem:[#allocation29_spill] sm:$0xff] }
 0x5ab   :  { %v5180_v16 = vpop.eup %5179 }
 0x5ac   :  { %v5182_v19 = vpop.eup %5181  ;;  %v2568_v59 = vmul.f32 %v5180_v16, %v5174_v47  ;;  %v8322_v47 = vld [vmem:[#allocation67_spill] sm:$0xff]  ;;  %v8325_v16 = vld [vmem:[#allocation45_spill] sm:$0xff] }
 0x5ad   :  { %v5184_v10 = vpop.eup %5183  ;;  %v2566_v57 = vmul.f32 %v5182_v19, %v6848_v0  ;;  %v8326_v19 = vld [vmem:[#allocation46_spill] sm:$0xff] }
 0x5ae   :  { %v5186_v14 = vpop.eup %5185  ;;  %v2561_v56 = vadd.f32 1.0, %v5184_v10  ;;  %v8328_v10 = vld [vmem:[#allocation71_spill] sm:$0xff] }
 0x5af   :  { %v7072_v18 = vadd.f32 %v2568_v59, %v2566_v57  ;;  %v2569_v31 = vmul.f32 %v5186_v14, %v5178_v52  ;;  %v5188_v29 = vpop.eup %5187  ;;  %v8324_v52 = vld [vmem:[#allocation44_spill] sm:$0xff]  ;;  %v8327_v59 = vld [vmem:[#allocation47_spill] sm:$0xff]  ;;  %v8329_v57 = vld [vmem:[#allocation69_spill] sm:$0xff] }
 0x5b0   :  { %v2567_v44 = vmul.f32 %v5188_v29, %v6852_v25  ;;  %v5190_v54 = vpop.eup %5189  ;;  %v8321_v25 = vld [vmem:[#allocation66_spill] sm:$0xff]  ;;  %v8330_v14 = vld [vmem:[#allocation28_spill] sm:$0xff]  ;;  %v8333_v29 = vld [vmem:[#allocation31_spill] sm:$0xff] }
 0x5b1   :  { %5191 = vtanh.f32 %v7072_v18 }
 0x5b2   :  { %v7076_v32 = vadd.f32 %v2569_v31, %v2567_v44  ;;  %5193 = vrcp.f32 %v2561_v56  ;;  %v8332_v31 = vld [vmem:[#allocation30_spill] sm:$0xff]  ;;  %v8334_v56 = vld [vmem:[#allocation32_spill] sm:$0xff]  ;;  %v8335_v44 = vld [vmem:[#allocation33_spill] sm:$0xff] }
 0x5b4   :  { %5195 = vtanh.f32 %v7076_v32 }
 0x5bb   :  { %v5192_v62 = vpop.eup %5191 }
 0x5bc   :  { %v5194_v0 = vpop.eup %5193  ;;  %v2574_v6 = vmul.f32 %v5192_v62, %v5190_v54  ;;  %v8336_v54 = vld [vmem:[#allocation34_spill] sm:$0xff]  ;;  %v8337_v62 = vld [vmem:[#allocation35_spill] sm:$0xff] }
 0x5be   :  { %v5196_v17 = vpop.eup %5195 }
 0x5bf   :  { %v2575_v3 = vmul.f32 %v5196_v17, %v5194_v0  ;;  %v8338_v0 = vld [vmem:[#allocation36_spill] sm:$0xff]  ;;  %v8339_v17 = vld [vmem:[#allocation37_spill] sm:$0xff] }
 0x5c1   :  { %v7079_v36 = vpack.c.bf16 %v2575_v3, %v2574_v6  ;;  %v8340_v6 = vld [vmem:[#allocation38_spill] sm:$0xff]  ;;  %v8341_v3 = vld [vmem:[#allocation39_spill] sm:$0xff] }
 0x5c3   :  { %2847 = vmatmul.mubr.bf16.vlgmr.msra.gmra.mrb[20].mxu0 %v7079_v36  ;;  %2890 = vmatmul.mubr.bf16.vlgmr.msra.gmra.mrb[28].mxu1 %v7079_v36 }
 0x5c4   :  { %2958 = vmatpush1.bf16.msra.mxu0 %v8321_v25  ;;  %3001 = vmatpush1.bf16.msra.mxu1 %v8322_v47 }
 0x5c5   :  { %2959 = vmatprep.subr.bf16.mxu0 %v8323_v55  ;;  %3002 = vmatprep.subr.bf16.mxu1 %v8324_v52 }
 0x5c6   :  { %2989 = vmatprep.mubr.bf16.mxu0 %v8095_v45  ;;  %3032 = vmatprep.mubr.bf16.mxu1 %v8095_v45 }
 0x5c8   :  { %2960 = vmatpush1.bf16.msra.mxu0 %v8325_v16  ;;  %3003 = vmatpush1.bf16.msra.mxu1 %v8326_v19 }
 0x5c9   :  { %2961 = vmatprep.subr.bf16.mxu0 %v8327_v59  ;;  %3004 = vmatprep.subr.bf16.mxu1 %v8328_v10 }
 0x5cc   :  { %2962 = vmatpush1.bf16.msra.mxu0 %v8329_v57  ;;  %3005 = vmatpush1.bf16.msra.mxu1 %v8330_v14  ;;  %v8353_v14 = vld [vmem:[#allocation70_spill] sm:$0xff] }
 0x5cd   :  { %2963 = vmatprep.subr.bf16.mxu0 %v8331_v34  ;;  %3006 = vmatprep.subr.bf16.mxu1 %v8332_v31  ;;  %v8342_v34 = vld [vmem:[#allocation40_spill] sm:$0xff] }
 0x5ce   :  { %v8343_v31 = vld [vmem:[#allocation72_spill] sm:$0xff] }
 0x5d0   :  { %2964 = vmatpush1.bf16.msra.mxu0 %v8333_v29  ;;  %3007 = vmatpush1.bf16.msra.mxu1 %v8334_v56  ;;  %v8344_v29 = vld [vmem:[#allocation73_spill] sm:$0xff]  ;;  %v8345_v56 = vld [vmem:[#allocation74_spill] sm:$0xff] }
 0x5d1   :  { %2965 = vmatprep.subr.bf16.mxu0 %v8335_v44  ;;  %3008 = vmatprep.subr.bf16.mxu1 %v8336_v54  ;;  %v8346_v44 = vld [vmem:[#allocation75_spill] sm:$0xff]  ;;  %v8347_v54 = vld [vmem:[#allocation76_spill] sm:$0xff] }
 0x5d4   :  { %2966 = vmatpush1.bf16.msra.mxu0 %v8337_v62  ;;  %3009 = vmatpush1.bf16.msra.mxu1 %v8338_v0  ;;  %v8348_v62 = vld [vmem:[#allocation77_spill] sm:$0xff]  ;;  %v8349_v0 = vld [vmem:[#allocation78_spill] sm:$0xff] }
 0x5d5   :  { %2967 = vmatprep.subr.bf16.mxu0 %v8339_v17  ;;  %3010 = vmatprep.subr.bf16.mxu1 %v8340_v6  ;;  %v8350_v17 = vld [vmem:[#allocation79_spill] sm:$0xff]  ;;  %v8351_v6 = vld [vmem:[#allocation80_spill] sm:$0xff] }
 0x5d8   :  { %2968 = vmatpush1.bf16.msra.mxu0 %v8341_v3  ;;  %3011 = vmatpush1.bf16.msra.mxu1 %v8342_v34  ;;  %v8352_v3 = vld [vmem:[#allocation81_spill] sm:$0xff] }
 0x5d9   :  { %2969 = vmatprep.subr.bf16.mxu0 %v8343_v31  ;;  %3012 = vmatprep.subr.bf16.mxu1 %v8344_v29 }
 0x5dc   :  { %2970 = vmatpush1.bf16.msra.mxu0 %v8345_v56  ;;  %3013 = vmatpush1.bf16.msra.mxu1 %v8346_v44 }
 0x5dd   :  { %2971 = vmatprep.subr.bf16.mxu0 %v8347_v54  ;;  %3014 = vmatprep.subr.bf16.mxu1 %v8348_v62 }
 0x5e0   :  { %2972 = vmatpush1.bf16.msra.mxu0 %v8349_v0  ;;  %3015 = vmatpush1.bf16.msra.mxu1 %v8350_v17 }
 0x5e1   :  { %3043 = vmatprep.subr.bf16.mxu0 %v8351_v6  ;;  %3086 = vmatprep.subr.bf16.mxu1 %v8352_v3 }
 0x62f   :  { %v2697_v34 = vpop.f32.mrb[36].mxu0  ;;  %v2740_v31 = vpop.f32.mrb[52].mxu1 }
 0x630   :  { %v2749_v29 = vadd.f32 %v2697_v34, %v8353_v14  ;;  %v2699_v57 = vpop.f32.mrb[37].mxu0  ;;  %v2742_v56 = vpop.f32.mrb[53].mxu1 }
 0x631   :  { %v2750_v44 = vadd.f32 %v2699_v57, %v8228_v20  ;;  %v2701_v10 = vpop.f32.mrb[38].mxu0  ;;  %v2744_v54 = vpop.f32.mrb[54].mxu1  ;;  %v2752_v34 = vadd.f32 %v2742_v56, %v8229_v37  ;;  %v2751_v57 = vadd.f32 %v2740_v31, %v8230_v42 }
 0x632   :  { %v4482_v59 = vmul.f32 -1.442695, %v2749_v29  ;;  %v2753_v62 = vadd.f32 %v2701_v10, %v8353_v14  ;;  %v2703_v0 = vpop.f32.mrb[39].mxu0  ;;  %v2746_v19 = vpop.f32.mrb[55].mxu1  ;;  %v2755_v10 = vadd.f32 %v2744_v54, %v8230_v42 }
 0x633   :  { %v4484_v17 = vmul.f32 -1.442695, %v2750_v44  ;;  %v2754_v6 = vadd.f32 %v2703_v0, %v8228_v20  ;;  %v4486_v52 = vmul.f32 -1.442695, %v2752_v34  ;;  %v2756_v29 = vadd.f32 %v2746_v19, %v8229_v37 }
 0x634   :  { %5197 = vpow2.f32 %v4482_v59  ;;  %v4483_v3 = vmul.f32 -1.442695, %v2753_v62 }
 0x635   :  { %5199 = vpow2.f32 %v4484_v17  ;;  %v4485_v16 = vmul.f32 -1.442695, %v2754_v6  ;;  %v4487_v59 = vmul.f32 -1.442695, %v2756_v29 }
 0x636   :  { %5201 = vpow2.f32 %v4483_v3 }
 0x637   :  { %5203 = vpow2.f32 %v4485_v16 }
 0x638   :  { %5205 = vtanh.f32 %v2751_v57 }
 0x639   :  { %5207 = vpow2.f32 %v4486_v52 }
 0x63a   :  { %5209 = vtanh.f32 %v2755_v10 }
 0x63e   :  { %v5198_v14 = vpop.eup %5197 }
 0x63f   :  { %v5200_v44 = vpop.eup %5199  ;;  %v2763_v55 = vadd.f32 1.0, %v5198_v14 }
 0x640   :  { %v2775_v62 = vadd.f32 1.0, %v5200_v44  ;;  %v5202_v0 = vpop.eup %5201 }
 0x641   :  { %5211 = vrcp.f32 %v2763_v55  ;;  %v2764_v56 = vadd.f32 1.0, %v5202_v0  ;;  %v5204_v16 = vpop.eup %5203 }
 0x642   :  { %5213 = vrcp.f32 %v2775_v62  ;;  %v2776_v31 = vadd.f32 1.0, %v5204_v16  ;;  %v5206_v19 = vpop.eup %5205 }
 0x643   :  { %5215 = vpow2.f32 %v4487_v59  ;;  %v5208_v17 = vpop.eup %5207 }
 0x644   :  { %5217 = vrcp.f32 %v2764_v56  ;;  %v5210_v54 = vpop.eup %5209  ;;  %v2789_v29 = vadd.f32 1.0, %v5208_v17 }
 0x645   :  { %5219 = vrcp.f32 %v2776_v31 }
 0x646   :  { %5221 = vrcp.f32 %v2789_v29 }
 0x64b   :  { %v5212_v6 = vpop.eup %5211 }
 0x64c   :  { %v5214_v3 = vpop.eup %5213  ;;  %v2797_v34 = vmul.f32 %v5212_v6, %v5206_v19 }
 0x64d   :  { %v5216_v14 = vpop.eup %5215  ;;  %v2795_v52 = vmul.f32 %v5214_v3, %v6966_v49 }
 0x64e   :  { %v5218_v57 = vpop.eup %5217  ;;  %v2790_v62 = vadd.f32 1.0, %v5216_v14  ;;  %v7240_v14 = vld [vmem:[#allocation8 + $0xa8] ss:$16 sps:$4 sm:$0xff]  }
 0x64f   :  { %v7126_v10 = vadd.f32 %v2797_v34, %v2795_v52  ;;  %v2798_v55 = vmul.f32 %v5218_v57, %v5210_v54  ;;  %v5220_v44 = vpop.eup %5219  ;;  %v7237_v34 = vld [vmem:[#allocation8 + $0xa0] ss:$16 sps:$4 sm:$0xff]  }
 0x650   :  { %v2796_v59 = vmul.f32 %v5220_v44, %v6970_v58  ;;  %v5222_v56 = vpop.eup %5221  ;;  %v7229_v58 = vld [vmem:[#allocation8 + $0xa4] ss:$16 sps:$4 sm:$0xff]  }
 0x651   :  { %5223 = vtanh.f32 %v7126_v10  ;;  %v7244_v44 = vld [vmem:[#allocation8 + $0xc4] ss:$16 sps:$4 sm:$0xff]  }
 0x652   :  { %v7130_v0 = vadd.f32 %v2798_v55, %v2796_v59  ;;  %5225 = vrcp.f32 %v2790_v62  ;;  %v7247_v62 = vld [vmem:[#allocation8 + $0xcc] ss:$16 sps:$4 sm:$0xff]  }
 0x654   :  { %5227 = vtanh.f32 %v7130_v0 }
 0x65b   :  { %v5224_v16 = vpop.eup %5223 }
 0x65c   :  { %v5226_v49 = vpop.eup %5225  ;;  %v2803_v19 = vmul.f32 %v5224_v16, %v5222_v56 }
 0x65e   :  { %v5228_v31 = vpop.eup %5227 }
 0x65f   :  { %v2804_v17 = vmul.f32 %v5228_v31, %v5226_v49  ;;  %v7251_v31 = vld [vmem:[#allocation8 + $0xc0] ss:$16 sps:$4 sm:$0xff]  }
 0x661   :  { %v2805_v6 = vpack.c.bf16 %v2804_v17, %v2803_v19  ;;  %v7254_v19 = vld [vmem:[#allocation8 + $0xc8] ss:$16 sps:$4 sm:$0xff]   ;;  %v7257_v17 = vld [vmem:[#allocation8 + $0xe4] ss:$16 sps:$4 sm:$0xff]  }
 0x662   :  { %8354 = vst [vmem:[#allocation41_spill] sm:$0xff] %v7257_v17 }
 0x663   :  { %2990 = vmatmul.mubr.bf16.vlgmr.msra.gmra.mrb[40].mxu0 %v2805_v6  ;;  %3033 = vmatmul.mubr.bf16.vlgmr.msra.gmra.mrb[56].mxu1 %v2805_v6  ;;  %v7260_v6 = vld [vmem:[#allocation8 + $0xec] ss:$16 sps:$4 sm:$0xff]  }
 0x664   :  { %3044 = vmatpush1.bf16.msra.mxu0 %v6729_v12  ;;  %3087 = vmatpush1.bf16.msra.mxu1 %v6732_v38  ;;  %v7165_v12 = vld [vmem:[#allocation8 + $0x4] ss:$16 sps:$4 sm:$0xff]   ;;  %v7168_v38 = vld [vmem:[#allocation8 + $0xc] ss:$16 sps:$4 sm:$0xff]   ;;  %8355 = vst [vmem:[#allocation42_spill] sm:$0xff] %v7260_v6 }
 0x665   :  { %3045 = vmatprep.subr.bf16.mxu0 %v6735_v22  ;;  %3088 = vmatprep.subr.bf16.mxu1 %v6738_v11  ;;  %v7173_v22 = vld [vmem:[#allocation8] ss:$16 sps:$4 sm:$0xff]   ;;  %v7176_v11 = vld [vmem:[#allocation8 + $0x8] ss:$16 sps:$4 sm:$0xff]  }
 0x666   :  { %3075 = vmatprep.mubr.bf16.mxu0 %v8095_v45  ;;  %3118 = vmatprep.mubr.bf16.mxu1 %v8095_v45 }
 0x668   :  { %3046 = vmatpush1.bf16.msra.mxu0 %v6743_v26  ;;  %3089 = vmatpush1.bf16.msra.mxu1 %v6746_v28  ;;  %v7179_v26 = vld [vmem:[#allocation8 + $0x24] ss:$16 sps:$4 sm:$0xff]   ;;  %v7182_v28 = vld [vmem:[#allocation8 + $0x2c] ss:$16 sps:$4 sm:$0xff]  }
 0x669   :  { %3047 = vmatprep.subr.bf16.mxu0 %v6749_v35  ;;  %3090 = vmatprep.subr.bf16.mxu1 %v6752_v40  ;;  %v7187_v35 = vld [vmem:[#allocation8 + $0x20] ss:$16 sps:$4 sm:$0xff]   ;;  %v7190_v40 = vld [vmem:[#allocation8 + $0x28] ss:$16 sps:$4 sm:$0xff]  }
 0x66c   :  { %3048 = vmatpush1.bf16.msra.mxu0 %v6755_v60  ;;  %3091 = vmatpush1.bf16.msra.mxu1 %v6758_v39  ;;  %v7193_v60 = vld [vmem:[#allocation8 + $0x44] ss:$16 sps:$4 sm:$0xff]   ;;  %v7196_v39 = vld [vmem:[#allocation8 + $0x4c] ss:$16 sps:$4 sm:$0xff]  }
 0x66d   :  { %3049 = vmatprep.subr.bf16.mxu0 %v6761_v13  ;;  %3092 = vmatprep.subr.bf16.mxu1 %v6764_v15  ;;  %v7199_v13 = vld [vmem:[#allocation8 + $0x40] ss:$16 sps:$4 sm:$0xff]   ;;  %v7202_v15 = vld [vmem:[#allocation8 + $0x48] ss:$16 sps:$4 sm:$0xff]  }
 0x670   :  { %3050 = vmatpush1.bf16.msra.mxu0 %v6767_v27  ;;  %3093 = vmatpush1.bf16.msra.mxu1 %v6770_v50  ;;  %v7205_v27 = vld [vmem:[#allocation8 + $0x64] ss:$16 sps:$4 sm:$0xff]   ;;  %v7208_v50 = vld [vmem:[#allocation8 + $0x6c] ss:$16 sps:$4 sm:$0xff]  }
 0x671   :  { %3051 = vmatprep.subr.bf16.mxu0 %v6773_v51  ;;  %3094 = vmatprep.subr.bf16.mxu1 %v6776_v4  ;;  %v7211_v51 = vld [vmem:[#allocation8 + $0x60] ss:$16 sps:$4 sm:$0xff]   ;;  %v7214_v4 = vld [vmem:[#allocation8 + $0x68] ss:$16 sps:$4 sm:$0xff]  }
 0x674   :  { %3052 = vmatpush1.bf16.msra.mxu0 %v6779_v30  ;;  %3095 = vmatpush1.bf16.msra.mxu1 %v6782_v24  ;;  %v7217_v30 = vld [vmem:[#allocation8 + $0x84] ss:$16 sps:$4 sm:$0xff]   ;;  %v7220_v24 = vld [vmem:[#allocation8 + $0x8c] ss:$16 sps:$4 sm:$0xff]  }
 0x675   :  { %3053 = vmatprep.subr.bf16.mxu0 %v6785_v1  ;;  %3096 = vmatprep.subr.bf16.mxu1 %v6788_v53  ;;  %v7223_v1 = vld [vmem:[#allocation8 + $0x80] ss:$16 sps:$4 sm:$0xff]   ;;  %v7226_v53 = vld [vmem:[#allocation8 + $0x88] ss:$16 sps:$4 sm:$0xff]  }
 0x678   :  { %3054 = vmatpush1.bf16.msra.mxu0 %v6995_v63  ;;  %3097 = vmatpush1.bf16.msra.mxu1 %v6998_v33 }
 0x679   :  { %3055 = vmatprep.subr.bf16.mxu0 %v7001_v9  ;;  %3098 = vmatprep.subr.bf16.mxu1 %v7004_v8 }
 0x67c   :  { %3056 = vmatpush1.bf16.msra.mxu0 %v7007_v41  ;;  %3099 = vmatpush1.bf16.msra.mxu1 %v7010_v46  ;;  %v7232_v41 = vld [vmem:[#allocation8 + $0xac] ss:$16 sps:$4 sm:$0xff]  }
 0x67d   :  { %3057 = vmatprep.subr.bf16.mxu0 %v7013_v48  ;;  %3100 = vmatprep.subr.bf16.mxu1 %v7016_v61 }
 0x680   :  { %3058 = vmatpush1.bf16.msra.mxu0 %v7019_v21  ;;  %3101 = vmatpush1.bf16.msra.mxu1 %v7022_v23 }
 0x681   :  { %3194 = vmatprep.subr.bf16.mxu0 %v7165_v12  ;;  %3237 = vmatprep.subr.bf16.mxu1 %v7168_v38 }
 0x683   :  { %3076 = vmatmul.mubr.bf16.vlgmr.msra.gmra.mrb[40].mxu0 %v7079_v36  ;;  %3119 = vmatmul.mubr.bf16.vlgmr.msra.gmra.mrb[56].mxu1 %v7079_v36 }
 0x684   :  { %3195 = vmatpush1.bf16.msra.mxu0 %v7173_v22  ;;  %3238 = vmatpush1.bf16.msra.mxu1 %v7176_v11 }
 0x685   :  { %3196 = vmatprep.subr.bf16.mxu0 %v7179_v26  ;;  %3239 = vmatprep.subr.bf16.mxu1 %v7182_v28 }
 0x686   :  { %3226 = vmatprep.mubr.bf16.mxu0 %v8095_v45  ;;  %3269 = vmatprep.mubr.bf16.mxu1 %v8095_v45 }
 0x688   :  { %3197 = vmatpush1.bf16.msra.mxu0 %v7187_v35  ;;  %3240 = vmatpush1.bf16.msra.mxu1 %v7190_v40 }
 0x689   :  { %3198 = vmatprep.subr.bf16.mxu0 %v7193_v60  ;;  %3241 = vmatprep.subr.bf16.mxu1 %v7196_v39 }
 0x68c   :  { %3199 = vmatpush1.bf16.msra.mxu0 %v7199_v13  ;;  %3242 = vmatpush1.bf16.msra.mxu1 %v7202_v15 }
 0x68d   :  { %3200 = vmatprep.subr.bf16.mxu0 %v7205_v27  ;;  %3243 = vmatprep.subr.bf16.mxu1 %v7208_v50 }
 0x690   :  { %3201 = vmatpush1.bf16.msra.mxu0 %v7211_v51  ;;  %3244 = vmatpush1.bf16.msra.mxu1 %v7214_v4 }
 0x691   :  { %3202 = vmatprep.subr.bf16.mxu0 %v7217_v30  ;;  %3245 = vmatprep.subr.bf16.mxu1 %v7220_v24 }
 0x694   :  { %3203 = vmatpush1.bf16.msra.mxu0 %v7223_v1  ;;  %3246 = vmatpush1.bf16.msra.mxu1 %v7226_v53 }
 0x695   :  { %3204 = vmatprep.subr.bf16.mxu0 %v7229_v58  ;;  %3247 = vmatprep.subr.bf16.mxu1 %v7232_v41 }
 0x696   :  { %v2848_v46 = vpop.f32.mrb[20].mxu0  ;;  %v2891_v48 = vpop.f32.mrb[28].mxu1 }
 0x697   :  { %v4590_v61 = vadd.f32 %v2848_v46, %v8320_v43  ;;  %v2850_v21 = vpop.f32.mrb[21].mxu0  ;;  %v2893_v23 = vpop.f32.mrb[29].mxu1 }
 0x698   :  { %v4591_v36 = vadd.f32 %v2850_v21, %v6170_v5  ;;  %v2852_v54 = vpop.f32.mrb[22].mxu0  ;;  %v2895_v3 = vpop.f32.mrb[30].mxu1  ;;  %3205 = vmatpush1.bf16.msra.mxu0 %v7237_v34  ;;  %3248 = vmatpush1.bf16.msra.mxu1 %v7240_v14  ;;  %v4631_v46 = vadd.f32 %v2893_v23, %v6184_v7  ;;  %v7267_v21 = vld [vmem:[#allocation8 + $0xe8] ss:$16 sps:$4 sm:$0xff]  }
 0x699   :  { %v4488_v52 = vmul.f32 -1.442695, %v4590_v61  ;;  %v4592_v57 = vadd.f32 %v2852_v54, %v8320_v43  ;;  %v2854_v29 = vpop.f32.mrb[23].mxu0  ;;  %v2897_v55 = vpop.f32.mrb[31].mxu1  ;;  %3206 = vmatprep.subr.bf16.mxu0 %v7244_v44  ;;  %3249 = vmatprep.subr.bf16.mxu1 %v7247_v62  ;;  %v7264_v61 = vld [vmem:[#allocation8 + $0xe0] ss:$16 sps:$4 sm:$0xff]  }
 0x69a   :  { %v4490_v59 = vmul.f32 -1.442695, %v4591_v36  ;;  %v4593_v56 = vadd.f32 %v2854_v29, %v6170_v5  ;;  %8356 = vst [vmem:[#allocation43_spill] sm:$0xff] %v7264_v61  ;;  %8357 = vst [vmem:[#allocation48_spill] sm:$0xff] %v7267_v21  ;;  %v4630_v36 = vadd.f32 %v2891_v48, %v6180_v2  ;;  %v7271_v54 = vld [vmem:[#allocation11 + $0x4] ss:$16 sps:$4 sm:$0xff]   ;;  %v4632_v29 = vadd.f32 %v2895_v3, %v6180_v2 }
 0x69b   :  { %5229 = vpow2.f32 %v4488_v52  ;;  %v4489_v16 = vmul.f32 -1.442695, %v4592_v57  ;;  %8358 = vst [vmem:[#allocation49_spill] sm:$0xff] %v7271_v54  ;;  %v7274_v52 = vld [vmem:[#allocation11 + $0xc] ss:$16 sps:$4 sm:$0xff]   ;;  %v4633_v57 = vadd.f32 %v2897_v55, %v6184_v7 }
 0x69c   :  { %5231 = vpow2.f32 %v4490_v59  ;;  %v4491_v49 = vmul.f32 -1.442695, %v4593_v56  ;;  %3207 = vmatpush1.bf16.msra.mxu0 %v7251_v31  ;;  %3250 = vmatpush1.bf16.msra.mxu1 %v7254_v19  ;;  %8359 = vst [vmem:[#allocation50_spill] sm:$0xff] %v7274_v52  ;;  %v4492_v23 = vmul.f32 -1.442695, %v4631_v46 }
 0x69d   :  { %3208 = vmatprep.subr.bf16.mxu0 %v7257_v17  ;;  %3251 = vmatprep.subr.bf16.mxu1 %v7260_v6  ;;  %5233 = vpow2.f32 %v4489_v16 }
 0x69e   :  { %5235 = vpow2.f32 %v4491_v49  ;;  %v4493_v49 = vmul.f32 -1.442695, %v4633_v57 }
 0x69f   :  { %5237 = vtanh.f32 %v4630_v36 }
 0x6a0   :  { %3209 = vmatpush1.bf16.msra.mxu0 %v7264_v61  ;;  %3252 = vmatpush1.bf16.msra.mxu1 %v7267_v21  ;;  %5239 = vpow2.f32 %v4492_v23 }
 0x6a1   :  { %3337 = vmatprep.subr.bf16.mxu0 %v7271_v54  ;;  %3380 = vmatprep.subr.bf16.mxu1 %v7274_v52  ;;  %5241 = vtanh.f32 %v4632_v29 }
 0x6a5   :  { %v5230_v59 = vpop.eup %5229 }
 0x6a6   :  { %v5232_v56 = vpop.eup %5231  ;;  %v2914_v16 = vadd.f32 1.0, %v5230_v59 }
 0x6a7   :  { %v2926_v48 = vadd.f32 1.0, %v5232_v56  ;;  %v5234_v21 = vpop.eup %5233 }
 0x6a8   :  { %5243 = vrcp.f32 %v2914_v16  ;;  %v2915_v54 = vadd.f32 1.0, %v5234_v21  ;;  %v5236_v61 = vpop.eup %5235 }
 0x6a9   :  { %5245 = vrcp.f32 %v2926_v48  ;;  %v2927_v46 = vadd.f32 1.0, %v5236_v61  ;;  %v5238_v55 = vpop.eup %5237 }
 0x6aa   :  { %5247 = vpow2.f32 %v4493_v49  ;;  %v5240_v52 = vpop.eup %5239 }
 0x6ab   :  { %5249 = vrcp.f32 %v2915_v54  ;;  %v5242_v3 = vpop.eup %5241  ;;  %v2940_v29 = vadd.f32 1.0, %v5240_v52 }
 0x6ac   :  { %5251 = vrcp.f32 %v2927_v46 }
 0x6ad   :  { %5253 = vrcp.f32 %v2940_v29  ;;  %v8366_v29 = vld [vmem:[#allocation69_spill] sm:$0xff] }
 0x6b2   :  { %v5244_v6 = vpop.eup %5243 }
 0x6b3   :  { %v5246_v36 = vpop.eup %5245  ;;  %v2948_v17 = vmul.f32 %v5244_v6, %v5238_v55 }
 0x6b4   :  { %v5248_v59 = vpop.eup %5247  ;;  %v2946_v23 = vmul.f32 %v5246_v36, %v7072_v18  ;;  %v8362_v36 = vld [vmem:[#allocation45_spill] sm:$0xff] }
 0x6b5   :  { %v5250_v57 = vpop.eup %5249  ;;  %v2941_v48 = vadd.f32 1.0, %v5248_v59  ;;  %v8363_v59 = vld [vmem:[#allocation46_spill] sm:$0xff] }
 0x6b6   :  { %v7280_v56 = vadd.f32 %v2948_v17, %v2946_v23  ;;  %v2949_v16 = vmul.f32 %v5250_v57, %v5242_v3  ;;  %v5252_v21 = vpop.eup %5251  ;;  %v8361_v3 = vld [vmem:[#allocation44_spill] sm:$0xff]  ;;  %v8364_v23 = vld [vmem:[#allocation47_spill] sm:$0xff] }
 0x6b7   :  { %v2947_v54 = vmul.f32 %v5252_v21, %v7076_v32  ;;  %v5254_v6 = vpop.eup %5253  ;;  %v8360_v32 = vld [vmem:[#allocation68_spill] sm:$0xff]  ;;  %v8365_v57 = vld [vmem:[#allocation71_spill] sm:$0xff] }
 0x6b8   :  { %5255 = vtanh.f32 %v7280_v56  ;;  %v8370_v21 = vld [vmem:[#allocation31_spill] sm:$0xff] }
 0x6b9   :  { %v7284_v61 = vadd.f32 %v2949_v16, %v2947_v54  ;;  %5257 = vrcp.f32 %v2941_v48  ;;  %v8369_v16 = vld [vmem:[#allocation30_spill] sm:$0xff]  ;;  %v8371_v48 = vld [vmem:[#allocation32_spill] sm:$0xff]  ;;  %v8372_v54 = vld [vmem:[#allocation33_spill] sm:$0xff] }
 0x6bb   :  { %5259 = vtanh.f32 %v7284_v61 }
 0x6c2   :  { %v5256_v49 = vpop.eup %5255 }
 0x6c3   :  { %v5258_v18 = vpop.eup %5257  ;;  %v2954_v52 = vmul.f32 %v5256_v49, %v5254_v6  ;;  %v8373_v6 = vld [vmem:[#allocation34_spill] sm:$0xff]  ;;  %v8374_v49 = vld [vmem:[#allocation35_spill] sm:$0xff] }
 0x6c5   :  { %v5260_v46 = vpop.eup %5259 }
 0x6c6   :  { %v2955_v17 = vmul.f32 %v5260_v46, %v5258_v18  ;;  %v8375_v18 = vld [vmem:[#allocation36_spill] sm:$0xff]  ;;  %v8376_v46 = vld [vmem:[#allocation37_spill] sm:$0xff] }
 0x6c8   :  { %v7287_v55 = vpack.c.bf16 %v2955_v17, %v2954_v52  ;;  %v8377_v52 = vld [vmem:[#allocation38_spill] sm:$0xff]  ;;  %v8378_v17 = vld [vmem:[#allocation39_spill] sm:$0xff] }
 0x6ca   :  { %3227 = vmatmul.mubr.bf16.vlgmr.msra.gmra.mrb[44].mxu0 %v7287_v55  ;;  %3270 = vmatmul.mubr.bf16.vlgmr.msra.gmra.mrb[32].mxu1 %v7287_v55 }
 0x6cb   :  { %3338 = vmatpush1.bf16.msra.mxu0 %v8321_v25  ;;  %3381 = vmatpush1.bf16.msra.mxu1 %v8322_v47  ;;  %v8367_v25 = vld [vmem:[#allocation28_spill] sm:$0xff]  ;;  %v8368_v47 = vld [vmem:[#allocation29_spill] sm:$0xff] }
 0x6cc   :  { %3339 = vmatprep.subr.bf16.mxu0 %v8360_v32  ;;  %3382 = vmatprep.subr.bf16.mxu1 %v8361_v3  ;;  %v8379_v32 = vld [vmem:[#allocation40_spill] sm:$0xff] }
 0x6cd   :  { %3369 = vmatprep.mubr.bf16.mxu0 %v8095_v45  ;;  %3412 = vmatprep.mubr.bf16.mxu1 %v8095_v45  ;;  %v8380_v3 = vld [vmem:[#allocation72_spill] sm:$0xff] }
 0x6cf   :  { %3340 = vmatpush1.bf16.msra.mxu0 %v8362_v36  ;;  %3383 = vmatpush1.bf16.msra.mxu1 %v8363_v59  ;;  %v8381_v36 = vld [vmem:[#allocation73_spill] sm:$0xff]  ;;  %v8382_v59 = vld [vmem:[#allocation74_spill] sm:$0xff] }
 0x6d0   :  { %3341 = vmatprep.subr.bf16.mxu0 %v8364_v23  ;;  %3384 = vmatprep.subr.bf16.mxu1 %v8365_v57  ;;  %v8383_v23 = vld [vmem:[#allocation75_spill] sm:$0xff]  ;;  %v8384_v57 = vld [vmem:[#allocation76_spill] sm:$0xff] }
 0x6d3   :  { %3342 = vmatpush1.bf16.msra.mxu0 %v8366_v29  ;;  %3385 = vmatpush1.bf16.msra.mxu1 %v8367_v25  ;;  %v8385_v29 = vld [vmem:[#allocation77_spill] sm:$0xff]  ;;  %v8386_v25 = vld [vmem:[#allocation78_spill] sm:$0xff] }
 0x6d4   :  { %3343 = vmatprep.subr.bf16.mxu0 %v8368_v47  ;;  %3386 = vmatprep.subr.bf16.mxu1 %v8369_v16  ;;  %v8387_v47 = vld [vmem:[#allocation79_spill] sm:$0xff]  ;;  %v8388_v16 = vld [vmem:[#allocation80_spill] sm:$0xff] }
 0x6d7   :  { %3344 = vmatpush1.bf16.msra.mxu0 %v8370_v21  ;;  %3387 = vmatpush1.bf16.msra.mxu1 %v8371_v48  ;;  %v8389_v21 = vld [vmem:[#allocation81_spill] sm:$0xff] }
 0x6d8   :  { %3345 = vmatprep.subr.bf16.mxu0 %v8372_v54  ;;  %3388 = vmatprep.subr.bf16.mxu1 %v8373_v6  ;;  %v8390_v6 = vld [vmem:[#allocation70_spill] sm:$0xff] }
 0x6db   :  { %3346 = vmatpush1.bf16.msra.mxu0 %v8374_v49  ;;  %3389 = vmatpush1.bf16.msra.mxu1 %v8375_v18 }
 0x6dc   :  { %3347 = vmatprep.subr.bf16.mxu0 %v8376_v46  ;;  %3390 = vmatprep.subr.bf16.mxu1 %v8377_v52 }
 0x6df   :  { %3348 = vmatpush1.bf16.msra.mxu0 %v8378_v17  ;;  %3391 = vmatpush1.bf16.msra.mxu1 %v8379_v32 }
 0x6e0   :  { %3349 = vmatprep.subr.bf16.mxu0 %v8380_v3  ;;  %3392 = vmatprep.subr.bf16.mxu1 %v8381_v36 }
 0x6e3   :  { %3350 = vmatpush1.bf16.msra.mxu0 %v8382_v59  ;;  %3393 = vmatpush1.bf16.msra.mxu1 %v8383_v23 }
 0x6e4   :  { %3351 = vmatprep.subr.bf16.mxu0 %v8384_v57  ;;  %3394 = vmatprep.subr.bf16.mxu1 %v8385_v29 }
 0x6e7   :  { %3352 = vmatpush1.bf16.msra.mxu0 %v8386_v25  ;;  %3395 = vmatpush1.bf16.msra.mxu1 %v8387_v47 }
 0x6e8   :  { %3423 = vmatprep.subr.bf16.mxu0 %v8388_v16  ;;  %3466 = vmatprep.subr.bf16.mxu1 %v8389_v21 }
 0x756   :  { %v3077_v48 = vpop.f32.mrb[40].mxu0  ;;  %v3120_v54 = vpop.f32.mrb[56].mxu1 }
 0x757   :  { %v3129_v49 = vadd.f32 %v3077_v48, %v8390_v6  ;;  %v3079_v18 = vpop.f32.mrb[41].mxu0  ;;  %v3122_v46 = vpop.f32.mrb[57].mxu1  ;;  %v3131_v21 = vadd.f32 %v3120_v54, %v8230_v42 }
 0x758   :  { %v3130_v52 = vadd.f32 %v3079_v18, %v8228_v20  ;;  %v3081_v17 = vpop.f32.mrb[42].mxu0  ;;  %v3124_v32 = vpop.f32.mrb[58].mxu1  ;;  %v3132_v16 = vadd.f32 %v3122_v46, %v8229_v37 }
 0x759   :  { %v4494_v3 = vmul.f32 -1.442695, %v3129_v49  ;;  %v3133_v36 = vadd.f32 %v3081_v17, %v8390_v6  ;;  %v3083_v59 = vpop.f32.mrb[43].mxu0  ;;  %v3126_v23 = vpop.f32.mrb[59].mxu1  ;;  %v3135_v18 = vadd.f32 %v3124_v32, %v8230_v42 }
 0x75a   :  { %v4496_v57 = vmul.f32 -1.442695, %v3130_v52  ;;  %v3134_v29 = vadd.f32 %v3083_v59, %v8228_v20  ;;  %v4498_v48 = vmul.f32 -1.442695, %v3132_v16  ;;  %v3136_v49 = vadd.f32 %v3126_v23, %v8229_v37 }
 0x75b   :  { %5261 = vpow2.f32 %v4494_v3  ;;  %v4495_v25 = vmul.f32 -1.442695, %v3133_v36 }
 0x75c   :  { %5263 = vpow2.f32 %v4496_v57  ;;  %v4497_v47 = vmul.f32 -1.442695, %v3134_v29  ;;  %v4499_v3 = vmul.f32 -1.442695, %v3136_v49 }
 0x75d   :  { %5265 = vpow2.f32 %v4495_v25 }
 0x75e   :  { %5267 = vpow2.f32 %v4497_v47 }
 0x75f   :  { %5269 = vtanh.f32 %v3131_v21 }
 0x760   :  { %5271 = vpow2.f32 %v4498_v48 }
 0x761   :  { %5273 = vtanh.f32 %v3135_v18 }
 0x765   :  { %v5262_v17 = vpop.eup %5261 }
 0x766   :  { %v5264_v52 = vpop.eup %5263  ;;  %v3143_v6 = vadd.f32 1.0, %v5262_v17 }
 0x767   :  { %v3155_v36 = vadd.f32 1.0, %v5264_v52  ;;  %v5266_v59 = vpop.eup %5265 }
 0x768   :  { %5275 = vrcp.f32 %v3143_v6  ;;  %v3144_v46 = vadd.f32 1.0, %v5266_v59  ;;  %v5268_v57 = vpop.eup %5267 }
 0x769   :  { %5277 = vrcp.f32 %v3155_v36  ;;  %v3156_v54 = vadd.f32 1.0, %v5268_v57  ;;  %v5270_v23 = vpop.eup %5269 }
 0x76a   :  { %5279 = vpow2.f32 %v4499_v3  ;;  %v5272_v29 = vpop.eup %5271 }
 0x76b   :  { %5281 = vrcp.f32 %v3144_v46  ;;  %v5274_v32 = vpop.eup %5273  ;;  %v3169_v18 = vadd.f32 1.0, %v5272_v29 }
 0x76c   :  { %5283 = vrcp.f32 %v3156_v54 }
 0x76d   :  { %5285 = vrcp.f32 %v3169_v18  ;;  %v7364_v18 = vld [vmem:[#allocation9 + $0x4c] ss:$16 sps:$4 sm:$0xff]  }
 0x76e   :  { %8397 = vst [vmem:[#allocation57_spill] sm:$0xff] %v7364_v18 }
 0x772   :  { %v5276_v25 = vpop.eup %5275 }
 0x773   :  { %v5278_v47 = vpop.eup %5277  ;;  %v3177_v16 = vmul.f32 %v5276_v25, %v5270_v23 }
 0x774   :  { %v5280_v21 = vpop.eup %5279  ;;  %v3175_v48 = vmul.f32 %v5278_v47, %v7126_v10  ;;  %v7347_v47 = vld [vmem:[#allocation9 + $0x24] ss:$16 sps:$4 sm:$0xff]  }
 0x775   :  { %v5282_v49 = vpop.eup %5281  ;;  %v3170_v36 = vadd.f32 1.0, %v5280_v21  ;;  %8392 = vst [vmem:[#allocation52_spill] sm:$0xff] %v7347_v47  ;;  %v7355_v21 = vld [vmem:[#allocation9 + $0x20] ss:$16 sps:$4 sm:$0xff]  }
 0x776   :  { %v7334_v17 = vadd.f32 %v3177_v16, %v3175_v48  ;;  %v3178_v6 = vmul.f32 %v5282_v49, %v5274_v32  ;;  %v5284_v52 = vpop.eup %5283  ;;  %v7341_v32 = vld [vmem:[#allocation9] ss:$16 sps:$4 sm:$0xff]   ;;  %v7350_v16 = vld [vmem:[#allocation9 + $0x2c] ss:$16 sps:$4 sm:$0xff]   ;;  %8394 = vst [vmem:[#allocation54_spill] sm:$0xff] %v7355_v21 }
 0x777   :  { %v3176_v3 = vmul.f32 %v5284_v52, %v7130_v0  ;;  %v5286_v46 = vpop.eup %5285  ;;  %v7344_v0 = vld [vmem:[#allocation9 + $0x8] ss:$16 sps:$4 sm:$0xff]   ;;  %8393 = vst [vmem:[#allocation53_spill] sm:$0xff] %v7350_v16  ;;  %v7361_v49 = vld [vmem:[#allocation9 + $0x44] ss:$16 sps:$4 sm:$0xff]  }
 0x778   :  { %5287 = vtanh.f32 %v7334_v17  ;;  %8391 = vst [vmem:[#allocation51_spill] sm:$0xff] %v7344_v0  ;;  %v7358_v48 = vld [vmem:[#allocation9 + $0x28] ss:$16 sps:$4 sm:$0xff]   ;;  %8396 = vst [vmem:[#allocation56_spill] sm:$0xff] %v7361_v49 }
 0x779   :  { %v7338_v59 = vadd.f32 %v3178_v6, %v3176_v3  ;;  %5289 = vrcp.f32 %v3170_v36  ;;  %8395 = vst [vmem:[#allocation55_spill] sm:$0xff] %v7358_v48  ;;  %v7367_v6 = vld [vmem:[#allocation9 + $0x40] ss:$16 sps:$4 sm:$0xff]   ;;  %v7370_v52 = vld [vmem:[#allocation9 + $0x48] ss:$16 sps:$4 sm:$0xff]  }
 0x77a   :  { %8398 = vst [vmem:[#allocation58_spill] sm:$0xff] %v7367_v6  ;;  %8399 = vst [vmem:[#allocation59_spill] sm:$0xff] %v7370_v52  ;;  %v7373_v36 = vld [vmem:[#allocation9 + $0x64] ss:$16 sps:$4 sm:$0xff]   ;;  %v7376_v3 = vld [vmem:[#allocation9 + $0x6c] ss:$16 sps:$4 sm:$0xff]  }
 0x77b   :  { %5291 = vtanh.f32 %v7338_v59  ;;  %8400 = vst [vmem:[#allocation60_spill] sm:$0xff] %v7373_v36  ;;  %8401 = vst [vmem:[#allocation61_spill] sm:$0xff] %v7376_v3 }
 0x782   :  { %v5288_v57 = vpop.eup %5287 }
 0x783   :  { %v5290_v10 = vpop.eup %5289  ;;  %v3183_v23 = vmul.f32 %v5288_v57, %v5286_v46  ;;  %v7379_v46 = vld [vmem:[#allocation9 + $0x60] ss:$16 sps:$4 sm:$0xff]   ;;  %v7382_v57 = vld [vmem:[#allocation9 + $0x68] ss:$16 sps:$4 sm:$0xff]  }
 0x784   :  { %8402 = vst [vmem:[#allocation62_spill] sm:$0xff] %v7379_v46  ;;  %8403 = vst [vmem:[#allocation63_spill] sm:$0xff] %v7382_v57 }
 0x785   :  { %v5292_v54 = vpop.eup %5291 }
 0x786   :  { %v3184_v29 = vmul.f32 %v5292_v54, %v5290_v10  ;;  %v7385_v10 = vld [vmem:[#allocation9 + $0x84] ss:$16 sps:$4 sm:$0xff]   ;;  %v7388_v54 = vld [vmem:[#allocation9 + $0x8c] ss:$16 sps:$4 sm:$0xff]  }
 0x787   :  { %8404 = vst [vmem:[#allocation64_spill] sm:$0xff] %v7385_v10  ;;  %8405 = vst [vmem:[#allocation65_spill] sm:$0xff] %v7388_v54 }
 0x788   :  { %v3185_v25 = vpack.c.bf16 %v3184_v29, %v3183_v23  ;;  %v7391_v23 = vld [vmem:[#allocation9 + $0x80] ss:$16 sps:$4 sm:$0xff]   ;;  %v7394_v29 = vld [vmem:[#allocation9 + $0x88] ss:$16 sps:$4 sm:$0xff]  }
 0x789   :  { %8406 = vst [vmem:[#allocation25_spill] sm:$0xff] %v7391_v23  ;;  %8407 = vst [vmem:[#allocation66_spill] sm:$0xff] %v7394_v29 }
 0x78a   :  { %3370 = vmatmul.mubr.bf16.vlgmr.msra.gmra.mrb[48].mxu0 %v3185_v25  ;;  %3413 = vmatmul.mubr.bf16.vlgmr.msra.gmra.mrb[60].mxu1 %v3185_v25  ;;  %v8408_v25 = vld [vmem:[#allocation17_spill] sm:$0xff] }
 0x78b   :  { %3424 = vmatpush1.bf16.msra.mxu0 %v7341_v32  ;;  %3467 = vmatpush1.bf16.msra.mxu1 %v7344_v0 }
 0x78c   :  { %3425 = vmatprep.subr.bf16.mxu0 %v7347_v47  ;;  %3468 = vmatprep.subr.bf16.mxu1 %v7350_v16 }
 0x78d   :  { %3455 = vmatprep.mubr.bf16.mxu0 %v8095_v45  ;;  %3498 = vmatprep.mubr.bf16.mxu1 %v8095_v45 }
 0x78f   :  { %3426 = vmatpush1.bf16.msra.mxu0 %v7355_v21  ;;  %3469 = vmatpush1.bf16.msra.mxu1 %v7358_v48 }
 0x790   :  { %3427 = vmatprep.subr.bf16.mxu0 %v7361_v49  ;;  %3470 = vmatprep.subr.bf16.mxu1 %v7364_v18 }
 0x793   :  { %3428 = vmatpush1.bf16.msra.mxu0 %v7367_v6  ;;  %3471 = vmatpush1.bf16.msra.mxu1 %v7370_v52  ;;  %v8412_v52 = vld [vmem:[#allocation19_spill] sm:$0xff] }
 0x794   :  { %3429 = vmatprep.subr.bf16.mxu0 %v7373_v36  ;;  %3472 = vmatprep.subr.bf16.mxu1 %v7376_v3  ;;  %v334_v6 = vadd.f32 %v8412_v52, %v8320_v43 }
 0x797   :  { %3430 = vmatpush1.bf16.msra.mxu0 %v7379_v46  ;;  %3473 = vmatpush1.bf16.msra.mxu1 %v7382_v57  ;;  %v330_v46 = vadd.f32 %v8408_v25, %v8320_v43  ;;  %v7399_v57 = vld [vmem:[#allocation9 + $0xa4] ss:$16 sps:$4 sm:$0xff]   ;;  %v8413_v25 = vld [vmem:[#allocation20_spill] sm:$0xff] }
 0x798   :  { %3431 = vmatprep.subr.bf16.mxu0 %v7385_v10  ;;  %3474 = vmatprep.subr.bf16.mxu1 %v7388_v54  ;;  %8409 = vst [vmem:[#allocation67_spill] sm:$0xff] %v7399_v57  ;;  %v7402_v10 = vld [vmem:[#allocation9 + $0xac] ss:$16 sps:$4 sm:$0xff]   ;;  %v336_v48 = vadd.f32 %v8413_v25, %v6170_v5  ;;  %v7415_v25 = vld [vmem:[#allocation9 + $0xc0] ss:$16 sps:$4 sm:$0xff]  }
 0x799   :  { %8410 = vst [vmem:[#allocation68_spill] sm:$0xff] %v7402_v10  ;;  %v8411_v54 = vld [vmem:[#allocation18_spill] sm:$0xff] }
 0x79a   :  { %v332_v3 = vadd.f32 %v8411_v54, %v6170_v5 }
 0x79b   :  { %3432 = vmatpush1.bf16.msra.mxu0 %v7391_v23  ;;  %3475 = vmatpush1.bf16.msra.mxu1 %v7394_v29 }
 0x79c   :  { %3433 = vmatprep.subr.bf16.mxu0 %v7399_v57  ;;  %3476 = vmatprep.subr.bf16.mxu1 %v7402_v10 }
 0x79d   :  { %v3228_v36 = vpop.f32.mrb[44].mxu0  ;;  %v3271_v23 = vpop.f32.mrb[32].mxu1 }
 0x79e   :  { %v3280_v29 = vadd.f32 %v3228_v36, %v330_v46  ;;  %v3230_v18 = vpop.f32.mrb[45].mxu0  ;;  %v3273_v49 = vpop.f32.mrb[33].mxu1 }
 0x79f   :  { %3434 = vmatpush1.bf16.msra.mxu0 %v6995_v63  ;;  %3477 = vmatpush1.bf16.msra.mxu1 %v6998_v33  ;;  %v3281_v57 = vadd.f32 %v3230_v18, %v332_v3  ;;  %v3232_v10 = vpop.f32.mrb[46].mxu0  ;;  %v3275_v21 = vpop.f32.mrb[34].mxu1  ;;  %v7418_v63 = vld [vmem:[#allocation9 + $0xc8] ss:$16 sps:$4 sm:$0xff]  }
 0x7a0   :  { %3435 = vmatprep.subr.bf16.mxu0 %v7001_v9  ;;  %3478 = vmatprep.subr.bf16.mxu1 %v7004_v8  ;;  %v4500_v54 = vmul.f32 -1.442695, %v3280_v29  ;;  %v3284_v16 = vadd.f32 %v3232_v10, %v334_v6  ;;  %v3234_v52 = vpop.f32.mrb[47].mxu0  ;;  %v3277_v36 = vpop.f32.mrb[35].mxu1  ;;  %v7421_v9 = vld [vmem:[#allocation9 + $0xe4] ss:$16 sps:$4 sm:$0xff]  }
 0x7a1   :  { %v4502_v46 = vmul.f32 -1.442695, %v3281_v57  ;;  %v3285_v47 = vadd.f32 %v3234_v52, %v336_v48  ;;  %v7424_v8 = vld [vmem:[#allocation9 + $0xec] ss:$16 sps:$4 sm:$0xff]   ;;  %v7428_v48 = vld [vmem:[#allocation9 + $0xe0] ss:$16 sps:$4 sm:$0xff]   ;;  %v4637_v3 = vadd.f32 %v3277_v36, %v6184_v7 }
 0x7a2   :  { %5293 = vpow2.f32 %v4500_v54  ;;  %v4501_v0 = vmul.f32 -1.442695, %v3284_v16  ;;  %v4635_v16 = vadd.f32 %v3273_v49, %v6184_v7  ;;  %v7431_v18 = vld [vmem:[#allocation9 + $0xe8] ss:$16 sps:$4 sm:$0xff]  }
 0x7a3   :  { %3436 = vmatpush1.bf16.msra.mxu0 %v7415_v25  ;;  %3479 = vmatpush1.bf16.msra.mxu1 %v7418_v63  ;;  %5295 = vpow2.f32 %v4502_v46  ;;  %v4503_v33 = vmul.f32 -1.442695, %v3285_v47  ;;  %v4634_v47 = vadd.f32 %v3271_v23, %v6180_v2  ;;  %v4505_v57 = vmul.f32 -1.442695, %v4637_v3  ;;  %v7490_v36 = vld [vmem:[#allocation11 + $0x8] ss:$16 sps:$4 sm:$0xff]  }
 0x7a4   :  { %3437 = vmatprep.subr.bf16.mxu0 %v7421_v9  ;;  %3480 = vmatprep.subr.bf16.mxu1 %v7424_v8  ;;  %5297 = vpow2.f32 %v4501_v0  ;;  %v4504_v6 = vmul.f32 -1.442695, %v4635_v16  ;;  %v4636_v0 = vadd.f32 %v3275_v21, %v6180_v2  ;;  %v7493_v46 = vld [vmem:[#allocation11 + $0x24] ss:$16 sps:$4 sm:$0xff]   ;;  %v7501_v16 = vld [vmem:[#allocation11 + $0x20] ss:$16 sps:$4 sm:$0xff]  }
 0x7a5   :  { %5299 = vpow2.f32 %v4503_v33  ;;  %v7496_v33 = vld [vmem:[#allocation11 + $0x2c] ss:$16 sps:$4 sm:$0xff]  }
 0x7a6   :  { %5301 = vtanh.f32 %v4634_v47  ;;  %v7504_v47 = vld [vmem:[#allocation11 + $0x28] ss:$16 sps:$4 sm:$0xff]   ;;  %v7510_v3 = vld [vmem:[#allocation11 + $0x4c] ss:$16 sps:$4 sm:$0xff]  }
 0x7a7   :  { %3438 = vmatpush1.bf16.msra.mxu0 %v7428_v48  ;;  %3481 = vmatpush1.bf16.msra.mxu1 %v7431_v18  ;;  %5303 = vpow2.f32 %v4504_v6  ;;  %v7507_v6 = vld [vmem:[#allocation11 + $0x44] ss:$16 sps:$4 sm:$0xff]  }
 0x7a8   :  { %3574 = vmatprep.subr.bf16.mxu0 %v7165_v12  ;;  %3617 = vmatprep.subr.bf16.mxu1 %v7168_v38  ;;  %5305 = vtanh.f32 %v4636_v0  ;;  %v7513_v0 = vld [vmem:[#allocation11 + $0x40] ss:$16 sps:$4 sm:$0xff]  }
 0x7aa   :  { %3456 = vmatmul.mubr.bf16.vlgmr.msra.gmra.mrb[48].mxu0 %v7287_v55  ;;  %3499 = vmatmul.mubr.bf16.vlgmr.msra.gmra.mrb[60].mxu1 %v7287_v55 }
 0x7ab   :  { %3575 = vmatpush1.bf16.msra.mxu0 %v7173_v22  ;;  %3618 = vmatpush1.bf16.msra.mxu1 %v7176_v11 }
 0x7ac   :  { %v5294_v49 = vpop.eup %5293  ;;  %3576 = vmatprep.subr.bf16.mxu0 %v7179_v26  ;;  %3619 = vmatprep.subr.bf16.mxu1 %v7182_v28 }
 0x7ad   :  { %v5296_v12 = vpop.eup %5295  ;;  %v3294_v38 = vadd.f32 1.0, %v5294_v49  ;;  %3606 = vmatprep.mubr.bf16.mxu0 %v8095_v45  ;;  %3649 = vmatprep.mubr.bf16.mxu1 %v8095_v45  ;;  %v7516_v49 = vld [vmem:[#allocation11 + $0x48] ss:$16 sps:$4 sm:$0xff]  }
 0x7ae   :  { %v3306_v21 = vadd.f32 1.0, %v5296_v12  ;;  %v5298_v55 = vpop.eup %5297  ;;  %v7519_v12 = vld [vmem:[#allocation11 + $0x64] ss:$16 sps:$4 sm:$0xff]  }
 0x7af   :  { %5307 = vrcp.f32 %v3294_v38  ;;  %3577 = vmatpush1.bf16.msra.mxu0 %v7187_v35  ;;  %3620 = vmatpush1.bf16.msra.mxu1 %v7190_v40  ;;  %v3295_v22 = vadd.f32 1.0, %v5298_v55  ;;  %v5300_v11 = vpop.eup %5299  ;;  %v7522_v38 = vld [vmem:[#allocation11 + $0x6c] ss:$16 sps:$4 sm:$0xff]   ;;  %v7531_v55 = vld [vmem:[#allocation11 + $0x84] ss:$16 sps:$4 sm:$0xff]  }
 0x7b0   :  { %5309 = vrcp.f32 %v3306_v21  ;;  %3578 = vmatprep.subr.bf16.mxu0 %v7193_v60  ;;  %3621 = vmatprep.subr.bf16.mxu1 %v7196_v39  ;;  %v3307_v26 = vadd.f32 1.0, %v5300_v11  ;;  %v5302_v28 = vpop.eup %5301  ;;  %v7528_v21 = vld [vmem:[#allocation11 + $0x68] ss:$16 sps:$4 sm:$0xff]   ;;  %v7537_v11 = vld [vmem:[#allocation11 + $0x80] ss:$16 sps:$4 sm:$0xff]  }
 0x7b1   :  { %5311 = vpow2.f32 %v4505_v57  ;;  %v5304_v35 = vpop.eup %5303  ;;  %v7525_v57 = vld [vmem:[#allocation11 + $0x60] ss:$16 sps:$4 sm:$0xff]  }
 0x7b2   :  { %5313 = vrcp.f32 %v3295_v22  ;;  %v5306_v40 = vpop.eup %5305  ;;  %v7534_v22 = vld [vmem:[#allocation11 + $0x8c] ss:$16 sps:$4 sm:$0xff]  }
 0x7b3   :  { %3579 = vmatpush1.bf16.msra.mxu0 %v7199_v13  ;;  %3622 = vmatpush1.bf16.msra.mxu1 %v7202_v15  ;;  %5315 = vrcp.f32 %v3307_v26  ;;  %v7540_v26 = vld [vmem:[#allocation11 + $0x88] ss:$16 sps:$4 sm:$0xff]  }
 0x7b4   :  { %3580 = vmatprep.subr.bf16.mxu0 %v7205_v27  ;;  %3623 = vmatprep.subr.bf16.mxu1 %v7208_v50  ;;  %v3320_v50 = vadd.f32 1.0, %v5304_v35  ;;  %v7546_v35 = vld [vmem:[#allocation11 + $0xac] ss:$16 sps:$4 sm:$0xff]  }
 0x7b6   :  { %5317 = vrcp.f32 %v3320_v50  ;;  %v7570_v50 = vld [vmem:[#allocation11 + $0xec] ss:$16 sps:$4 sm:$0xff]  }
 0x7b7   :  { %3581 = vmatpush1.bf16.msra.mxu0 %v7211_v51  ;;  %3624 = vmatpush1.bf16.msra.mxu1 %v7214_v4  ;;  %8424 = vst [vmem:[#allocation71_spill] sm:$0xff] %v7570_v50 }
 0x7b8   :  { %3582 = vmatprep.subr.bf16.mxu0 %v7217_v30  ;;  %3625 = vmatprep.subr.bf16.mxu1 %v7220_v24 }
 0x7b9   :  { %v5308_v60 = vpop.eup %5307 }
 0x7ba   :  { %v5310_v39 = vpop.eup %5309  ;;  %v3328_v13 = vmul.f32 %v5308_v60, %v5302_v28  ;;  %v7543_v28 = vld [vmem:[#allocation11 + $0xa4] ss:$16 sps:$4 sm:$0xff]   ;;  %v7552_v60 = vld [vmem:[#allocation11 + $0xa8] ss:$16 sps:$4 sm:$0xff]  }
 0x7bb   :  { %v5312_v15 = vpop.eup %5311  ;;  %v3326_v10 = vmul.f32 %v5310_v39, %v7280_v56  ;;  %3583 = vmatpush1.bf16.msra.mxu0 %v7223_v1  ;;  %3626 = vmatpush1.bf16.msra.mxu1 %v7226_v53  ;;  %v8414_v53 = vld [vmem:[#allocation41_spill] sm:$0xff] }
 0x7bc   :  { %v5314_v27 = vpop.eup %5313  ;;  %3584 = vmatprep.subr.bf16.mxu0 %v7229_v58  ;;  %3627 = vmatprep.subr.bf16.mxu1 %v7232_v41  ;;  %v3321_v24 = vadd.f32 1.0, %v5312_v15  ;;  %v8415_v58 = vld [vmem:[#allocation42_spill] sm:$0xff]  ;;  %v8416_v41 = vld [vmem:[#allocation43_spill] sm:$0xff] }
 0x7bd   :  { %v7464_v51 = vadd.f32 %v3328_v13, %v3326_v10  ;;  %v3329_v4 = vmul.f32 %v5314_v27, %v5306_v40  ;;  %v5316_v30 = vpop.eup %5315  ;;  %v7549_v40 = vld [vmem:[#allocation11 + $0xa0] ss:$16 sps:$4 sm:$0xff]   ;;  %v7555_v39 = vld [vmem:[#allocation11 + $0xc4] ss:$16 sps:$4 sm:$0xff]   ;;  %v7558_v13 = vld [vmem:[#allocation11 + $0xcc] ss:$16 sps:$4 sm:$0xff]  }
 0x7be   :  { %v3327_v23 = vmul.f32 %v5316_v30, %v7284_v61  ;;  %8420 = vst [vmem:[#allocation44_spill] sm:$0xff] %v7558_v13  ;;  %v7561_v15 = vld [vmem:[#allocation11 + $0xc0] ss:$16 sps:$4 sm:$0xff]   ;;  %v7564_v10 = vld [vmem:[#allocation11 + $0xc8] ss:$16 sps:$4 sm:$0xff]  }
 0x7bf   :  { %3585 = vmatpush1.bf16.msra.mxu0 %v7237_v34  ;;  %3628 = vmatpush1.bf16.msra.mxu1 %v7240_v14  ;;  %5319 = vtanh.f32 %v7464_v51  ;;  %v8417_v34 = vld [vmem:[#allocation48_spill] sm:$0xff]  ;;  %v8418_v14 = vld [vmem:[#allocation49_spill] sm:$0xff]  ;;  %8421 = vst [vmem:[#allocation45_spill] sm:$0xff] %v7561_v15  ;;  %8422 = vst [vmem:[#allocation46_spill] sm:$0xff] %v7564_v10 }
 0x7c0   :  { %3586 = vmatprep.subr.bf16.mxu0 %v7244_v44  ;;  %3629 = vmatprep.subr.bf16.mxu1 %v7247_v62  ;;  %v7472_v1 = vadd.f32 %v3329_v4, %v3327_v23  ;;  %5321 = vrcp.f32 %v3321_v24  ;;  %v8419_v44 = vld [vmem:[#allocation50_spill] sm:$0xff]  ;;  %v5318_v62 = vpop.eup %5317  ;;  %v7567_v27 = vld [vmem:[#allocation11 + $0xe4] ss:$16 sps:$4 sm:$0xff]   ;;  %v7573_v4 = vld [vmem:[#allocation11 + $0xe0] ss:$16 sps:$4 sm:$0xff]  }
 0x7c1   :  { %8423 = vst [vmem:[#allocation47_spill] sm:$0xff] %v7567_v27  ;;  %8425 = vst [vmem:[#allocation69_spill] sm:$0xff] %v7573_v4  ;;  %v7576_v30 = vld [vmem:[#allocation11 + $0xe8] ss:$16 sps:$4 sm:$0xff]   ;;  %v7579_v24 = vld [vmem:[#allocation9 + $0x4] ss:$16 sps:$4 sm:$0xff]  }
 0x7c2   :  { %5323 = vtanh.f32 %v7472_v1  ;;  %8426 = vst [vmem:[#allocation28_spill] sm:$0xff] %v7576_v30  ;;  %8427 = vst [vmem:[#allocation29_spill] sm:$0xff] %v7579_v24  ;;  %v7582_v23 = vld [vmem:[#allocation9 + $0xc] ss:$16 sps:$4 sm:$0xff]  }
 0x7c3   :  { %3587 = vmatpush1.bf16.msra.mxu0 %v7251_v31  ;;  %3630 = vmatpush1.bf16.msra.mxu1 %v7254_v19  ;;  %v7487_v19 = vld [vmem:[#allocation11] ss:$16 sps:$4 sm:$0xff]   ;;  %8428 = vst [vmem:[#allocation30_spill] sm:$0xff] %v7582_v23 }
 0x7c4   :  { %3588 = vmatprep.subr.bf16.mxu0 %v8414_v53  ;;  %3631 = vmatprep.subr.bf16.mxu1 %v8415_v58 }
 0x7c7   :  { %3589 = vmatpush1.bf16.msra.mxu0 %v8416_v41  ;;  %3632 = vmatpush1.bf16.msra.mxu1 %v8417_v34  ;;  %v8429_v41 = vld [vmem:[#allocation70_spill] sm:$0xff] }
 0x7c8   :  { %3717 = vmatprep.subr.bf16.mxu0 %v8418_v14  ;;  %3760 = vmatprep.subr.bf16.mxu1 %v8419_v44 }
 0x7c9   :  { %v5320_v56 = vpop.eup %5319 }
 0x7ca   :  { %v5322_v61 = vpop.eup %5321  ;;  %v3334_v54 = vmul.f32 %v5320_v56, %v5318_v62 }
 0x7cc   :  { %v5324_v29 = vpop.eup %5323 }
 0x7cd   :  { %v3335_v31 = vmul.f32 %v5324_v29, %v5322_v61 }
 0x7cf   :  { %v7483_v52 = vpack.c.bf16 %v3335_v31, %v3334_v54 }
 0x7d1   :  { %3607 = vmatmul.mubr.bf16.vlgmr.msra.gmra.mrb[52].mxu0 %v7483_v52  ;;  %3650 = vmatmul.mubr.bf16.vlgmr.msra.gmra.mrb[36].mxu1 %v7483_v52 }
 0x7d2   :  { %3718 = vmatpush1.bf16.msra.mxu0 %v7487_v19  ;;  %3761 = vmatpush1.bf16.msra.mxu1 %v7490_v36 }
 0x7d3   :  { %3719 = vmatprep.subr.bf16.mxu0 %v7493_v46  ;;  %3762 = vmatprep.subr.bf16.mxu1 %v7496_v33 }
 0x7d4   :  { %3749 = vmatprep.mubr.bf16.mxu0 %v8095_v45  ;;  %3792 = vmatprep.mubr.bf16.mxu1 %v8095_v45 }
 0x7d6   :  { %3720 = vmatpush1.bf16.msra.mxu0 %v7501_v16  ;;  %3763 = vmatpush1.bf16.msra.mxu1 %v7504_v47 }
 0x7d7   :  { %3721 = vmatprep.subr.bf16.mxu0 %v7507_v6  ;;  %3764 = vmatprep.subr.bf16.mxu1 %v7510_v3 }
 0x7da   :  { %3722 = vmatpush1.bf16.msra.mxu0 %v7513_v0  ;;  %3765 = vmatpush1.bf16.msra.mxu1 %v7516_v49 }
 0x7db   :  { %3723 = vmatprep.subr.bf16.mxu0 %v7519_v12  ;;  %3766 = vmatprep.subr.bf16.mxu1 %v7522_v38 }
 0x7de   :  { %3724 = vmatpush1.bf16.msra.mxu0 %v7525_v57  ;;  %3767 = vmatpush1.bf16.msra.mxu1 %v7528_v21 }
 0x7df   :  { %3725 = vmatprep.subr.bf16.mxu0 %v7531_v55  ;;  %3768 = vmatprep.subr.bf16.mxu1 %v7534_v22 }
 0x7e2   :  { %3726 = vmatpush1.bf16.msra.mxu0 %v7537_v11  ;;  %3769 = vmatpush1.bf16.msra.mxu1 %v7540_v26 }
 0x7e3   :  { %3727 = vmatprep.subr.bf16.mxu0 %v7543_v28  ;;  %3770 = vmatprep.subr.bf16.mxu1 %v7546_v35 }
 0x7e6   :  { %3728 = vmatpush1.bf16.msra.mxu0 %v7549_v40  ;;  %3771 = vmatpush1.bf16.msra.mxu1 %v7552_v60 }
 0x7e7   :  { %3729 = vmatprep.subr.bf16.mxu0 %v7555_v39  ;;  %3772 = vmatprep.subr.bf16.mxu1 %v7558_v13 }
 0x7ea   :  { %3730 = vmatpush1.bf16.msra.mxu0 %v7561_v15  ;;  %3773 = vmatpush1.bf16.msra.mxu1 %v7564_v10 }
 0x7eb   :  { %3731 = vmatprep.subr.bf16.mxu0 %v7567_v27  ;;  %3774 = vmatprep.subr.bf16.mxu1 %v7570_v50 }
 0x7ee   :  { %3732 = vmatpush1.bf16.msra.mxu0 %v7573_v4  ;;  %3775 = vmatpush1.bf16.msra.mxu1 %v7576_v30 }
 0x7ef   :  { %3803 = vmatprep.subr.bf16.mxu0 %v7579_v24  ;;  %3846 = vmatprep.subr.bf16.mxu1 %v7582_v23 }
 0x87d   :  { %v3457_v53 = vpop.f32.mrb[48].mxu0  ;;  %v3500_v58 = vpop.f32.mrb[60].mxu1 }
 0x87e   :  { %v3509_v34 = vadd.f32 %v3457_v53, %v8429_v41  ;;  %v3459_v62 = vpop.f32.mrb[49].mxu0  ;;  %v3502_v56 = vpop.f32.mrb[61].mxu1 }
 0x87f   :  { %v3510_v61 = vadd.f32 %v3459_v62, %v8228_v20  ;;  %v3461_v29 = vpop.f32.mrb[50].mxu0  ;;  %v3504_v54 = vpop.f32.mrb[62].mxu1  ;;  %v3512_v53 = vadd.f32 %v3502_v56, %v8229_v37  ;;  %v3511_v62 = vadd.f32 %v3500_v58, %v8230_v42 }
 0x880   :  { %v4506_v31 = vmul.f32 -1.442695, %v3509_v34  ;;  %v3513_v30 = vadd.f32 %v3461_v29, %v8429_v41  ;;  %v3463_v4 = vpop.f32.mrb[51].mxu0  ;;  %v3506_v50 = vpop.f32.mrb[63].mxu1  ;;  %v3515_v29 = vadd.f32 %v3504_v54, %v8230_v42 }
 0x881   :  { %v4508_v24 = vmul.f32 -1.442695, %v3510_v61  ;;  %v3514_v27 = vadd.f32 %v3463_v4, %v8228_v20  ;;  %v4510_v15 = vmul.f32 -1.442695, %v3512_v53  ;;  %v3516_v34 = vadd.f32 %v3506_v50, %v8229_v37 }
 0x882   :  { %5325 = vpow2.f32 %v4506_v31  ;;  %v4507_v23 = vmul.f32 -1.442695, %v3513_v30 }
 0x883   :  { %5327 = vpow2.f32 %v4508_v24  ;;  %v4509_v10 = vmul.f32 -1.442695, %v3514_v27  ;;  %v4511_v4 = vmul.f32 -1.442695, %v3516_v34 }
 0x884   :  { %5329 = vpow2.f32 %v4507_v23 }
 0x885   :  { %5331 = vpow2.f32 %v4509_v10 }
 0x886   :  { %5333 = vtanh.f32 %v3511_v62 }
 0x887   :  { %5335 = vpow2.f32 %v4510_v15 }
 0x888   :  { %5337 = vtanh.f32 %v3515_v29 }
 0x88c   :  { %v5326_v41 = vpop.eup %5325 }
 0x88d   :  { %v5328_v61 = vpop.eup %5327  ;;  %v3523_v13 = vadd.f32 1.0, %v5326_v41 }
 0x88e   :  { %v3535_v30 = vadd.f32 1.0, %v5328_v61  ;;  %v5330_v27 = vpop.eup %5329 }
 0x88f   :  { %5339 = vrcp.f32 %v3523_v13  ;;  %v3524_v24 = vadd.f32 1.0, %v5330_v27  ;;  %v5332_v10 = vpop.eup %5331 }
 0x890   :  { %5341 = vrcp.f32 %v3535_v30  ;;  %v3536_v23 = vadd.f32 1.0, %v5332_v10  ;;  %v5334_v50 = vpop.eup %5333  ;;  %v8433_v10 = vld [vmem:[#allocation22_spill] sm:$0xff] }
 0x891   :  { %5343 = vpow2.f32 %v4511_v4  ;;  %v5336_v58 = vpop.eup %5335 }
 0x892   :  { %5345 = vrcp.f32 %v3524_v24  ;;  %v5338_v56 = vpop.eup %5337  ;;  %v3549_v34 = vadd.f32 1.0, %v5336_v58  ;;  %v8432_v24 = vld [vmem:[#allocation21_spill] sm:$0xff] }
 0x893   :  { %5347 = vrcp.f32 %v3536_v23  ;;  %v342_v23 = vadd.f32 %v8433_v10, %v6170_v5 }
 0x894   :  { %5349 = vrcp.f32 %v3549_v34 }
 0x899   :  { %v5340_v54 = vpop.eup %5339 }
 0x89a   :  { %v5342_v31 = vpop.eup %5341  ;;  %v3557_v53 = vmul.f32 %v5340_v54, %v5334_v50 }
 0x89b   :  { %v5344_v41 = vpop.eup %5343  ;;  %v3555_v15 = vmul.f32 %v5342_v31, %v7334_v17  ;;  %v340_v17 = vadd.f32 %v8432_v24, %v8320_v43 }
 0x89c   :  { %v5346_v62 = vpop.eup %5345  ;;  %v3550_v30 = vadd.f32 1.0, %v5344_v41  ;;  %v8435_v41 = vld [vmem:[#allocation24_spill] sm:$0xff] }
 0x89d   :  { %v7594_v29 = vadd.f32 %v3557_v53, %v3555_v15  ;;  %v3558_v13 = vmul.f32 %v5346_v62, %v5338_v56  ;;  %v5348_v61 = vpop.eup %5347  ;;  %v8434_v56 = vld [vmem:[#allocation23_spill] sm:$0xff]  ;;  %v346_v15 = vadd.f32 %v8435_v41, %v6170_v5 }
 0x89e   :  { %v3556_v4 = vmul.f32 %v5348_v61, %v7338_v59  ;;  %v344_v54 = vadd.f32 %v8434_v56, %v8320_v43 }
 0x89f   :  { %8430 = vst [vmem:[#allocation31_spill] sm:$0xff] %v7594_v29  ;;  %5351 = vtanh.f32 %v7594_v29  ;;  %v5350_v29 = vpop.eup %5349 }
 0x8a0   :  { %v7598_v27 = vadd.f32 %v3558_v13, %v3556_v4  ;;  %5353 = vrcp.f32 %v3550_v30 }
 0x8a2   :  { %8431 = vst [vmem:[#allocation32_spill] sm:$0xff] %v7598_v27  ;;  %5355 = vtanh.f32 %v7598_v27 }
 0x8a4   :  { %v3608_v50 = vpop.f32.mrb[52].mxu0  ;;  %v3651_v58 = vpop.f32.mrb[36].mxu1 }
 0x8a5   :  { %v3660_v59 = vadd.f32 %v3608_v50, %v340_v17  ;;  %v3610_v31 = vpop.f32.mrb[53].mxu0  ;;  %v3653_v53 = vpop.f32.mrb[37].mxu1 }
 0x8a6   :  { %v3661_v62 = vadd.f32 %v3610_v31, %v342_v23  ;;  %v3612_v34 = vpop.f32.mrb[54].mxu0  ;;  %v3655_v13 = vpop.f32.mrb[38].mxu1  ;;  %v4639_v56 = vadd.f32 %v3653_v53, %v6184_v7 }
 0x8a7   :  { %v4512_v61 = vmul.f32 -1.442695, %v3660_v59  ;;  %v3664_v30 = vadd.f32 %v3612_v34, %v344_v54  ;;  %v3614_v4 = vpop.f32.mrb[55].mxu0  ;;  %v3657_v24 = vpop.f32.mrb[39].mxu1  ;;  %v4638_v54 = vadd.f32 %v3651_v58, %v6180_v2  ;;  %v8439_v34 = vld [vmem:[#allocation54_spill] sm:$0xff] }
 0x8a8   :  { %v4514_v27 = vmul.f32 -1.442695, %v3661_v62  ;;  %v3665_v10 = vadd.f32 %v3614_v4, %v346_v15  ;;  %v4516_v31 = vmul.f32 -1.442695, %v4639_v56  ;;  %v4641_v41 = vadd.f32 %v3657_v24, %v6184_v7  ;;  %v8442_v4 = vld [vmem:[#allocation57_spill] sm:$0xff] }
 0x8a9   :  { %5357 = vpow2.f32 %v4512_v61  ;;  %v4513_v42 = vmul.f32 -1.442695, %v3664_v30  ;;  %v5352_v37 = vpop.eup %5351  ;;  %v4640_v15 = vadd.f32 %v3655_v13, %v6180_v2  ;;  %v8440_v13 = vld [vmem:[#allocation55_spill] sm:$0xff]  ;;  %v8441_v30 = vld [vmem:[#allocation56_spill] sm:$0xff]  ;;  %v8446_v56 = vld [vmem:[#allocation61_spill] sm:$0xff] }
 0x8aa   :  { %5359 = vpow2.f32 %v4514_v27  ;;  %v4515_v43 = vmul.f32 -1.442695, %v3665_v10  ;;  %v5354_v17 = vpop.eup %5353  ;;  %v3563_v5 = vmul.f32 %v5352_v37, %v5350_v29  ;;  %v8436_v27 = vld [vmem:[#allocation51_spill] sm:$0xff]  ;;  %v8438_v37 = vld [vmem:[#allocation53_spill] sm:$0xff]  ;;  %v4517_v53 = vmul.f32 -1.442695, %v4641_v41 }
 0x8ab   :  { %5361 = vpow2.f32 %v4513_v42  ;;  %v8437_v42 = vld [vmem:[#allocation52_spill] sm:$0xff] }
 0x8ac   :  { %v5356_v50 = vpop.eup %5355  ;;  %5363 = vpow2.f32 %v4515_v43  ;;  %v8443_v43 = vld [vmem:[#allocation58_spill] sm:$0xff]  ;;  %v8449_v41 = vld [vmem:[#allocation64_spill] sm:$0xff] }
 0x8ad   :  { %v3564_v23 = vmul.f32 %v5356_v50, %v5354_v17  ;;  %5365 = vtanh.f32 %v4638_v54  ;;  %v8444_v17 = vld [vmem:[#allocation59_spill] sm:$0xff]  ;;  %v8445_v50 = vld [vmem:[#allocation60_spill] sm:$0xff]  ;;  %v8447_v54 = vld [vmem:[#allocation62_spill] sm:$0xff] }
 0x8ae   :  { %5367 = vpow2.f32 %v4516_v31 }
 0x8af   :  { %v3565_v59 = vpack.c.bf16 %v3564_v23, %v3563_v5  ;;  %5369 = vtanh.f32 %v4640_v15  ;;  %v8450_v15 = vld [vmem:[#allocation65_spill] sm:$0xff] }
 0x8b1   :  { %3750 = vmatmul.mubr.bf16.vlgmr.msra.gmra.mrb[56].mxu0 %v3565_v59  ;;  %3793 = vmatmul.mubr.bf16.vlgmr.msra.gmra.mrb[64].mxu1 %v3565_v59  ;;  %v8448_v59 = vld [vmem:[#allocation63_spill] sm:$0xff] }
 0x8b2   :  { %3804 = vmatpush1.bf16.msra.mxu0 %v7341_v32  ;;  %3847 = vmatpush1.bf16.msra.mxu1 %v8436_v27 }
 0x8b3   :  { %v5358_v62 = vpop.eup %5357  ;;  %3805 = vmatprep.subr.bf16.mxu0 %v8437_v42  ;;  %3848 = vmatprep.subr.bf16.mxu1 %v8438_v37 }
 0x8b4   :  { %v5360_v29 = vpop.eup %5359  ;;  %v3674_v58 = vadd.f32 1.0, %v5358_v62  ;;  %3835 = vmatprep.mubr.bf16.mxu0 %v8095_v45  ;;  %3878 = vmatprep.mubr.bf16.mxu1 %v8095_v45 }
 0x8b5   :  { %v3686_v2 = vadd.f32 1.0, %v5360_v29  ;;  %v5362_v7 = vpop.eup %5361 }
 0x8b6   :  { %5371 = vrcp.f32 %v3674_v58  ;;  %3806 = vmatpush1.bf16.msra.mxu0 %v8439_v34  ;;  %3849 = vmatpush1.bf16.msra.mxu1 %v8440_v13  ;;  %v3675_v61 = vadd.f32 1.0, %v5362_v7  ;;  %v5364_v24 = vpop.eup %5363 }
 0x8b7   :  { %5373 = vrcp.f32 %v3686_v2  ;;  %3807 = vmatprep.subr.bf16.mxu0 %v8441_v30  ;;  %3850 = vmatprep.subr.bf16.mxu1 %v8442_v4  ;;  %v3687_v10 = vadd.f32 1.0, %v5364_v24  ;;  %v5366_v5 = vpop.eup %5365  ;;  %v8452_v24 = vld [vmem:[#allocation66_spill] sm:$0xff] }
 0x8b8   :  { %5375 = vpow2.f32 %v4517_v53  ;;  %v5368_v23 = vpop.eup %5367 }
 0x8b9   :  { %5377 = vrcp.f32 %v3675_v61  ;;  %v5370_v31 = vpop.eup %5369  ;;  %v3700_v53 = vadd.f32 1.0, %v5368_v23  ;;  %v8451_v61 = vld [vmem:[#allocation25_spill] sm:$0xff] }
 0x8ba   :  { %3808 = vmatpush1.bf16.msra.mxu0 %v8443_v43  ;;  %3851 = vmatpush1.bf16.msra.mxu1 %v8444_v17  ;;  %5379 = vrcp.f32 %v3687_v10  ;;  %v7637_v23 = vld [vmem:[#allocation9 + $0xa0] ss:$16 sps:$4 sm:$0xff]  }
 0x8bb   :  { %3809 = vmatprep.subr.bf16.mxu0 %v8445_v50  ;;  %3852 = vmatprep.subr.bf16.mxu1 %v8446_v56  ;;  %5381 = vrcp.f32 %v3700_v53 }
 0x8be   :  { %3810 = vmatpush1.bf16.msra.mxu0 %v8447_v54  ;;  %3853 = vmatpush1.bf16.msra.mxu1 %v8448_v59  ;;  %v8453_v54 = vld [vmem:[#allocation67_spill] sm:$0xff]  ;;  %v8454_v59 = vld [vmem:[#allocation68_spill] sm:$0xff] }
 0x8bf   :  { %3811 = vmatprep.subr.bf16.mxu0 %v8449_v41  ;;  %3854 = vmatprep.subr.bf16.mxu1 %v8450_v15 }
 0x8c0   :  { %v5372_v62 = vpop.eup %5371 }
 0x8c1   :  { %v5374_v29 = vpop.eup %5373  ;;  %v3708_v58 = vmul.f32 %v5372_v62, %v5366_v5  ;;  %v7643_v62 = vld [vmem:[#allocation9 + $0xc4] ss:$16 sps:$4 sm:$0xff]  }
 0x8c2   :  { %v5376_v2 = vpop.eup %5375  ;;  %v3706_v7 = vmul.f32 %v5374_v29, %v7464_v51  ;;  %3812 = vmatpush1.bf16.msra.mxu0 %v8451_v61  ;;  %3855 = vmatpush1.bf16.msra.mxu1 %v8452_v24  ;;  %v7640_v51 = vld [vmem:[#allocation9 + $0xa8] ss:$16 sps:$4 sm:$0xff]   ;;  %v7646_v29 = vld [vmem:[#allocation9 + $0xcc] ss:$16 sps:$4 sm:$0xff]  }
 0x8c3   :  { %v5378_v10 = vpop.eup %5377  ;;  %3813 = vmatprep.subr.bf16.mxu0 %v8453_v54  ;;  %3856 = vmatprep.subr.bf16.mxu1 %v8454_v59  ;;  %v3701_v15 = vadd.f32 1.0, %v5376_v2  ;;  %v8465_v2 = vld [vmem:[#allocation26_spill] sm:$0xff] }
 0x8c4   :  { %v3710_v56 = vadd.f32 %v3708_v58, %v3706_v7  ;;  %v3709_v41 = vmul.f32 %v5378_v10, %v5370_v31  ;;  %v5380_v50 = vpop.eup %5379  ;;  %v8466_v10 = vld [vmem:[#allocation27_spill] sm:$0xff] }
 0x8c5   :  { %v3707_v5 = vmul.f32 %v5380_v50, %v7472_v1  ;;  %v5382_v1 = vpop.eup %5381 }
 0x8c6   :  { %5383 = vtanh.f32 %v3710_v56  ;;  %3814 = vmatpush1.bf16.msra.mxu0 %v7637_v23  ;;  %3857 = vmatpush1.bf16.msra.mxu1 %v7640_v51 }
 0x8c7   :  { %3815 = vmatprep.subr.bf16.mxu0 %v7643_v62  ;;  %3858 = vmatprep.subr.bf16.mxu1 %v7646_v29  ;;  %v3711_v31 = vadd.f32 %v3709_v41, %v3707_v5  ;;  %5385 = vrcp.f32 %v3701_v15 }
 0x8c9   :  { %5387 = vtanh.f32 %v3711_v31 }
 0x8ca   :  { %3816 = vmatpush1.bf16.msra.mxu0 %v7415_v25  ;;  %3859 = vmatpush1.bf16.msra.mxu1 %v7418_v63 }
 0x8cb   :  { %3817 = vmatprep.subr.bf16.mxu0 %v7421_v9  ;;  %3860 = vmatprep.subr.bf16.mxu1 %v7424_v8 }
 0x8ce   :  { %3818 = vmatpush1.bf16.msra.mxu0 %v7428_v48  ;;  %3861 = vmatpush1.bf16.msra.mxu1 %v7431_v18 }
 0x8cf   :  { %3946 = vmatprep.subr.bf16.mxu0 %v8418_v14  ;;  %3989 = vmatprep.subr.bf16.mxu1 %v8419_v44 }
 0x8d0   :  { %v5384_v50 = vpop.eup %5383 }
 0x8d1   :  { %3836 = vmatmul.mubr.bf16.vlgmr.msra.gmra.mrb[56].mxu0 %v7483_v52  ;;  %3879 = vmatmul.mubr.bf16.vlgmr.msra.gmra.mrb[64].mxu1 %v7483_v52  ;;  %v3714_v56 = vmul.f32 %v5384_v50, %v5382_v1  ;;  %v5386_v41 = vpop.eup %5385  ;;  %v8455_v52 = vld [vmem:[#allocation44_spill] sm:$0xff] }
 0x8d2   :  { %3947 = vmatpush1.bf16.msra.mxu0 %v7487_v19  ;;  %3990 = vmatpush1.bf16.msra.mxu1 %v7490_v36  ;;  %v8456_v19 = vld [vmem:[#allocation45_spill] sm:$0xff]  ;;  %v8457_v36 = vld [vmem:[#allocation46_spill] sm:$0xff] }
 0x8d3   :  { %3948 = vmatprep.subr.bf16.mxu0 %v7493_v46  ;;  %3991 = vmatprep.subr.bf16.mxu1 %v7496_v33  ;;  %v5388_v15 = vpop.eup %5387  ;;  %v8458_v46 = vld [vmem:[#allocation47_spill] sm:$0xff] }
 0x8d4   :  { %3978 = vmatprep.mubr.bf16.mxu0 %v8095_v45  ;;  %4021 = vmatprep.mubr.bf16.mxu1 %v8095_v45  ;;  %v3715_v14 = vmul.f32 %v5388_v15, %v5386_v41  ;;  %v8459_v33 = vld [vmem:[#allocation71_spill] sm:$0xff] }
 0x8d6   :  { %3949 = vmatpush1.bf16.msra.mxu0 %v7501_v16  ;;  %3992 = vmatpush1.bf16.msra.mxu1 %v7504_v47  ;;  %v7669_v44 = vpack.c.bf16 %v3715_v14, %v3714_v56  ;;  %v8460_v16 = vld [vmem:[#allocation69_spill] sm:$0xff]  ;;  %v8461_v47 = vld [vmem:[#allocation28_spill] sm:$0xff] }
 0x8d7   :  { %3950 = vmatprep.subr.bf16.mxu0 %v7507_v6  ;;  %3993 = vmatprep.subr.bf16.mxu1 %v7510_v3  ;;  %v8462_v6 = vld [vmem:[#allocation29_spill] sm:$0xff]  ;;  %v8463_v3 = vld [vmem:[#allocation30_spill] sm:$0xff] }
 0x8da   :  { %3951 = vmatpush1.bf16.msra.mxu0 %v7513_v0  ;;  %3994 = vmatpush1.bf16.msra.mxu1 %v7516_v49 }
 0x8db   :  { %3952 = vmatprep.subr.bf16.mxu0 %v7519_v12  ;;  %3995 = vmatprep.subr.bf16.mxu1 %v7522_v38  ;;  %v8464_v12 = vld [vmem:[#allocation70_spill] sm:$0xff] }
 0x8de   :  { %3953 = vmatpush1.bf16.msra.mxu0 %v7525_v57  ;;  %3996 = vmatpush1.bf16.msra.mxu1 %v7528_v21 }
 0x8df   :  { %3954 = vmatprep.subr.bf16.mxu0 %v7531_v55  ;;  %3997 = vmatprep.subr.bf16.mxu1 %v7534_v22 }
 0x8e2   :  { %3955 = vmatpush1.bf16.msra.mxu0 %v7537_v11  ;;  %3998 = vmatpush1.bf16.msra.mxu1 %v7540_v26 }
 0x8e3   :  { %3956 = vmatprep.subr.bf16.mxu0 %v7543_v28  ;;  %3999 = vmatprep.subr.bf16.mxu1 %v7546_v35 }
 0x8e6   :  { %3957 = vmatpush1.bf16.msra.mxu0 %v7549_v40  ;;  %4000 = vmatpush1.bf16.msra.mxu1 %v7552_v60 }
 0x8e7   :  { %3958 = vmatprep.subr.bf16.mxu0 %v7555_v39  ;;  %4001 = vmatprep.subr.bf16.mxu1 %v8455_v52 }
 0x8ea   :  { %3959 = vmatpush1.bf16.msra.mxu0 %v8456_v19  ;;  %4002 = vmatpush1.bf16.msra.mxu1 %v8457_v36 }
 0x8eb   :  { %3960 = vmatprep.subr.bf16.mxu0 %v8458_v46  ;;  %4003 = vmatprep.subr.bf16.mxu1 %v8459_v33 }
 0x8ee   :  { %3961 = vmatpush1.bf16.msra.mxu0 %v8460_v16  ;;  %4004 = vmatpush1.bf16.msra.mxu1 %v8461_v47 }
 0x8ef   :  { %4032 = vmatprep.subr.bf16.mxu0 %v8462_v6  ;;  %4075 = vmatprep.subr.bf16.mxu1 %v8463_v3 }
 0x9a4   :  { %v3837_v0 = vpop.f32.mrb[56].mxu0  ;;  %v3880_v49 = vpop.f32.mrb[64].mxu1 }
 0x9a5   :  { %v3889_v38 = vadd.f32 %v3837_v0, %v8464_v12  ;;  %v3839_v57 = vpop.f32.mrb[57].mxu0  ;;  %v3882_v21 = vpop.f32.mrb[65].mxu1  ;;  %v3891_v5 = vadd.f32 %v3880_v49, %v8466_v10 }
 0x9a6   :  { %v3890_v55 = vadd.f32 %v3839_v57, %v8228_v20  ;;  %v3841_v22 = vpop.f32.mrb[58].mxu0  ;;  %v3884_v11 = vpop.f32.mrb[66].mxu1  ;;  %v3892_v7 = vadd.f32 %v3882_v21, %v8465_v2  ;;  %v8467_v57 = vld [vmem:[#allocation31_spill] sm:$0xff] }
 0x9a7   :  { %v4518_v26 = vmul.f32 -1.442695, %v3889_v38  ;;  %v3893_v28 = vadd.f32 %v3841_v22, %v8464_v12  ;;  %v3843_v35 = vpop.f32.mrb[59].mxu0  ;;  %v3886_v40 = vpop.f32.mrb[67].mxu1  ;;  %v3895_v50 = vadd.f32 %v3884_v11, %v8466_v10 }
 0x9a8   :  { %v4520_v60 = vmul.f32 -1.442695, %v3890_v55  ;;  %v3894_v39 = vadd.f32 %v3843_v35, %v8228_v20  ;;  %v4522_v31 = vmul.f32 -1.442695, %v3892_v7  ;;  %v3896_v1 = vadd.f32 %v3886_v40, %v8465_v2  ;;  %v8468_v40 = vld [vmem:[#allocation32_spill] sm:$0xff] }
 0x9a9   :  { %5389 = vpow2.f32 %v4518_v26  ;;  %v4519_v58 = vmul.f32 -1.442695, %v3893_v28 }
 0x9aa   :  { %5391 = vpow2.f32 %v4520_v60  ;;  %v4521_v53 = vmul.f32 -1.442695, %v3894_v39  ;;  %v4523_v14 = vmul.f32 -1.442695, %v3896_v1 }
 0x9ab   :  { %5393 = vpow2.f32 %v4519_v58 }
 0x9ac   :  { %5395 = vpow2.f32 %v4521_v53 }
 0x9ad   :  { %5397 = vtanh.f32 %v3891_v5 }
 0x9ae   :  { %5399 = vpow2.f32 %v4522_v31 }
 0x9af   :  { %5401 = vtanh.f32 %v3895_v50 }
 0x9b3   :  { %v5390_v56 = vpop.eup %5389 }
 0x9b4   :  { %v5392_v41 = vpop.eup %5391  ;;  %v3903_v15 = vadd.f32 1.0, %v5390_v56 }
 0x9b5   :  { %v3915_v52 = vadd.f32 1.0, %v5392_v41  ;;  %v5394_v19 = vpop.eup %5393 }
 0x9b6   :  { %5403 = vrcp.f32 %v3903_v15  ;;  %v3904_v36 = vadd.f32 1.0, %v5394_v19  ;;  %v5396_v46 = vpop.eup %5395 }
 0x9b7   :  { %5405 = vrcp.f32 %v3915_v52  ;;  %v3916_v33 = vadd.f32 1.0, %v5396_v46  ;;  %v5398_v16 = vpop.eup %5397 }
 0x9b8   :  { %5407 = vpow2.f32 %v4523_v14  ;;  %v5400_v47 = vpop.eup %5399 }
 0x9b9   :  { %5409 = vrcp.f32 %v3904_v36  ;;  %v5402_v6 = vpop.eup %5401  ;;  %v3929_v22 = vadd.f32 1.0, %v5400_v47 }
 0x9ba   :  { %5411 = vrcp.f32 %v3916_v33 }
 0x9bb   :  { %5413 = vrcp.f32 %v3929_v22 }
 0x9c0   :  { %v5404_v3 = vpop.eup %5403 }
 0x9c1   :  { %v5406_v0 = vpop.eup %5405  ;;  %v3937_v49 = vmul.f32 %v5404_v3, %v5398_v16 }
 0x9c2   :  { %v5408_v38 = vpop.eup %5407  ;;  %v3935_v21 = vmul.f32 %v5406_v0, %v8467_v57 }
 0x9c3   :  { %v5410_v55 = vpop.eup %5409  ;;  %v3930_v35 = vadd.f32 1.0, %v5408_v38 }
 0x9c4   :  { %v7704_v11 = vadd.f32 %v3937_v49, %v3935_v21  ;;  %v3938_v26 = vmul.f32 %v5410_v55, %v5402_v6  ;;  %v5412_v28 = vpop.eup %5411 }
 0x9c5   :  { %v3936_v60 = vmul.f32 %v5412_v28, %v8468_v40  ;;  %v5414_v58 = vpop.eup %5413 }
 0x9c6   :  { %5415 = vtanh.f32 %v7704_v11 }
 0x9c7   :  { %v7708_v39 = vadd.f32 %v3938_v26, %v3936_v60  ;;  %5417 = vrcp.f32 %v3930_v35 }
 0x9c9   :  { %5419 = vtanh.f32 %v7708_v39 }
 0x9d0   :  { %v5416_v53 = vpop.eup %5415 }
 0x9d1   :  { %v5418_v7 = vpop.eup %5417  ;;  %v3943_v31 = vmul.f32 %v5416_v53, %v5414_v58 }
 0x9d3   :  { %v5420_v5 = vpop.eup %5419 }
 0x9d4   :  { %v3944_v1 = vmul.f32 %v5420_v5, %v5418_v7 }
 0x9d6   :  { %v3945_v50 = vpack.c.bf16 %v3944_v1, %v3943_v31 }
 0x9d8   :  { %3979 = vmatmul.mubr.bf16.vlgmr.msra.gmra.mrb[60].mxu0 %v3945_v50  ;;  %4022 = vmatmul.mubr.bf16.vlgmr.msra.gmra.mrb[68].mxu1 %v3945_v50 }
 0x9d9   :  { %4033 = vmatpush1.bf16.msra.mxu0 %v7341_v32  ;;  %4076 = vmatpush1.bf16.msra.mxu1 %v8436_v27  ;;  %v8469_v32 = vld [vmem:[#allocation60_spill] sm:$0xff]  ;;  %v8470_v27 = vld [vmem:[#allocation61_spill] sm:$0xff] }
 0x9da   :  { %4034 = vmatprep.subr.bf16.mxu0 %v8437_v42  ;;  %4077 = vmatprep.subr.bf16.mxu1 %v8438_v37  ;;  %v8471_v42 = vld [vmem:[#allocation62_spill] sm:$0xff]  ;;  %v8472_v37 = vld [vmem:[#allocation63_spill] sm:$0xff] }
 0x9db   :  { %4064 = vmatprep.mubr.bf16.mxu0 %v8095_v45  ;;  %4107 = vmatprep.mubr.bf16.mxu1 %v8095_v45  ;;  %v8473_v45 = vld [vmem:[#allocation64_spill] sm:$0xff] }
 0x9dd   :  { %4035 = vmatpush1.bf16.msra.mxu0 %v8439_v34  ;;  %4078 = vmatpush1.bf16.msra.mxu1 %v8440_v13  ;;  %v8474_v34 = vld [vmem:[#allocation65_spill] sm:$0xff]  ;;  %v4933_v13 = vld [vmem:[%s7806_s9] sm:$0xff]  }
 0x9de   :  { %4036 = vmatprep.subr.bf16.mxu0 %v8441_v30  ;;  %4079 = vmatprep.subr.bf16.mxu1 %v8442_v4  ;;  %v5795_v30 = vmov 0.0   ;;  %v4940_v4 = vld [vmem:[%s7806_s9 + $0x38] sm:$0xff]  }
 0x9e1   :  { %4037 = vmatpush1.bf16.msra.mxu0 %v8443_v43  ;;  %4080 = vmatpush1.bf16.msra.mxu1 %v8444_v17 }
 0x9e2   :  { %4038 = vmatprep.subr.bf16.mxu0 %v8469_v32  ;;  %4081 = vmatprep.subr.bf16.mxu1 %v8470_v27 }
 0x9e5   :  { %4039 = vmatpush1.bf16.msra.mxu0 %v8471_v42  ;;  %4082 = vmatpush1.bf16.msra.mxu1 %v8472_v37 }
 0x9e6   :  { %4040 = vmatprep.subr.bf16.mxu0 %v8473_v45  ;;  %4083 = vmatprep.subr.bf16.mxu1 %v8474_v34 }
 0x9e9   :  { %4041 = vmatpush1.bf16.msra.mxu0 %v8451_v61  ;;  %4084 = vmatpush1.bf16.msra.mxu1 %v8452_v24 }
 0x9ea   :  { %4042 = vmatprep.subr.bf16.mxu0 %v8453_v54  ;;  %4085 = vmatprep.subr.bf16.mxu1 %v8454_v59 }
 0x9ed   :  { %4043 = vmatpush1.bf16.msra.mxu0 %v7637_v23  ;;  %4086 = vmatpush1.bf16.msra.mxu1 %v7640_v51 }
 0x9ee   :  { %4044 = vmatprep.subr.bf16.mxu0 %v7643_v62  ;;  %4087 = vmatprep.subr.bf16.mxu1 %v7646_v29 }
 0x9f1   :  { %4045 = vmatpush1.bf16.msra.mxu0 %v7415_v25  ;;  %4088 = vmatpush1.bf16.msra.mxu1 %v7418_v63  ;;  %v4934_v25 = vld [vmem:[%s7806_s9 + $0x8] sm:$0xff]   ;;  %v4935_v63 = vld [vmem:[%s7806_s9 + $0x10] sm:$0xff]  }
 0x9f2   :  { %4046 = vmatprep.subr.bf16.mxu0 %v7421_v9  ;;  %4089 = vmatprep.subr.bf16.mxu1 %v7424_v8  ;;  %v4936_v9 = vld [vmem:[%s7806_s9 + $0x18] sm:$0xff]   ;;  %v4937_v8 = vld [vmem:[%s7806_s9 + $0x20] sm:$0xff]  }
 0x9f5   :  { %4047 = vmatpush1.bf16.msra.mxu0 %v7428_v48  ;;  %4090 = vmatpush1.bf16.msra.mxu1 %v7431_v18  ;;  %v4938_v48 = vld [vmem:[%s7806_s9 + $0x28] sm:$0xff]   ;;  %v4939_v18 = vld [vmem:[%s7806_s9 + $0x30] sm:$0xff]  }
 0x9f6   :  { %4548 = vmatprep.subr.bf16.mxu0 %v5795_v30 }
 0x9f8   :  { %4065 = vmatmul.mubr.bf16.vlgmr.msra.gmra.mrb[60].mxu0 %v7669_v44  ;;  %4108 = vmatmul.mubr.bf16.vlgmr.msra.gmra.mrb[68].mxu1 %v7669_v44 }
 0x9f9   :  { %4549 = vmatpush3.bf16.msra.mxu0 %v4933_v13  ;;  %4564 = vmatprep.mubr.msk.bf16.mxu0 %vm5796_vm1, %v5795_v30 }
 0x9fa   :  { %4550 = vmatprep.subr.bf16.mxu0 %v5795_v30 }
 0x9fd   :  { %4551 = vmatpush3.bf16.msra.mxu0 %v4934_v25 }
 0x9fe   :  { %4552 = vmatprep.subr.bf16.mxu0 %v5795_v30 }
 0xa01   :  { %4553 = vmatpush3.bf16.msra.mxu0 %v4935_v63 }
 0xa02   :  { %4554 = vmatprep.subr.bf16.mxu0 %v5795_v30 }
 0xa05   :  { %4555 = vmatpush3.bf16.msra.mxu0 %v4936_v9 }
 0xa06   :  { %4556 = vmatprep.subr.bf16.mxu0 %v5795_v30 }
 0xa09   :  { %4557 = vmatpush3.bf16.msra.mxu0 %v4937_v8 }
 0xa0a   :  { %4558 = vmatprep.subr.bf16.mxu0 %v5795_v30 }
 0xa0d   :  { %4559 = vmatpush3.bf16.msra.mxu0 %v4938_v48 }
 0xa0e   :  { %4560 = vmatprep.subr.bf16.mxu0 %v5795_v30 }
 0xa11   :  { %4561 = vmatpush3.bf16.msra.mxu0 %v4939_v18 }
 0xa12   :  { %4562 = vmatprep.subr.bf16.mxu0 %v5795_v30 }
 0xa15   :  { %4563 = vmatpush3.bf16.msra.mxu0 %v4940_v4 }
 0xacb   :  { %v4066_v43 = vpop.f32.mrb[60].mxu0  ;;  %v4109_v17 = vpop.f32.mrb[68].mxu1 }
 0xacc   :  { %v4118_v54 = vadd.f32 %v4066_v43, %v8464_v12  ;;  %v4068_v59 = vpop.f32.mrb[61].mxu0  ;;  %v4111_v61 = vpop.f32.mrb[69].mxu1  ;;  %v4120_v36 = vadd.f32 %v4109_v17, %v8466_v10 }
 0xacd   :  { %v4119_v24 = vadd.f32 %v4068_v59, %v8228_v20  ;;  %v4070_v23 = vpop.f32.mrb[62].mxu0  ;;  %v4113_v51 = vpop.f32.mrb[70].mxu1  ;;  %v4121_v19 = vadd.f32 %v4111_v61, %v8465_v2 }
 0xace   :  { %v4524_v62 = vmul.f32 -1.442695, %v4118_v54  ;;  %v4122_v29 = vadd.f32 %v4070_v23, %v8464_v12  ;;  %v4072_v44 = vpop.f32.mrb[63].mxu0  ;;  %v4115_v56 = vpop.f32.mrb[71].mxu1  ;;  %v4124_v12 = vadd.f32 %v4113_v51, %v8466_v10 }
 0xacf   :  { %v4526_v41 = vmul.f32 -1.442695, %v4119_v24  ;;  %v4123_v15 = vadd.f32 %v4072_v44, %v8228_v20  ;;  %v4528_v46 = vmul.f32 -1.442695, %v4121_v19  ;;  %v4125_v33 = vadd.f32 %v4115_v56, %v8465_v2 }
 0xad0   :  { %5421 = vpow2.f32 %v4524_v62  ;;  %v4525_v14 = vmul.f32 -1.442695, %v4122_v29 }
 0xad1   :  { %5423 = vpow2.f32 %v4526_v41  ;;  %v4527_v52 = vmul.f32 -1.442695, %v4123_v15  ;;  %v4529_v20 = vmul.f32 -1.442695, %v4125_v33 }
 0xad2   :  { %5425 = vpow2.f32 %v4525_v14 }
 0xad3   :  { %5427 = vpow2.f32 %v4527_v52 }
 0xad4   :  { %5429 = vtanh.f32 %v4120_v36 }
 0xad5   :  { %5431 = vpow2.f32 %v4528_v46 }
 0xad6   :  { %5433 = vtanh.f32 %v4124_v12 }
 0xada   :  { %v5422_v16 = vpop.eup %5421 }
 0xadb   :  { %v5424_v47 = vpop.eup %5423  ;;  %v4132_v6 = vadd.f32 1.0, %v5422_v16 }
 0xadc   :  { %v4144_v3 = vadd.f32 1.0, %v5424_v47  ;;  %v5426_v0 = vpop.eup %5425 }
 0xadd   :  { %5435 = vrcp.f32 %v4132_v6  ;;  %v4133_v49 = vadd.f32 1.0, %v5426_v0  ;;  %v5428_v38 = vpop.eup %5427 }
 0xade   :  { %5437 = vrcp.f32 %v4144_v3  ;;  %v4145_v57 = vadd.f32 1.0, %v5428_v38  ;;  %v5430_v2 = vpop.eup %5429 }
 0xadf   :  { %5439 = vpow2.f32 %v4529_v20  ;;  %v5432_v21 = vpop.eup %5431 }
 0xae0   :  { %5441 = vrcp.f32 %v4133_v49  ;;  %v5434_v10 = vpop.eup %5433  ;;  %v4158_v28 = vadd.f32 1.0, %v5432_v21 }
 0xae1   :  { %5443 = vrcp.f32 %v4145_v57 }
 0xae2   :  { %5445 = vrcp.f32 %v4158_v28 }
 0xae7   :  { %v5436_v55 = vpop.eup %5435 }
 0xae8   :  { %v5438_v22 = vpop.eup %5437  ;;  %v4166_v26 = vmul.f32 %v5436_v55, %v5430_v2 }
 0xae9   :  { %v5440_v35 = vpop.eup %5439  ;;  %v4164_v40 = vmul.f32 %v5438_v22, %v7704_v11  ;;  %v4530_v11 = vld [vmem:[%s7807_s10] ss:$0 sm:$0xff] }
 0xaea   :  { %v5442_v60 = vpop.eup %5441  ;;  %v4159_v5 = vadd.f32 1.0, %v5440_v35 }
 0xaeb   :  { %v4168_v58 = vadd.f32 %v4166_v26, %v4164_v40  ;;  %v4167_v53 = vmul.f32 %v5442_v60, %v5434_v10  ;;  %v5444_v7 = vpop.eup %5443 }
 0xaec   :  { %v4165_v31 = vmul.f32 %v5444_v7, %v7708_v39  ;;  %v5446_v50 = vpop.eup %5445 }
 0xaed   :  { %5447 = vtanh.f32 %v4168_v58 }
 0xaee   :  { %v4169_v1 = vadd.f32 %v4167_v53, %v4165_v31  ;;  %5449 = vrcp.f32 %v4159_v5 }
 0xaf0   :  { %5451 = vtanh.f32 %v4169_v1 }
 0xaf7   :  { %v5448_v32 = vpop.eup %5447 }
 0xaf8   :  { %v4172_v27 = vmul.f32 %v5448_v32, %v5446_v50  ;;  %v5450_v42 = vpop.eup %5449 }
 0xafa   :  { %v5452_v37 = vpop.eup %5451 }
 0xafb   :  { %v4173_v45 = vmul.f32 %v5452_v37, %v5450_v42 }
 0xafd   :  { %v4174_v34 = vpack.c.bf16 %v4173_v45, %v4172_v27 }
 0xaff   :  { %4565 = vmatmul.mubr.bf16.vlgmr.msra.gmra.mrb[64].mxu0 %v4174_v34 }
 0xbd2   :  { %v4280_v13 = vpop.f32.mrb[64].mxu0 }
 0xbd3   :  { %v4281_v30 = vadd.f32 %v4530_v11, %v4280_v13  ;;  %v4566_v39 = vpop.f32.mrb[65].mxu0 }
 0xbd4   :  { %v4283_v25 = vpop.f32.mrb[66].mxu0 }
 0xbd5   :  { %4287 = vst [vmem:[#allocation12] sm:$0xff] %v4281_v30  ;;  %v4284_v63 = vadd.f32 %v4530_v11, %v4283_v25  ;;  %v4567_v9 = vpop.f32.mrb[67].mxu0 }
 0xbd7   :  { %4288 = vst [vmem:[#allocation12 + $0x8] sm:$0xff] %v4284_v63 }
 0xbd8   :  { %5766 = shalt.err (!%p5763_p2)
}
 0xbd9   :  { %s5767_s22 = scalar_lea.hbm %s7808_s11, 256 }
 0xbda   :  { %p5768_p3 = scmp.ne.s32.totalorder %s7808_s11, %s5767_s22  ;;  %p5771_p4 = scmp.lt.u32.totalorder %s5767_s22, %s7808_s11 }
 0xbdc   :  { %p5773_p5 = pnand %p5771_p4, %p5768_p3 }
 0xbde   :  { %5776 = shalt.err (!%p5773_p5)
}
 0xbdf   :  { %4300 = dma.vmem_to_hbm [thread:$0]  %s4295_s24, 256, %s7808_s11, [#allocation5], %s5790_s6, %s5790_s6, %s5791_s13  }
 0xbe0   :  { %5783 = dma.done.wait [#allocation5], 256  }
 0xbe1   :  { %5784 = vsyncadd [#allocation5], 4294967040 }
 0xbe2   :  { %4304 = vsyncpa [#allocation4], 1 }
 0xbe3   :  { %4305 = vsyncpa [#allocation7], 1 }
 0xbe4   :  { %4306 = vsyncpa [#allocation10], 1 }
 0xbe5   :  { %4307 = vsyncpa [#allocation5], 1 }

</bundles_post_ra>
